<compile_context>
chip_gen: v5e
topology: v5e:2x2
jax: 0.10.0
libtpu: 0.0.40
codegen_flags: <defaults>
</compile_context>

<pallas_src>
import functools

import jax
import jax.numpy as jnp
from jax import lax
from jax.experimental import pallas as pl
from jax.experimental.pallas import tpu as pltpu

MATMUL_OPERAND_DTYPE = jnp.bfloat16    # set jnp.float32 for bit-exact f32 math
IM2COL_MAX_CIN = 64                    # pack the 9 taps along K only below this
VMEM_LIMIT_BYTES = 48 * 1024 * 1024    # explicit scoped-VMEM limit (v7x-safe)
CONV_VMEM_BUDGET = 20 * 1024 * 1024    # target per-step working set for tiling
UP_FLAT_ROWS_CAP = 4096                # max flattened matmul rows per upsample tile


# ---------------------------------------------------------------------------
# Kernel 1: ConvTranspose2d(k=2, s=2) as ONE matmul (+bias) writing the
# 2x2-interleaved upsampled layout directly.
#   out[n, 2i+a, 2j+b, co] = sum_ci x[n,i,j,ci] * w[ci,co,a,b] + bias[co]
# The fused weight has columns ordered (a, b, co); the output array
# (N*H, 2, W, 2*Cout) has the same row-major flat order as (N, 2H, 2W, Cout),
# so the wrapper reshape moves no data.
# ---------------------------------------------------------------------------
def _upsample_kernel(x_ref, w_ref, b_ref, o_ref):
    TR, W, Cin = x_ref.shape
    C4 = w_ref.shape[1]
    C2 = C4 // 2
    x = x_ref[...].reshape(TR * W, Cin).astype(w_ref.dtype)
    y = jnp.dot(x, w_ref[...], preferred_element_type=jnp.float32) + b_ref[0]
    o_ref[:, 0, :, :] = y[:, :C2].reshape(TR, W, C2).astype(o_ref.dtype)   # rows 2i
    o_ref[:, 1, :, :] = y[:, C2:].reshape(TR, W, C2).astype(o_ref.dtype)   # rows 2i+1


def conv_transpose2x2_stride2(x_nhwc, weight, bias):
    """weight: (Cin, Cout, 2, 2) -- PyTorch ConvTranspose2d layout."""
    N, H, W, Cin = x_nhwc.shape
    Cout = weight.shape[1]
    # Single fused weight (Cin, 4*Cout); column order (a, b, co).
    w4 = jnp.transpose(weight, (0, 2, 3, 1)).reshape(Cin, 4 * Cout)
    w4 = w4.astype(MATMUL_OPERAND_DTYPE)
    b4 = jnp.tile(bias, 4).reshape(1, 4 * Cout).astype(jnp.float32)

    rows = N * H
    x_rows = x_nhwc.reshape(rows, W, Cin)
    # ~4096 flattened matmul rows per tile, bounded by a VMEM budget; ragged
    # last block handled by the cdiv grid (no divisor fallback to TR=1).
    per_flat_row = 8 * Cin + 40 * Cout            # dbl-buffered in/out + temps
    flat_rows = max(1, min(UP_FLAT_ROWS_CAP, (24 << 20) // max(1, per_flat_row)))
    TR = max(1, min(rows, flat_rows // max(1, W)))

    y = pl.pallas_call(
        _upsample_kernel,
        out_shape=jax.ShapeDtypeStruct((rows, 2, W, 2 * Cout), x_nhwc.dtype),
        grid=(pl.cdiv(rows, TR),),
        in_specs=[
            pl.BlockSpec((TR, W, Cin), lambda i: (i, 0, 0)),
            pl.BlockSpec((Cin, 4 * Cout), lambda i: (0, 0)),
            pl.BlockSpec((1, 4 * Cout), lambda i: (0, 0)),
        ],
        out_specs=pl.BlockSpec((TR, 2, W, 2 * Cout), lambda i: (i, 0, 0, 0)),
        compiler_params=pltpu.CompilerParams(
            dimension_semantics=("parallel",),
            vmem_limit_bytes=VMEM_LIMIT_BYTES),
    )(x_rows, w4, b4)
    # Layout-preserving reshape: identical row-major flat order, no HBM glue.
    return y.reshape(N, 2 * H, 2 * W, Cout)


# ---------------------------------------------------------------------------
# Kernel 2: fused [channel-concat] + pad(1) + Conv3x3 + BatchNorm(eval) + ReLU
# Row-tiled with 1-row halos; two matmul strategies per input tensor:
#   - Cin <  IM2COL_MAX_CIN : pack 9 taps along K, one (TH*W, 9*Cin) dot
#   - Cin >= IM2COL_MAX_CIN : 9 accumulating dots (no materialized im2col)
# ---------------------------------------------------------------------------
def _halo_top_map(TH):
    def imap(n, i):
        return (n, jnp.maximum(i * TH - 1, 0), 0, 0)
    return imap


def _halo_bot_map(TH, H):
    def imap(n, i):
        return (n, jnp.minimum(i * TH + TH, H - 1), 0, 0)
    return imap


def _const_map(rank):
    def imap(n, i):
        return (0,) * rank
    return imap


def _pick_row_block(H, W, cin, cout, max_rows=None):
    # f32 in/out (double-buffered) + bf16 band/tap temps + f32 accumulator.
    per_row = W * (12 * cin + 12 * cout)
    th = max(1, CONV_VMEM_BUDGET // max(1, per_row))
    th = min(th, 256, H)
    if max_rows is not None:
        th = max(1, min(th, max_rows))
    if th >= 8:
        th = (th // 8) * 8
    return max(1, min(th, H))


def _make_conv_kernel(num_inputs, H, W, TH, cins, cout, packed):
    cdt = MATMUL_OPERAND_DTYPE
    taps_9 = [(dy, dx) for dy in range(3) for dx in range(3)]
    ragged = (H % TH) != 0

    def kernel(*refs):
        x_refs = [refs[3 * t: 3 * t + 3] for t in range(num_inputs)]
        w_refs = refs[3 * num_inputs: 4 * num_inputs]
        scale_ref, shift_ref, o_ref = refs[4 * num_inputs:]

        row0 = pl.program_id(1) * TH          # first output row of this band
        acc = jnp.zeros((TH * W, cout), jnp.float32)

        for t in range(num_inputs):
            main_ref, top_ref, bot_ref = x_refs[t]
            cx = cins[t]
            # Halo rows: the BlockSpec clamps the DMA at the image border; zero
            # the content here when the true neighbour row is outside the image.
            top = jnp.where(row0 > 0, top_ref[0], jnp.zeros_like(top_ref[0]))
            bot = jnp.where(row0 + TH < H, bot_ref[0], jnp.zeros_like(bot_ref[0]))
            main = main_ref[0]
            if ragged:   # last band may hang past H: zero padded garbage rows
                r = lax.broadcasted_iota(jnp.int32, (TH, 1, 1), 0)
                main = jnp.where(row0 + r < H, main, jnp.zeros_like(main))

            # Padded band, built as a bf16 value (no persistent scratch slab).
            band = jnp.concatenate(
                [top.astype(cdt), main.astype(cdt), bot.astype(cdt)], axis=0)
            zcol = jnp.zeros((TH + 2, 1, cx), cdt)
            xp = jnp.concatenate([zcol, band, zcol], axis=1)   # (TH+2, W+2, cx)

            if packed[t]:
                # tiny-Cin regime: pack the 9 taps along K -> one MXU dot
                patches = jnp.concatenate(
                    [xp[dy:dy + TH, dx:dx + W, :].reshape(TH * W, cx)
                     for dy, dx in taps_9], axis=-1)
                acc = acc + jnp.dot(patches, w_refs[t][...],
                                    preferred_element_type=jnp.float32)
            else:
                # large-Cin regime: 9 accumulating dots, no materialized im2col
                for k, (dy, dx) in enumerate(taps_9):
                    tap = xp[dy:dy + TH, dx:dx + W, :].reshape(TH * W, cx)
                    acc = acc + jnp.dot(tap, w_refs[t][k],
                                        preferred_element_type=jnp.float32)

        y = jnp.maximum(acc * scale_ref[0] + shift_ref[0], 0.0)   # BN + ReLU (f32)
        o_ref[0] = y.reshape(TH, W, cout).astype(o_ref.dtype)

    return kernel


def conv3x3_bn_relu(inputs, w, scale, shift, max_rows_per_block=None):
    """inputs: list of NHWC arrays whose channels are virtually concatenated
    (conv(concat(a,b)) == conv_a(a) + conv_b(b), weight split along Cin).
    w: (3, 3, Cin_total, Cout); scale/shift: (Cout,) folded BN(eval)+conv bias."""
    N, H, W = inputs[0].shape[:3]
    cins = [int(x.shape[-1]) for x in inputs]
    Cout = int(w.shape[-1])

    TH = _pick_row_block(H, W, sum(cins), Cout, max_rows_per_block)
    nrb = pl.cdiv(H, TH)

    packed = [c < IM2COL_MAX_CIN for c in cins]
    w_list, off = [], 0
    for c, pk in zip(cins, packed):
        w_sub = w[:, :, off:off + c, :]                         # (3, 3, c, Cout)
        off += c
        if pk:
            w_list.append(w_sub.reshape(9 * c, Cout).astype(MATMUL_OPERAND_DTYPE))
        else:
            w_list.append(w_sub.reshape(9, c, Cout).astype(MATMUL_OPERAND_DTYPE))

    in_specs, call_args = [], []
    for x, c in zip(inputs, cins):
        in_specs.append(pl.BlockSpec((1, TH, W, c), lambda n, i: (n, i, 0, 0)))
        in_specs.append(pl.BlockSpec((1, 1, W, c), _halo_top_map(TH)))
        in_specs.append(pl.BlockSpec((1, 1, W, c), _halo_bot_map(TH, H)))
        call_args += [x, x, x]
    for w_arr in w_list:
        in_specs.append(pl.BlockSpec(w_arr.shape, _const_map(w_arr.ndim)))
        call_args.append(w_arr)
    in_specs.append(pl.BlockSpec((1, Cout), lambda n, i: (0, 0)))
    in_specs.append(pl.BlockSpec((1, Cout), lambda n, i: (0, 0)))
    call_args += [scale.reshape(1, Cout).astype(jnp.float32),
                  shift.reshape(1, Cout).astype(jnp.float32)]

    kernel = _make_conv_kernel(len(inputs), H, W, TH, cins, Cout, packed)
    return pl.pallas_call(
        kernel,
        out_shape=jax.ShapeDtypeStruct((N, H, W, Cout), inputs[0].dtype),
        grid=(N, nrb),
        in_specs=in_specs,
        out_specs=pl.BlockSpec((1, TH, W, Cout), lambda n, i: (n, i, 0, 0)),
        compiler_params=pltpu.CompilerParams(
            dimension_semantics=("parallel", "parallel"),
            vmem_limit_bytes=VMEM_LIMIT_BYTES),
    )(*call_args)


# ---------------------------------------------------------------------------
# Up.forward: wrapper (NCHW in / NCHW out, like the PyTorch module)
# ---------------------------------------------------------------------------
def up_forward(params, x1_nchw, x2_nchw, max_rows_per_block=None):
    # TODO(synk): keep the whole model NHWC end-to-end to drop these wrapper
    # transposes (each one is a full-tensor HBM round trip).
    x1 = jnp.transpose(x1_nchw, (0, 2, 3, 1))   # NCHW -> NHWC
    x2 = jnp.transpose(x2_nchw, (0, 2, 3, 1))
    x1_up = conv_transpose2x2_stride2(x1, params["up_w"], params["up_b"])
    # torch.cat([x2, x1_up], dim=1) is fused into the first conv kernel.
    y = conv3x3_bn_relu([x2, x1_up], params["w1"], params["s1"], params["t1"],
                        max_rows_per_block=max_rows_per_block)
    y = conv3x3_bn_relu([y], params["w2"], params["s2"], params["t2"],
                        max_rows_per_block=max_rows_per_block)
    return jnp.transpose(y, (0, 3, 1, 2))       # NHWC -> NCHW


# ---------------------------------------------------------------------------
# Deterministic parameter init (synthetic; shapes from the module __init__)
# ---------------------------------------------------------------------------
def init_params(key, in_ch, out_ch):
    half = in_ch // 2
    ks = jax.random.split(key, 14)

    def bn_fold(kg, kb, km, kv, conv_b, c):
        gamma = 1.0 + 0.1 * jax.random.normal(kg, (c,), jnp.float32)
        beta = 0.1 * jax.random.normal(kb, (c,), jnp.float32)
        mean = 0.1 * jax.random.normal(km, (c,), jnp.float32)
        var = 1.0 + 0.1 * jnp.abs(jax.random.normal(kv, (c,), jnp.float32))
        s = gamma / jnp.sqrt(var + 1e-5)
        t = (conv_b - mean) * s + beta
        return s, t

    # ConvTranspose2d(in_ch//2, in_ch//2, 2, 2): weight (Cin, Cout, 2, 2)
    up_w = 0.1 * jax.random.normal(ks[0], (half, half, 2, 2), jnp.float32)
    up_b = 0.1 * jax.random.normal(ks[1], (half,), jnp.float32)

    # DoubleConv(in_ch, out_ch): Conv3x3(in_ch->out_ch), Conv3x3(out_ch->out_ch)
    w1 = 0.1 * jax.random.normal(ks[2], (3, 3, in_ch, out_ch), jnp.float32)
    b1 = 0.1 * jax.random.normal(ks[3], (out_ch,), jnp.float32)
    s1, t1 = bn_fold(ks[4], ks[5], ks[6], ks[7], b1, out_ch)

    w2 = 0.1 * jax.random.normal(ks[8], (3, 3, out_ch, out_ch), jnp.float32)
    b2 = 0.1 * jax.random.normal(ks[9], (out_ch,), jnp.float32)
    s2, t2 = bn_fold(ks[10], ks[11], ks[12], ks[13], b2, out_ch)

    return dict(up_w=up_w, up_b=up_b, w1=w1, s1=s1, t1=t1, w2=w2, s2=s2, t2=t2)


# ---------------------------------------------------------------------------
# Pure-JAX reference. `operand_dtype` applies the same matmul-operand rounding
# the kernels use (bf16 operands, f32 accumulation); with jnp.float32 it is
# the exact f32 module math.
# ---------------------------------------------------------------------------
def up_forward_ref(params, x1_nchw, x2_nchw, operand_dtype=jnp.float32):
    q = lambda a: a.astype(operand_dtype).astype(jnp.float32)
    x1 = jnp.transpose(x1_nchw, (0, 2, 3, 1))
    x2 = jnp.transpose(x2_nchw, (0, 2, 3, 1))
    N, H, W, _ = x1.shape
    y = jnp.einsum("nhwc,cdab->nhawbd", q(x1), q(params["up_w"]))
    y = y.reshape(N, 2 * H, 2 * W, -1) + params["up_b"]
    x = jnp.concatenate([x2, y], axis=-1)

    def conv(x, w, s, t):
        n, h, wd, _ = x.shape
        xp = jnp.pad(q(x), ((0, 0), (1, 1), (1, 1), (0, 0)))
        wq = q(w)
        acc = 0.0
        for dy in range(3):
            for dx in range(3):
                acc = acc + jnp.einsum("nhwc,cd->nhwd",
                                       xp[:, dy:dy + h, dx:dx + wd, :], wq[dy, dx])
        return jnp.maximum(acc * s + t, 0.0)

    x = conv(x, params["w1"], params["s1"], params["t1"])
    x = conv(x, params["w2"], params["s2"], params["t2"])
    return jnp.transpose(x, (0, 3, 1, 2))


if __name__ == "__main__":
    root = jax.random.PRNGKey(0)

    def run_case(case_key, in_ch, out_ch, N, H, W, max_rows_per_block=None):
        k1, k2, k3 = jax.random.split(case_key, 3)
        x1 = jax.random.normal(k1, (N, in_ch // 2, H, W), jnp.float32)           # NCHW
        x2 = jax.random.normal(k2, (N, in_ch // 2, 2 * H, 2 * W), jnp.float32)   # NCHW
        params = init_params(k3, in_ch, out_ch)
        fwd = jax.jit(functools.partial(up_forward,
                                        max_rows_per_block=max_rows_per_block))
        out = jax.block_until_ready(fwd(params, x1, x2))
        # Reference with the same matmul-operand rounding the kernels apply.
        ref = up_forward_ref(params, x1, x2, operand_dtype=MATMUL_OPERAND_DTYPE)
        assert out.shape == (N, out_ch, 2 * H, 2 * W), out.shape
        err = float(jnp.max(jnp.abs(out - ref)))
        assert jnp.allclose(out, ref, atol=2e-2, rtol=2e-2), f"max abs err {err}"

    k_a, k_b = jax.random.split(root)
    # Small config: exercises the packed-im2col (tiny-Cin) path, single row band.
    run_case(k_a, in_ch=8, out_ch=8, N=2, H=8, W=8)
    # Larger-channel config: exercises the 9-dot path and multi-row-band halos.
    run_case(k_b, in_ch=128, out_ch=64, N=1, H=8, W=8, max_rows_per_block=8)
    print("KERNEL_OK")
</pallas_src>

<mosaic_0001>
module attributes {stable_mosaic.version = 11 : i64} {
  func.func @_upsample_kernel(%arg0: i32, %arg1: memref<16x8x4xf32, #tpu.memory_space<vmem>>, %arg2: memref<4x16xbf16, #tpu.memory_space<vmem>>, %arg3: memref<1x16xf32, #tpu.memory_space<vmem>>, %arg4: memref<16x2x8x8xf32, #tpu.memory_space<vmem>>) attributes {dimension_semantics = [#tpu.dimension_semantics<parallel>], iteration_bounds = array<i64: 1>, scalar_prefetch = 0 : i64, scratch_operands = 0 : i64, tpu.core_type = #tpu.core_type<tc>, window_params = [{transform_indices = @transform_0, window_bounds = array<i64: 16, 8, 4>}, {pipeline_mode = #tpu.pipeline_mode<synchronous>, transform_indices = @transform_1, window_bounds = array<i64: 4, 16>}, {pipeline_mode = #tpu.pipeline_mode<synchronous>, transform_indices = @transform_2, window_bounds = array<i64: 1, 16>}, {transform_indices = @transform_3, window_bounds = array<i64: 16, 2, 8, 8>}]} {
    %c0 = arith.constant 0 : index
    %c0_0 = arith.constant 0 : index
    %c0_1 = arith.constant 0 : index
    %0 = vector.load %arg1[%c0, %c0_0, %c0_1] : memref<16x8x4xf32, #tpu.memory_space<vmem>>, vector<16x8x4xf32>
    %1 = vector.shape_cast %0 : vector<16x8x4xf32> to vector<128x4xf32>
    %2 = arith.truncf %1 : vector<128x4xf32> to vector<128x4xbf16>
    %c0_2 = arith.constant 0 : index
    %c0_3 = arith.constant 0 : index
    %3 = vector.load %arg2[%c0_2, %c0_3] : memref<4x16xbf16, #tpu.memory_space<vmem>>, vector<4x16xbf16>
    %cst = arith.constant dense<0.000000e+00> : vector<128x16xf32>
    %4 = tpu.matmul %2, %3, %cst {dimension_numbers = #tpu.dot_dimension_numbers<[1], [0], [0], [1], [0, 0, 1, 1], [], []>} : vector<128x4xbf16>, vector<4x16xbf16>, vector<128x16xf32> -> vector<128x16xf32>
    %c0_4 = arith.constant 0 : index
    %c0_5 = arith.constant 0 : index
    %5 = vector.load %arg3[%c0_4, %c0_5] : memref<1x16xf32, #tpu.memory_space<vmem>>, vector<1x16xf32>
    %6 = vector.shape_cast %5 : vector<1x16xf32> to vector<16xf32>
    %7 = vector.shape_cast %6 : vector<16xf32> to vector<1x16xf32>
    %8 = vector.broadcast %7 : vector<1x16xf32> to vector<128x16xf32>
    %9 = arith.addf %4, %8 : vector<128x16xf32>
    %10 = vector.extract_strided_slice %9 {offsets = [0, 0], sizes = [128, 8], strides = [1, 1]} : vector<128x16xf32> to vector<128x8xf32>
    %11 = vector.shape_cast %10 : vector<128x8xf32> to vector<16x8x8xf32>
    %c0_6 = arith.constant 0 : index
    %c0_7 = arith.constant 0 : index
    %c0_8 = arith.constant 0 : index
    %c0_9 = arith.constant 0 : index
    %12 = vector.load %arg4[%c0_6, %c0_7, %c0_8, %c0_9] : memref<16x2x8x8xf32, #tpu.memory_space<vmem>>, vector<16x1x8x8xf32>
    %13 = vector.shape_cast %12 : vector<16x1x8x8xf32> to vector<16x8x8xf32>
    %14 = vector.shape_cast %11 : vector<16x8x8xf32> to vector<16x1x8x8xf32>
    tpu.vector_store %arg4[%c0_6, %c0_7, %c0_8, %c0_9], %14 {strides = array<i32>} : memref<16x2x8x8xf32, #tpu.memory_space<vmem>>, vector<16x1x8x8xf32>,
    %15 = vector.extract_strided_slice %9 {offsets = [0, 8], sizes = [128, 8], strides = [1, 1]} : vector<128x16xf32> to vector<128x8xf32>
    %16 = vector.shape_cast %15 : vector<128x8xf32> to vector<16x8x8xf32>
    %c0_10 = arith.constant 0 : index
    %c1 = arith.constant 1 : index
    %c0_11 = arith.constant 0 : index
    %c0_12 = arith.constant 0 : index
    %17 = vector.load %arg4[%c0_10, %c1, %c0_11, %c0_12] : memref<16x2x8x8xf32, #tpu.memory_space<vmem>>, vector<16x1x8x8xf32>
    %18 = vector.shape_cast %17 : vector<16x1x8x8xf32> to vector<16x8x8xf32>
    %19 = vector.shape_cast %16 : vector<16x8x8xf32> to vector<16x1x8x8xf32>
    tpu.vector_store %arg4[%c0_10, %c1, %c0_11, %c0_12], %19 {strides = array<i32>} : memref<16x2x8x8xf32, #tpu.memory_space<vmem>>, vector<16x1x8x8xf32>,
    return
  }
  func.func @transform_0(%arg0: i32) -> (i32, i32, i32) {
    %c0_i32 = arith.constant 0 : i32
    %c0_i32_0 = arith.constant 0 : i32
    %c0_i32_1 = arith.constant 0 : i32
    return %arg0, %c0_i32, %c0_i32_0 : i32, i32, i32
  }
  func.func @transform_1(%arg0: i32) -> (i32, i32) {
    %c0_i32 = arith.constant 0 : i32
    %c0_i32_0 = arith.constant 0 : i32
    %c0_i32_1 = arith.constant 0 : i32
    return %c0_i32, %c0_i32_0 : i32, i32
  }
  func.func @transform_2(%arg0: i32) -> (i32, i32) {
    %c0_i32 = arith.constant 0 : i32
    %c0_i32_0 = arith.constant 0 : i32
    %c0_i32_1 = arith.constant 0 : i32
    return %c0_i32, %c0_i32_0 : i32, i32
  }
  func.func @transform_3(%arg0: i32) -> (i32, i32, i32, i32) {
    %c0_i32 = arith.constant 0 : i32
    %c0_i32_0 = arith.constant 0 : i32
    %c0_i32_1 = arith.constant 0 : i32
    %c0_i32_2 = arith.constant 0 : i32
    return %arg0, %c0_i32, %c0_i32_0, %c0_i32_1 : i32, i32, i32, i32
  }
}

module attributes {stable_mosaic.version = 11 : i64} {
  func.func @kernel(%arg0: i32, %arg1: i32, %arg2: memref<1x16x16x4xf32, #tpu.memory_space<vmem>>, %arg3: memref<1x1x16x4xf32, #tpu.memory_space<vmem>>, %arg4: memref<1x1x16x4xf32, #tpu.memory_space<vmem>>, %arg5: memref<1x16x16x4xf32, #tpu.memory_space<vmem>>, %arg6: memref<1x1x16x4xf32, #tpu.memory_space<vmem>>, %arg7: memref<1x1x16x4xf32, #tpu.memory_space<vmem>>, %arg8: memref<36x8xbf16, #tpu.memory_space<vmem>>, %arg9: memref<36x8xbf16, #tpu.memory_space<vmem>>, %arg10: memref<1x8xf32, #tpu.memory_space<vmem>>, %arg11: memref<1x8xf32, #tpu.memory_space<vmem>>, %arg12: memref<1x16x16x8xf32, #tpu.memory_space<vmem>>) attributes {dimension_semantics = [#tpu.dimension_semantics<parallel>, #tpu.dimension_semantics<parallel>], iteration_bounds = array<i64: 2, 1>, scalar_prefetch = 0 : i64, scratch_operands = 0 : i64, tpu.core_type = #tpu.core_type<tc>, window_params = [{transform_indices = @transform_0, window_bounds = array<i64: 1, 16, 16, 4>}, {transform_indices = @transform_1, window_bounds = array<i64: 1, 1, 16, 4>}, {transform_indices = @transform_2, window_bounds = array<i64: 1, 1, 16, 4>}, {transform_indices = @transform_3, window_bounds = array<i64: 1, 16, 16, 4>}, {transform_indices = @transform_4, window_bounds = array<i64: 1, 1, 16, 4>}, {transform_indices = @transform_5, window_bounds = array<i64: 1, 1, 16, 4>}, {pipeline_mode = #tpu.pipeline_mode<synchronous>, transform_indices = @transform_6, window_bounds = array<i64: 36, 8>}, {pipeline_mode = #tpu.pipeline_mode<synchronous>, transform_indices = @transform_7, window_bounds = array<i64: 36, 8>}, {pipeline_mode = #tpu.pipeline_mode<synchronous>, transform_indices = @transform_8, window_bounds = array<i64: 1, 8>}, {pipeline_mode = #tpu.pipeline_mode<synchronous>, transform_indices = @transform_9, window_bounds = array<i64: 1, 8>}, {transform_indices = @transform_10, window_bounds = array<i64: 1, 16, 16, 8>}]} {
    %c16_i32 = arith.constant 16 : i32
    %0 = arith.muli %arg1, %c16_i32 : i32
    %cst = arith.constant 0.000000e+00 : f32
    %1 = vector.broadcast %cst : f32 to vector<256x8xf32>
    %c0_i32 = arith.constant 0 : i32
    %2 = arith.cmpi sgt, %0, %c0_i32 : i32
    %c0 = arith.constant 0 : index
    %c0_0 = arith.constant 0 : index
    %c0_1 = arith.constant 0 : index
    %c0_2 = arith.constant 0 : index
    %3 = vector.load %arg3[%c0, %c0_0, %c0_1, %c0_2] : memref<1x1x16x4xf32, #tpu.memory_space<vmem>>, vector<1x1x16x4xf32>
    %4 = vector.shape_cast %3 : vector<1x1x16x4xf32> to vector<1x16x4xf32>
    %cst_3 = arith.constant 0.000000e+00 : f32
    %5 = vector.broadcast %cst_3 : f32 to vector<1x16x4xf32>
    %6 = arith.select %2, %4, %5 : vector<1x16x4xf32>
    %c16_i32_4 = arith.constant 16 : i32
    %7 = arith.addi %0, %c16_i32_4 : i32
    %c16_i32_5 = arith.constant 16 : i32
    %8 = arith.cmpi slt, %7, %c16_i32_5 : i32
    %c0_6 = arith.constant 0 : index
    %c0_7 = arith.constant 0 : index
    %c0_8 = arith.constant 0 : index
    %c0_9 = arith.constant 0 : index
    %9 = vector.load %arg4[%c0_6, %c0_7, %c0_8, %c0_9] : memref<1x1x16x4xf32, #tpu.memory_space<vmem>>, vector<1x1x16x4xf32>
    %10 = vector.shape_cast %9 : vector<1x1x16x4xf32> to vector<1x16x4xf32>
    %cst_10 = arith.constant 0.000000e+00 : f32
    %11 = vector.broadcast %cst_10 : f32 to vector<1x16x4xf32>
    %12 = arith.select %8, %10, %11 : vector<1x16x4xf32>
    %c0_11 = arith.constant 0 : index
    %c0_12 = arith.constant 0 : index
    %c0_13 = arith.constant 0 : index
    %c0_14 = arith.constant 0 : index
    %13 = vector.load %arg2[%c0_11, %c0_12, %c0_13, %c0_14] : memref<1x16x16x4xf32, #tpu.memory_space<vmem>>, vector<1x16x16x4xf32>
    %14 = vector.shape_cast %13 : vector<1x16x16x4xf32> to vector<16x16x4xf32>
    %15 = arith.truncf %6 : vector<1x16x4xf32> to vector<1x16x4xbf16>
    %16 = arith.truncf %14 : vector<16x16x4xf32> to vector<16x16x4xbf16>
    %17 = arith.truncf %12 : vector<1x16x4xf32> to vector<1x16x4xbf16>
    %18 = tpu.concatenate %15, %16, %17 in 0 : vector<1x16x4xbf16>, vector<16x16x4xbf16>, vector<1x16x4xbf16> -> vector<18x16x4xbf16>
    %cst_15 = arith.constant 0.000000e+00 : bf16
    %19 = vector.broadcast %cst_15 : bf16 to vector<18x1x4xbf16>
    %20 = tpu.concatenate %19, %18, %19 in 1 : vector<18x1x4xbf16>, vector<18x16x4xbf16>, vector<18x1x4xbf16> -> vector<18x18x4xbf16>
    %21 = vector.extract_strided_slice %20 {offsets = [0, 0, 0], sizes = [16, 16, 4], strides = [1, 1, 1]} : vector<18x18x4xbf16> to vector<16x16x4xbf16>
    %22 = vector.shape_cast %21 : vector<16x16x4xbf16> to vector<256x4xbf16>
    %23 = vector.extract_strided_slice %20 {offsets = [0, 1, 0], sizes = [16, 16, 4], strides = [1, 1, 1]} : vector<18x18x4xbf16> to vector<16x16x4xbf16>
    %24 = vector.shape_cast %23 : vector<16x16x4xbf16> to vector<256x4xbf16>
    %25 = vector.extract_strided_slice %20 {offsets = [0, 2, 0], sizes = [16, 16, 4], strides = [1, 1, 1]} : vector<18x18x4xbf16> to vector<16x16x4xbf16>
    %26 = vector.shape_cast %25 : vector<16x16x4xbf16> to vector<256x4xbf16>
    %27 = vector.extract_strided_slice %20 {offsets = [1, 0, 0], sizes = [16, 16, 4], strides = [1, 1, 1]} : vector<18x18x4xbf16> to vector<16x16x4xbf16>
    %28 = vector.shape_cast %27 : vector<16x16x4xbf16> to vector<256x4xbf16>
    %29 = vector.extract_strided_slice %20 {offsets = [1, 1, 0], sizes = [16, 16, 4], strides = [1, 1, 1]} : vector<18x18x4xbf16> to vector<16x16x4xbf16>
    %30 = vector.shape_cast %29 : vector<16x16x4xbf16> to vector<256x4xbf16>
    %31 = vector.extract_strided_slice %20 {offsets = [1, 2, 0], sizes = [16, 16, 4], strides = [1, 1, 1]} : vector<18x18x4xbf16> to vector<16x16x4xbf16>
    %32 = vector.shape_cast %31 : vector<16x16x4xbf16> to vector<256x4xbf16>
    %33 = vector.extract_strided_slice %20 {offsets = [2, 0, 0], sizes = [16, 16, 4], strides = [1, 1, 1]} : vector<18x18x4xbf16> to vector<16x16x4xbf16>
    %34 = vector.shape_cast %33 : vector<16x16x4xbf16> to vector<256x4xbf16>
    %35 = vector.extract_strided_slice %20 {offsets = [2, 1, 0], sizes = [16, 16, 4], strides = [1, 1, 1]} : vector<18x18x4xbf16> to vector<16x16x4xbf16>
    %36 = vector.shape_cast %35 : vector<16x16x4xbf16> to vector<256x4xbf16>
    %37 = vector.extract_strided_slice %20 {offsets = [2, 2, 0], sizes = [16, 16, 4], strides = [1, 1, 1]} : vector<18x18x4xbf16> to vector<16x16x4xbf16>
    %38 = vector.shape_cast %37 : vector<16x16x4xbf16> to vector<256x4xbf16>
    %39 = tpu.concatenate %22, %24, %26, %28, %30, %32, %34, %36, %38 in 1 : vector<256x4xbf16>, vector<256x4xbf16>, vector<256x4xbf16>, vector<256x4xbf16>, vector<256x4xbf16>, vector<256x4xbf16>, vector<256x4xbf16>, vector<256x4xbf16>, vector<256x4xbf16> -> vector<256x36xbf16>
    %c0_16 = arith.constant 0 : index
    %c0_17 = arith.constant 0 : index
    %40 = vector.load %arg8[%c0_16, %c0_17] : memref<36x8xbf16, #tpu.memory_space<vmem>>, vector<36x8xbf16>
    %cst_18 = arith.constant dense<0.000000e+00> : vector<256x8xf32>
    %41 = tpu.matmul %39, %40, %cst_18 {dimension_numbers = #tpu.dot_dimension_numbers<[1], [0], [0], [1], [0, 0, 1, 1], [], []>} : vector<256x36xbf16>, vector<36x8xbf16>, vector<256x8xf32> -> vector<256x8xf32>
    %42 = arith.addf %1, %41 : vector<256x8xf32>
    %c0_i32_19 = arith.constant 0 : i32
    %43 = arith.cmpi sgt, %0, %c0_i32_19 : i32
    %c0_20 = arith.constant 0 : index
    %c0_21 = arith.constant 0 : index
    %c0_22 = arith.constant 0 : index
    %c0_23 = arith.constant 0 : index
    %44 = vector.load %arg6[%c0_20, %c0_21, %c0_22, %c0_23] : memref<1x1x16x4xf32, #tpu.memory_space<vmem>>, vector<1x1x16x4xf32>
    %45 = vector.shape_cast %44 : vector<1x1x16x4xf32> to vector<1x16x4xf32>
    %cst_24 = arith.constant 0.000000e+00 : f32
    %46 = vector.broadcast %cst_24 : f32 to vector<1x16x4xf32>
    %47 = arith.select %43, %45, %46 : vector<1x16x4xf32>
    %c16_i32_25 = arith.constant 16 : i32
    %48 = arith.addi %0, %c16_i32_25 : i32
    %c16_i32_26 = arith.constant 16 : i32
    %49 = arith.cmpi slt, %48, %c16_i32_26 : i32
    %c0_27 = arith.constant 0 : index
    %c0_28 = arith.constant 0 : index
    %c0_29 = arith.constant 0 : index
    %c0_30 = arith.constant 0 : index
    %50 = vector.load %arg7[%c0_27, %c0_28, %c0_29, %c0_30] : memref<1x1x16x4xf32, #tpu.memory_space<vmem>>, vector<1x1x16x4xf32>
    %51 = vector.shape_cast %50 : vector<1x1x16x4xf32> to vector<1x16x4xf32>
    %cst_31 = arith.constant 0.000000e+00 : f32
    %52 = vector.broadcast %cst_31 : f32 to vector<1x16x4xf32>
    %53 = arith.select %49, %51, %52 : vector<1x16x4xf32>
    %c0_32 = arith.constant 0 : index
    %c0_33 = arith.constant 0 : index
    %c0_34 = arith.constant 0 : index
    %c0_35 = arith.constant 0 : index
    %54 = vector.load %arg5[%c0_32, %c0_33, %c0_34, %c0_35] : memref<1x16x16x4xf32, #tpu.memory_space<vmem>>, vector<1x16x16x4xf32>
    %55 = vector.shape_cast %54 : vector<1x16x16x4xf32> to vector<16x16x4xf32>
    %56 = arith.truncf %47 : vector<1x16x4xf32> to vector<1x16x4xbf16>
    %57 = arith.truncf %55 : vector<16x16x4xf32> to vector<16x16x4xbf16>
    %58 = arith.truncf %53 : vector<1x16x4xf32> to vector<1x16x4xbf16>
    %59 = tpu.concatenate %56, %57, %58 in 0 : vector<1x16x4xbf16>, vector<16x16x4xbf16>, vector<1x16x4xbf16> -> vector<18x16x4xbf16>
    %cst_36 = arith.constant 0.000000e+00 : bf16
    %60 = vector.broadcast %cst_36 : bf16 to vector<18x1x4xbf16>
    %61 = tpu.concatenate %60, %59, %60 in 1 : vector<18x1x4xbf16>, vector<18x16x4xbf16>, vector<18x1x4xbf16> -> vector<18x18x4xbf16>
    %62 = vector.extract_strided_slice %61 {offsets = [0, 0, 0], sizes = [16, 16, 4], strides = [1, 1, 1]} : vector<18x18x4xbf16> to vector<16x16x4xbf16>
    %63 = vector.shape_cast %62 : vector<16x16x4xbf16> to vector<256x4xbf16>
    %64 = vector.extract_strided_slice %61 {offsets = [0, 1, 0], sizes = [16, 16, 4], strides = [1, 1, 1]} : vector<18x18x4xbf16> to vector<16x16x4xbf16>
    %65 = vector.shape_cast %64 : vector<16x16x4xbf16> to vector<256x4xbf16>
    %66 = vector.extract_strided_slice %61 {offsets = [0, 2, 0], sizes = [16, 16, 4], strides = [1, 1, 1]} : vector<18x18x4xbf16> to vector<16x16x4xbf16>
    %67 = vector.shape_cast %66 : vector<16x16x4xbf16> to vector<256x4xbf16>
    %68 = vector.extract_strided_slice %61 {offsets = [1, 0, 0], sizes = [16, 16, 4], strides = [1, 1, 1]} : vector<18x18x4xbf16> to vector<16x16x4xbf16>
    %69 = vector.shape_cast %68 : vector<16x16x4xbf16> to vector<256x4xbf16>
    %70 = vector.extract_strided_slice %61 {offsets = [1, 1, 0], sizes = [16, 16, 4], strides = [1, 1, 1]} : vector<18x18x4xbf16> to vector<16x16x4xbf16>
    %71 = vector.shape_cast %70 : vector<16x16x4xbf16> to vector<256x4xbf16>
    %72 = vector.extract_strided_slice %61 {offsets = [1, 2, 0], sizes = [16, 16, 4], strides = [1, 1, 1]} : vector<18x18x4xbf16> to vector<16x16x4xbf16>
    %73 = vector.shape_cast %72 : vector<16x16x4xbf16> to vector<256x4xbf16>
    %74 = vector.extract_strided_slice %61 {offsets = [2, 0, 0], sizes = [16, 16, 4], strides = [1, 1, 1]} : vector<18x18x4xbf16> to vector<16x16x4xbf16>
    %75 = vector.shape_cast %74 : vector<16x16x4xbf16> to vector<256x4xbf16>
    %76 = vector.extract_strided_slice %61 {offsets = [2, 1, 0], sizes = [16, 16, 4], strides = [1, 1, 1]} : vector<18x18x4xbf16> to vector<16x16x4xbf16>
    %77 = vector.shape_cast %76 : vector<16x16x4xbf16> to vector<256x4xbf16>
    %78 = vector.extract_strided_slice %61 {offsets = [2, 2, 0], sizes = [16, 16, 4], strides = [1, 1, 1]} : vector<18x18x4xbf16> to vector<16x16x4xbf16>
    %79 = vector.shape_cast %78 : vector<16x16x4xbf16> to vector<256x4xbf16>
    %80 = tpu.concatenate %63, %65, %67, %69, %71, %73, %75, %77, %79 in 1 : vector<256x4xbf16>, vector<256x4xbf16>, vector<256x4xbf16>, vector<256x4xbf16>, vector<256x4xbf16>, vector<256x4xbf16>, vector<256x4xbf16>, vector<256x4xbf16>, vector<256x4xbf16> -> vector<256x36xbf16>
    %c0_37 = arith.constant 0 : index
    %c0_38 = arith.constant 0 : index
    %81 = vector.load %arg9[%c0_37, %c0_38] : memref<36x8xbf16, #tpu.memory_space<vmem>>, vector<36x8xbf16>
    %cst_39 = arith.constant dense<0.000000e+00> : vector<256x8xf32>
    %82 = tpu.matmul %80, %81, %cst_39 {dimension_numbers = #tpu.dot_dimension_numbers<[1], [0], [0], [1], [0, 0, 1, 1], [], []>} : vector<256x36xbf16>, vector<36x8xbf16>, vector<256x8xf32> -> vector<256x8xf32>
    %83 = arith.addf %42, %82 : vector<256x8xf32>
    %c0_40 = arith.constant 0 : index
    %c0_41 = arith.constant 0 : index
    %84 = vector.load %arg10[%c0_40, %c0_41] : memref<1x8xf32, #tpu.memory_space<vmem>>, vector<1x8xf32>
    %85 = vector.shape_cast %84 : vector<1x8xf32> to vector<8xf32>
    %86 = vector.shape_cast %85 : vector<8xf32> to vector<1x8xf32>
    %87 = vector.broadcast %86 : vector<1x8xf32> to vector<256x8xf32>
    %88 = arith.mulf %83, %87 : vector<256x8xf32>
    %c0_42 = arith.constant 0 : index
    %c0_43 = arith.constant 0 : index
    %89 = vector.load %arg11[%c0_42, %c0_43] : memref<1x8xf32, #tpu.memory_space<vmem>>, vector<1x8xf32>
    %90 = vector.shape_cast %89 : vector<1x8xf32> to vector<8xf32>
    %91 = vector.shape_cast %90 : vector<8xf32> to vector<1x8xf32>
    %92 = vector.broadcast %91 : vector<1x8xf32> to vector<256x8xf32>
    %93 = arith.addf %88, %92 : vector<256x8xf32>
    %cst_44 = arith.constant 0.000000e+00 : f32
    %94 = vector.broadcast %cst_44 : f32 to vector<256x8xf32>
    %95 = arith.maximumf %93, %94 : vector<256x8xf32>
    %96 = vector.shape_cast %95 : vector<256x8xf32> to vector<16x16x8xf32>
    %c0_45 = arith.constant 0 : index
    %c0_46 = arith.constant 0 : index
    %c0_47 = arith.constant 0 : index
    %c0_48 = arith.constant 0 : index
    %97 = vector.load %arg12[%c0_45, %c0_46, %c0_47, %c0_48] : memref<1x16x16x8xf32, #tpu.memory_space<vmem>>, vector<1x16x16x8xf32>
    %98 = vector.shape_cast %97 : vector<1x16x16x8xf32> to vector<16x16x8xf32>
    %99 = vector.shape_cast %96 : vector<16x16x8xf32> to vector<1x16x16x8xf32>
    tpu.vector_store %arg12[%c0_45, %c0_46, %c0_47, %c0_48], %99 {strides = array<i32>} : memref<1x16x16x8xf32, #tpu.memory_space<vmem>>, vector<1x16x16x8xf32>,
    return
  }
  func.func @transform_0(%arg0: i32, %arg1: i32) -> (i32, i32, i32, i32) {
    %c0_i32 = arith.constant 0 : i32
    %c0_i32_0 = arith.constant 0 : i32
    %c0_i32_1 = arith.constant 0 : i32
    return %arg0, %arg1, %c0_i32, %c0_i32_0 : i32, i32, i32, i32
  }
  func.func @transform_1(%arg0: i32, %arg1: i32) -> (i32, i32, i32, i32) {
    %c16_i32 = arith.constant 16 : i32
    %0 = arith.muli %arg1, %c16_i32 : i32
    %c1_i32 = arith.constant 1 : i32
    %1 = arith.subi %0, %c1_i32 : i32
    %c0_i32 = arith.constant 0 : i32
    %2 = arith.maxsi %1, %c0_i32 : i32
    %c0_i32_0 = arith.constant 0 : i32
    %c0_i32_1 = arith.constant 0 : i32
    %c0_i32_2 = arith.constant 0 : i32
    return %arg0, %2, %c0_i32_0, %c0_i32_1 : i32, i32, i32, i32
  }
  func.func @transform_2(%arg0: i32, %arg1: i32) -> (i32, i32, i32, i32) {
    %c16_i32 = arith.constant 16 : i32
    %0 = arith.muli %arg1, %c16_i32 : i32
    %c16_i32_0 = arith.constant 16 : i32
    %1 = arith.addi %0, %c16_i32_0 : i32
    %c15_i32 = arith.constant 15 : i32
    %2 = arith.minsi %1, %c15_i32 : i32
    %c0_i32 = arith.constant 0 : i32
    %c0_i32_1 = arith.constant 0 : i32
    %c0_i32_2 = arith.constant 0 : i32
    return %arg0, %2, %c0_i32, %c0_i32_1 : i32, i32, i32, i32
  }
  func.func @transform_3(%arg0: i32, %arg1: i32) -> (i32, i32, i32, i32) {
    %c0_i32 = arith.constant 0 : i32
    %c0_i32_0 = arith.constant 0 : i32
    %c0_i32_1 = arith.constant 0 : i32
    return %arg0, %arg1, %c0_i32, %c0_i32_0 : i32, i32, i32, i32
  }
  func.func @transform_4(%arg0: i32, %arg1: i32) -> (i32, i32, i32, i32) {
    %c16_i32 = arith.constant 16 : i32
    %0 = arith.muli %arg1, %c16_i32 : i32
    %c1_i32 = arith.constant 1 : i32
    %1 = arith.subi %0, %c1_i32 : i32
    %c0_i32 = arith.constant 0 : i32
    %2 = arith.maxsi %1, %c0_i32 : i32
    %c0_i32_0 = arith.constant 0 : i32
    %c0_i32_1 = arith.constant 0 : i32
    %c0_i32_2 = arith.constant 0 : i32
    return %arg0, %2, %c0_i32_0, %c0_i32_1 : i32, i32, i32, i32
  }
  func.func @transform_5(%arg0: i32, %arg1: i32) -> (i32, i32, i32, i32) {
    %c16_i32 = arith.constant 16 : i32
    %0 = arith.muli %arg1, %c16_i32 : i32
    %c16_i32_0 = arith.constant 16 : i32
    %1 = arith.addi %0, %c16_i32_0 : i32
    %c15_i32 = arith.constant 15 : i32
    %2 = arith.minsi %1, %c15_i32 : i32
    %c0_i32 = arith.constant 0 : i32
    %c0_i32_1 = arith.constant 0 : i32
    %c0_i32_2 = arith.constant 0 : i32
    return %arg0, %2, %c0_i32, %c0_i32_1 : i32, i32, i32, i32
  }
  func.func @transform_6(%arg0: i32, %arg1: i32) -> (i32, i32) {
    %c0_i32 = arith.constant 0 : i32
    %c0_i32_0 = arith.constant 0 : i32
    %c0_i32_1 = arith.constant 0 : i32
    return %c0_i32, %c0_i32_0 : i32, i32
  }
  func.func @transform_7(%arg0: i32, %arg1: i32) -> (i32, i32) {
    %c0_i32 = arith.constant 0 : i32
    %c0_i32_0 = arith.constant 0 : i32
    %c0_i32_1 = arith.constant 0 : i32
    return %c0_i32, %c0_i32_0 : i32, i32
  }
  func.func @transform_8(%arg0: i32, %arg1: i32) -> (i32, i32) {
    %c0_i32 = arith.constant 0 : i32
    %c0_i32_0 = arith.constant 0 : i32
    %c0_i32_1 = arith.constant 0 : i32
    return %c0_i32, %c0_i32_0 : i32, i32
  }
  func.func @transform_9(%arg0: i32, %arg1: i32) -> (i32, i32) {
    %c0_i32 = arith.constant 0 : i32
    %c0_i32_0 = arith.constant 0 : i32
    %c0_i32_1 = arith.constant 0 : i32
    return %c0_i32, %c0_i32_0 : i32, i32
  }
  func.func @transform_10(%arg0: i32, %arg1: i32) -> (i32, i32, i32, i32) {
    %c0_i32 = arith.constant 0 : i32
    %c0_i32_0 = arith.constant 0 : i32
    %c0_i32_1 = arith.constant 0 : i32
    return %arg0, %arg1, %c0_i32, %c0_i32_0 : i32, i32, i32, i32
  }
}

module attributes {stable_mosaic.version = 11 : i64} {
  func.func @kernel(%arg0: i32, %arg1: i32, %arg2: memref<1x16x16x8xf32, #tpu.memory_space<vmem>>, %arg3: memref<1x1x16x8xf32, #tpu.memory_space<vmem>>, %arg4: memref<1x1x16x8xf32, #tpu.memory_space<vmem>>, %arg5: memref<72x8xbf16, #tpu.memory_space<vmem>>, %arg6: memref<1x8xf32, #tpu.memory_space<vmem>>, %arg7: memref<1x8xf32, #tpu.memory_space<vmem>>, %arg8: memref<1x16x16x8xf32, #tpu.memory_space<vmem>>) attributes {dimension_semantics = [#tpu.dimension_semantics<parallel>, #tpu.dimension_semantics<parallel>], iteration_bounds = array<i64: 2, 1>, scalar_prefetch = 0 : i64, scratch_operands = 0 : i64, tpu.core_type = #tpu.core_type<tc>, window_params = [{transform_indices = @transform_0, window_bounds = array<i64: 1, 16, 16, 8>}, {transform_indices = @transform_1, window_bounds = array<i64: 1, 1, 16, 8>}, {transform_indices = @transform_2, window_bounds = array<i64: 1, 1, 16, 8>}, {pipeline_mode = #tpu.pipeline_mode<synchronous>, transform_indices = @transform_3, window_bounds = array<i64: 72, 8>}, {pipeline_mode = #tpu.pipeline_mode<synchronous>, transform_indices = @transform_4, window_bounds = array<i64: 1, 8>}, {pipeline_mode = #tpu.pipeline_mode<synchronous>, transform_indices = @transform_5, window_bounds = array<i64: 1, 8>}, {transform_indices = @transform_6, window_bounds = array<i64: 1, 16, 16, 8>}]} {
    %c16_i32 = arith.constant 16 : i32
    %0 = arith.muli %arg1, %c16_i32 : i32
    %cst = arith.constant 0.000000e+00 : f32
    %1 = vector.broadcast %cst : f32 to vector<256x8xf32>
    %c0_i32 = arith.constant 0 : i32
    %2 = arith.cmpi sgt, %0, %c0_i32 : i32
    %c0 = arith.constant 0 : index
    %c0_0 = arith.constant 0 : index
    %c0_1 = arith.constant 0 : index
    %c0_2 = arith.constant 0 : index
    %3 = vector.load %arg3[%c0, %c0_0, %c0_1, %c0_2] : memref<1x1x16x8xf32, #tpu.memory_space<vmem>>, vector<1x1x16x8xf32>
    %4 = vector.shape_cast %3 : vector<1x1x16x8xf32> to vector<1x16x8xf32>
    %cst_3 = arith.constant 0.000000e+00 : f32
    %5 = vector.broadcast %cst_3 : f32 to vector<1x16x8xf32>
    %6 = arith.select %2, %4, %5 : vector<1x16x8xf32>
    %c16_i32_4 = arith.constant 16 : i32
    %7 = arith.addi %0, %c16_i32_4 : i32
    %c16_i32_5 = arith.constant 16 : i32
    %8 = arith.cmpi slt, %7, %c16_i32_5 : i32
    %c0_6 = arith.constant 0 : index
    %c0_7 = arith.constant 0 : index
    %c0_8 = arith.constant 0 : index
    %c0_9 = arith.constant 0 : index
    %9 = vector.load %arg4[%c0_6, %c0_7, %c0_8, %c0_9] : memref<1x1x16x8xf32, #tpu.memory_space<vmem>>, vector<1x1x16x8xf32>
    %10 = vector.shape_cast %9 : vector<1x1x16x8xf32> to vector<1x16x8xf32>
    %cst_10 = arith.constant 0.000000e+00 : f32
    %11 = vector.broadcast %cst_10 : f32 to vector<1x16x8xf32>
    %12 = arith.select %8, %10, %11 : vector<1x16x8xf32>
    %c0_11 = arith.constant 0 : index
    %c0_12 = arith.constant 0 : index
    %c0_13 = arith.constant 0 : index
    %c0_14 = arith.constant 0 : index
    %13 = vector.load %arg2[%c0_11, %c0_12, %c0_13, %c0_14] : memref<1x16x16x8xf32, #tpu.memory_space<vmem>>, vector<1x16x16x8xf32>
    %14 = vector.shape_cast %13 : vector<1x16x16x8xf32> to vector<16x16x8xf32>
    %15 = arith.truncf %6 : vector<1x16x8xf32> to vector<1x16x8xbf16>
    %16 = arith.truncf %14 : vector<16x16x8xf32> to vector<16x16x8xbf16>
    %17 = arith.truncf %12 : vector<1x16x8xf32> to vector<1x16x8xbf16>
    %18 = tpu.concatenate %15, %16, %17 in 0 : vector<1x16x8xbf16>, vector<16x16x8xbf16>, vector<1x16x8xbf16> -> vector<18x16x8xbf16>
    %cst_15 = arith.constant 0.000000e+00 : bf16
    %19 = vector.broadcast %cst_15 : bf16 to vector<18x1x8xbf16>
    %20 = tpu.concatenate %19, %18, %19 in 1 : vector<18x1x8xbf16>, vector<18x16x8xbf16>, vector<18x1x8xbf16> -> vector<18x18x8xbf16>
    %21 = vector.extract_strided_slice %20 {offsets = [0, 0, 0], sizes = [16, 16, 8], strides = [1, 1, 1]} : vector<18x18x8xbf16> to vector<16x16x8xbf16>
    %22 = vector.shape_cast %21 : vector<16x16x8xbf16> to vector<256x8xbf16>
    %23 = vector.extract_strided_slice %20 {offsets = [0, 1, 0], sizes = [16, 16, 8], strides = [1, 1, 1]} : vector<18x18x8xbf16> to vector<16x16x8xbf16>
    %24 = vector.shape_cast %23 : vector<16x16x8xbf16> to vector<256x8xbf16>
    %25 = vector.extract_strided_slice %20 {offsets = [0, 2, 0], sizes = [16, 16, 8], strides = [1, 1, 1]} : vector<18x18x8xbf16> to vector<16x16x8xbf16>
    %26 = vector.shape_cast %25 : vector<16x16x8xbf16> to vector<256x8xbf16>
    %27 = vector.extract_strided_slice %20 {offsets = [1, 0, 0], sizes = [16, 16, 8], strides = [1, 1, 1]} : vector<18x18x8xbf16> to vector<16x16x8xbf16>
    %28 = vector.shape_cast %27 : vector<16x16x8xbf16> to vector<256x8xbf16>
    %29 = vector.extract_strided_slice %20 {offsets = [1, 1, 0], sizes = [16, 16, 8], strides = [1, 1, 1]} : vector<18x18x8xbf16> to vector<16x16x8xbf16>
    %30 = vector.shape_cast %29 : vector<16x16x8xbf16> to vector<256x8xbf16>
    %31 = vector.extract_strided_slice %20 {offsets = [1, 2, 0], sizes = [16, 16, 8], strides = [1, 1, 1]} : vector<18x18x8xbf16> to vector<16x16x8xbf16>
    %32 = vector.shape_cast %31 : vector<16x16x8xbf16> to vector<256x8xbf16>
    %33 = vector.extract_strided_slice %20 {offsets = [2, 0, 0], sizes = [16, 16, 8], strides = [1, 1, 1]} : vector<18x18x8xbf16> to vector<16x16x8xbf16>
    %34 = vector.shape_cast %33 : vector<16x16x8xbf16> to vector<256x8xbf16>
    %35 = vector.extract_strided_slice %20 {offsets = [2, 1, 0], sizes = [16, 16, 8], strides = [1, 1, 1]} : vector<18x18x8xbf16> to vector<16x16x8xbf16>
    %36 = vector.shape_cast %35 : vector<16x16x8xbf16> to vector<256x8xbf16>
    %37 = vector.extract_strided_slice %20 {offsets = [2, 2, 0], sizes = [16, 16, 8], strides = [1, 1, 1]} : vector<18x18x8xbf16> to vector<16x16x8xbf16>
    %38 = vector.shape_cast %37 : vector<16x16x8xbf16> to vector<256x8xbf16>
    %39 = tpu.concatenate %22, %24, %26, %28, %30, %32, %34, %36, %38 in 1 : vector<256x8xbf16>, vector<256x8xbf16>, vector<256x8xbf16>, vector<256x8xbf16>, vector<256x8xbf16>, vector<256x8xbf16>, vector<256x8xbf16>, vector<256x8xbf16>, vector<256x8xbf16> -> vector<256x72xbf16>
    %c0_16 = arith.constant 0 : index
    %c0_17 = arith.constant 0 : index
    %40 = vector.load %arg5[%c0_16, %c0_17] : memref<72x8xbf16, #tpu.memory_space<vmem>>, vector<72x8xbf16>
    %cst_18 = arith.constant dense<0.000000e+00> : vector<256x8xf32>
    %41 = tpu.matmul %39, %40, %cst_18 {dimension_numbers = #tpu.dot_dimension_numbers<[1], [0], [0], [1], [0, 0, 1, 1], [], []>} : vector<256x72xbf16>, vector<72x8xbf16>, vector<256x8xf32> -> vector<256x8xf32>
    %42 = arith.addf %1, %41 : vector<256x8xf32>
    %c0_19 = arith.constant 0 : index
    %c0_20 = arith.constant 0 : index
    %43 = vector.load %arg6[%c0_19, %c0_20] : memref<1x8xf32, #tpu.memory_space<vmem>>, vector<1x8xf32>
    %44 = vector.shape_cast %43 : vector<1x8xf32> to vector<8xf32>
    %45 = vector.shape_cast %44 : vector<8xf32> to vector<1x8xf32>
    %46 = vector.broadcast %45 : vector<1x8xf32> to vector<256x8xf32>
    %47 = arith.mulf %42, %46 : vector<256x8xf32>
    %c0_21 = arith.constant 0 : index
    %c0_22 = arith.constant 0 : index
    %48 = vector.load %arg7[%c0_21, %c0_22] : memref<1x8xf32, #tpu.memory_space<vmem>>, vector<1x8xf32>
    %49 = vector.shape_cast %48 : vector<1x8xf32> to vector<8xf32>
    %50 = vector.shape_cast %49 : vector<8xf32> to vector<1x8xf32>
    %51 = vector.broadcast %50 : vector<1x8xf32> to vector<256x8xf32>
    %52 = arith.addf %47, %51 : vector<256x8xf32>
    %cst_23 = arith.constant 0.000000e+00 : f32
    %53 = vector.broadcast %cst_23 : f32 to vector<256x8xf32>
    %54 = arith.maximumf %52, %53 : vector<256x8xf32>
    %55 = vector.shape_cast %54 : vector<256x8xf32> to vector<16x16x8xf32>
    %c0_24 = arith.constant 0 : index
    %c0_25 = arith.constant 0 : index
    %c0_26 = arith.constant 0 : index
    %c0_27 = arith.constant 0 : index
    %56 = vector.load %arg8[%c0_24, %c0_25, %c0_26, %c0_27] : memref<1x16x16x8xf32, #tpu.memory_space<vmem>>, vector<1x16x16x8xf32>
    %57 = vector.shape_cast %56 : vector<1x16x16x8xf32> to vector<16x16x8xf32>
    %58 = vector.shape_cast %55 : vector<16x16x8xf32> to vector<1x16x16x8xf32>
    tpu.vector_store %arg8[%c0_24, %c0_25, %c0_26, %c0_27], %58 {strides = array<i32>} : memref<1x16x16x8xf32, #tpu.memory_space<vmem>>, vector<1x16x16x8xf32>,
    return
  }
  func.func @transform_0(%arg0: i32, %arg1: i32) -> (i32, i32, i32, i32) {
    %c0_i32 = arith.constant 0 : i32
    %c0_i32_0 = arith.constant 0 : i32
    %c0_i32_1 = arith.constant 0 : i32
    return %arg0, %arg1, %c0_i32, %c0_i32_0 : i32, i32, i32, i32
  }
  func.func @transform_1(%arg0: i32, %arg1: i32) -> (i32, i32, i32, i32) {
    %c16_i32 = arith.constant 16 : i32
    %0 = arith.muli %arg1, %c16_i32 : i32
    %c1_i32 = arith.constant 1 : i32
    %1 = arith.subi %0, %c1_i32 : i32
    %c0_i32 = arith.constant 0 : i32
    %2 = arith.maxsi %1, %c0_i32 : i32
    %c0_i32_0 = arith.constant 0 : i32
    %c0_i32_1 = arith.constant 0 : i32
    %c0_i32_2 = arith.constant 0 : i32
    return %arg0, %2, %c0_i32_0, %c0_i32_1 : i32, i32, i32, i32
  }
  func.func @transform_2(%arg0: i32, %arg1: i32) -> (i32, i32, i32, i32) {
    %c16_i32 = arith.constant 16 : i32
    %0 = arith.muli %arg1, %c16_i32 : i32
    %c16_i32_0 = arith.constant 16 : i32
    %1 = arith.addi %0, %c16_i32_0 : i32
    %c15_i32 = arith.constant 15 : i32
    %2 = arith.minsi %1, %c15_i32 : i32
    %c0_i32 = arith.constant 0 : i32
    %c0_i32_1 = arith.constant 0 : i32
    %c0_i32_2 = arith.constant 0 : i32
    return %arg0, %2, %c0_i32, %c0_i32_1 : i32, i32, i32, i32
  }
  func.func @transform_3(%arg0: i32, %arg1: i32) -> (i32, i32) {
    %c0_i32 = arith.constant 0 : i32
    %c0_i32_0 = arith.constant 0 : i32
    %c0_i32_1 = arith.constant 0 : i32
    return %c0_i32, %c0_i32_0 : i32, i32
  }
  func.func @transform_4(%arg0: i32, %arg1: i32) -> (i32, i32) {
    %c0_i32 = arith.constant 0 : i32
    %c0_i32_0 = arith.constant 0 : i32
    %c0_i32_1 = arith.constant 0 : i32
    return %c0_i32, %c0_i32_0 : i32, i32
  }
  func.func @transform_5(%arg0: i32, %arg1: i32) -> (i32, i32) {
    %c0_i32 = arith.constant 0 : i32
    %c0_i32_0 = arith.constant 0 : i32
    %c0_i32_1 = arith.constant 0 : i32
    return %c0_i32, %c0_i32_0 : i32, i32
  }
  func.func @transform_6(%arg0: i32, %arg1: i32) -> (i32, i32, i32, i32) {
    %c0_i32 = arith.constant 0 : i32
    %c0_i32_0 = arith.constant 0 : i32
    %c0_i32_1 = arith.constant 0 : i32
    return %arg0, %arg1, %c0_i32, %c0_i32_0 : i32, i32, i32, i32
  }
}

</mosaic_0001>

<bundles_post_ra>
// kernel: tile.9
= control target key start
LH: loop header
LB: loop body
LE: loop exit
PB: predicated region body
PF: predicated region fallthrough
CT: control target
= control target key end

     0   :  { %s37_s8 = smov 4   ;;  %s38_s9 = smov 8   ;;  %vm7_vm0 = vcmask 31744   ;;  %vm13_vm1 = vcmask 130144   ;;  %vm19_vm2 = vcmask 97344   ;;  %vm25_vm3 = vcmask 64544   ;;  %s55_s0 = inlined_call_operand.vmem [shape: f32[4,4], index: 0, kind: input, shape index: {}]   ;;  %s56_s1 = inlined_call_operand.vmem [shape: f32[1,16], index: 1, kind: output, shape index: {}]  }
   0x1   :  { %v4_v0 = vld [vmem:[%s55_s0] sm:$0xf]  ;;  %s36_s0 = smov 12  }
   0x2   :  { %5 = vst [vmem:[#allocation1] sm:$0xf] %v4_v0 }
   0x9   :  { %v10_v1 = vld [vmem:[#allocation1 + $0x3] sm:$0x1]   ;;  %v22_v2 = vld [vmem:[#allocation1 + $0x1] sm:$0x1]   ;;  %v16_v3 = vld [vmem:[#allocation1 + $0x2] sm:$0x1]  }
   0xa   :  { %11 = vrot.lane.b32.xlu0 %v10_v1, %s36_s0  ;;  %23 = vrot.lane.b32.xlu1 %v22_v2, %s37_s8  ;;  %v6_v4 = vld [vmem:[#allocation1] sm:$0x1]  }
   0xb   :  { %8 = vst.msk [vmem:[#allocation0] sm:$0x1] %vm7_vm0, %v6_v4  }
  0x12   :  { %17 = vrot.lane.b32.xlu0 %v16_v3, %s38_s9 }
  0x7c   :  { %v12_v5 = vpop.permute.xlu0 %11   ;;  %v24_v6 = vpop.permute.xlu1 %23  }
  0x7d   :  { %14 = vst.msk [vmem:[#allocation0] sm:$0x1] %vm13_vm1, %v12_v5  }
  0x84   :  { %v18_v7 = vpop.permute.xlu0 %17  }
  0x85   :  { %20 = vst.msk [vmem:[#allocation0] sm:$0x1] %vm19_vm2, %v18_v7  }
  0x86   :  { %26 = vst.msk [vmem:[#allocation0] sm:$0x1] %vm25_vm3, %v24_v6  }
  0x8d   :  { %v29_v8 = vld [vmem:[#allocation0] sm:$0x1] }
  0x8e   :  { %32 = vst [vmem:[%s56_s1] sm:$0x1] %v29_v8 }

// kernel: tile.8
= control target key start
LH: loop header
LB: loop body
LE: loop exit
PB: predicated region body
PF: predicated region fallthrough
CT: control target
= control target key end

     0   :  { %s22_s0 = inlined_call_operand.vmem [shape: f32[4], index: 0, kind: input, shape index: {}]   ;;  %s23_s1 = inlined_call_operand.vmem [shape: f32[4,4], index: 1, kind: output, shape index: {}]  }
   0x1   :  { %v4_v0 = vld [vmem:[%s22_s0] ss:$0 sm:$0xff] }
   0x2   :  { %5 = vst [vmem:[%s23_s1] sm:$0xf] %v4_v0 }

// kernel: up_forward.3
= control target key start
LH: loop header
LB: loop body
LE: loop exit
PB: predicated region body
PF: predicated region fallthrough
CT: control target
= control target key end

     0   :  { %vm69_vm0 = vcmask 1041408   ;;  %vm44_vm1 = vcmask 31744   ;;  %vm122_vm2 = vcmask 64512   ;;  %s253_s21 = smov 120   ;;  %s480_s1 = inlined_call_operand.vmem [shape: bf16[4,16], index: 1, kind: input, shape index: {}]   ;;  %s481_s0 = inlined_call_operand.vmem [shape: f32[16,8,4], index: 0, kind: input, shape index: {}]   ;;  %s482_s2 = inlined_call_operand.vmem [shape: f32[1,16], index: 2, kind: input, shape index: {}]   ;;  %s483_s3 = inlined_call_operand.vmem [shape: f32[16,2,8,8], index: 3, kind: output, shape index: {}]  }
   0x1   :  { %v39_v0 = vld [vmem:[%s480_s1] sm:$0x3]  ;;  %v16_v2 = vld [vmem:[%s481_s0 + $0x8] sm:$0xff]  ;;  %v17_v14 = vld [vmem:[%s481_s0 + $0x10] sm:$0xff] }
   0x2   :  { %v15_v1 = vld [vmem:[%s481_s0] sm:$0xff]  ;;  %v71_v3 = vsel %vm69_vm0, %v39_v0, 0  ;;  %v20_v6 = vld [vmem:[%s481_s0 + $0x28] sm:$0xff]  ;;  %v18_v15 = vld [vmem:[%s481_s0 + $0x18] sm:$0xff] }
   0x3   :  { %v31_v4 = vpack.c.bf16 %v16_v2, %v15_v1  ;;  %v19_v5 = vld [vmem:[%s481_s0 + $0x20] sm:$0xff]  ;;  %80 = vmatpush.bf16.msra.mxu0 %v71_v3  ;;  %248 = vmatpush.bf16.msra.mxu1 %v71_v3  ;;  %v24_v9 = vld [vmem:[%s481_s0 + $0x48] sm:$0xff]  ;;  %v25_v16 = vld [vmem:[%s481_s0 + $0x50] sm:$0xff]  ;;  %v32_v22 = vpack.c.bf16 %v18_v15, %v17_v14 }
   0x4   :  { %v23_v7 = vld [vmem:[%s481_s0 + $0x40] sm:$0xff]  ;;  %v33_v8 = vpack.c.bf16 %v20_v6, %v19_v5  ;;  %v28_v11 = vld [vmem:[%s481_s0 + $0x68] sm:$0xff]  ;;  %249 = vmatpush.bf16.msra.mxu2 %v71_v3  ;;  %250 = vmatpush.bf16.msra.mxu3 %v71_v3  ;;  %v21_v17 = vld [vmem:[%s481_s0 + $0x30] sm:$0xff] }
   0x5   :  { %v27_v10 = vld [vmem:[%s481_s0 + $0x60] sm:$0xff]  ;;  %v35_v12 = vpack.c.bf16 %v24_v9, %v23_v7  ;;  %v22_v18 = vld [vmem:[%s481_s0 + $0x38] sm:$0xff]  ;;  %v29_v20 = vld [vmem:[%s481_s0 + $0x70] sm:$0xff] }
   0x6   :  { %v37_v13 = vpack.c.bf16 %v28_v11, %v27_v10  ;;  %224 = vmatmul.msk.bf16.vlgmr.msra.gmra.mxu0 %vm44_vm1, %v31_v4  ;;  %226 = vmatmul.msk.bf16.vlgmr.msra.gmra.mxu1 %vm44_vm1, %v33_v8  ;;  %v26_v19 = vld [vmem:[%s481_s0 + $0x58] sm:$0xff]  ;;  %v34_v23 = vpack.c.bf16 %v22_v18, %v21_v17  ;;  %v252_v26 = vld [vmem:[%s482_s2] ss:$0 sm:$0xff] }
   0x7   :  { %228 = vmatmul.msk.bf16.vlgmr.msra.gmra.mxu2 %vm44_vm1, %v35_v12  ;;  %v30_v21 = vld [vmem:[%s481_s0 + $0x78] sm:$0xff]  ;;  %v36_v24 = vpack.c.bf16 %v26_v19, %v25_v16 }
   0x8   :  { %230 = vmatmul.msk.bf16.vlgmr.msra.gmra.mxu3 %vm44_vm1, %v37_v13  ;;  %v38_v25 = vpack.c.bf16 %v30_v21, %v29_v20 }
  0x16   :  { %225 = vmatmul.msk.bf16.gmra.mxu0 %vm44_vm1, %v32_v22  ;;  %227 = vmatmul.msk.bf16.gmra.mxu1 %vm44_vm1, %v34_v23 }
  0x17   :  { %229 = vmatmul.msk.bf16.gmra.mxu2 %vm44_vm1, %v36_v24 }
  0x18   :  { %231 = vmatmul.msk.bf16.gmra.mxu3 %vm44_vm1, %v38_v25 }
  0x83   :  { %v82_v27 = vpop.f32.mrf.mxu0  ;;  %v92_v28 = vpop.f32.mrf.mxu1 }
  0x84   :  { %v83_v29 = vadd.f32 %v252_v26, %v82_v27  ;;  %v93_v30 = vadd.f32 %v252_v26, %v92_v28 }
  0x86   :  { %123 = vst.msk [vmem:[%s483_s3] sm:$0xff] %vm122_vm2, %v83_v29  ;;  %163 = vrot.lane.b32.xlu2 %v93_v30, %s253_s21  ;;  %155 = vrot.lane.b32.xlu0 %v83_v29, %s253_s21 }
  0x87   :  { %127 = vst.msk [vmem:[%s483_s3 + $0x40] sm:$0xff] %vm122_vm2, %v93_v30 }
  0x8a   :  { %v102_v31 = vpop.f32.mrf.mxu2 }
  0x8b   :  { %v112_v32 = vpop.f32.mrf.mxu3  ;;  %v103_v33 = vadd.f32 %v252_v26, %v102_v31  ;;  %v84_v34 = vpop.f32.mrf.mxu0 }
  0x8c   :  { %v113_v35 = vadd.f32 %v252_v26, %v112_v32  ;;  %v94_v36 = vpop.f32.mrf.mxu1  ;;  %v85_v37 = vadd.f32 %v252_v26, %v84_v34 }
  0x8d   :  { %v95_v38 = vadd.f32 %v252_v26, %v94_v36  ;;  %131 = vst.msk [vmem:[%s483_s3 + $0x80] sm:$0xff] %vm122_vm2, %v103_v33 }
  0x8e   :  { %124 = vst.msk [vmem:[%s483_s3 + $0x10] sm:$0xff] %vm122_vm2, %v85_v37  ;;  %171 = vrot.lane.b32.xlu2 %v103_v33, %s253_s21  ;;  %179 = vrot.lane.b32.xlu0 %v113_v35, %s253_s21 }
  0x8f   :  { %135 = vst.msk [vmem:[%s483_s3 + $0xc0] sm:$0xff] %vm122_vm2, %v113_v35 }
  0x90   :  { %128 = vst.msk [vmem:[%s483_s3 + $0x50] sm:$0xff] %vm122_vm2, %v95_v38 }
  0x92   :  { %v104_v39 = vpop.f32.mrf.mxu2 }
  0x93   :  { %v114_v40 = vpop.f32.mrf.mxu3  ;;  %v105_v41 = vadd.f32 %v252_v26, %v104_v39  ;;  %v87_v42 = vpop.f32.mrf.mxu0 }
  0x94   :  { %v115_v43 = vadd.f32 %v252_v26, %v114_v40  ;;  %v97_v44 = vpop.f32.mrf.mxu1  ;;  %v88_v45 = vadd.f32 %v252_v26, %v87_v42 }
  0x95   :  { %v98_v46 = vadd.f32 %v252_v26, %v97_v44  ;;  %132 = vst.msk [vmem:[%s483_s3 + $0x90] sm:$0xff] %vm122_vm2, %v105_v41 }
  0x96   :  { %125 = vst.msk [vmem:[%s483_s3 + $0x20] sm:$0xff] %vm122_vm2, %v88_v45  ;;  %165 = vrot.lane.b32.xlu2 %v95_v38, %s253_s21  ;;  %159 = vrot.lane.b32.xlu1 %v88_v45, %s253_s21 }
  0x97   :  { %136 = vst.msk [vmem:[%s483_s3 + $0xd0] sm:$0xff] %vm122_vm2, %v115_v43  ;;  %157 = vrot.lane.b32.xlu0 %v85_v37, %s253_s21 }
  0x98   :  { %129 = vst.msk [vmem:[%s483_s3 + $0x60] sm:$0xff] %vm122_vm2, %v98_v46 }
  0x9a   :  { %v107_v47 = vpop.f32.mrf.mxu2 }
  0x9b   :  { %v117_v48 = vpop.f32.mrf.mxu3  ;;  %v108_v49 = vadd.f32 %v252_v26, %v107_v47  ;;  %v89_v50 = vpop.f32.mrf.mxu0 }
  0x9c   :  { %v99_v51 = vpop.f32.mrf.mxu1  ;;  %v90_v52 = vadd.f32 %v252_v26, %v89_v50  ;;  %v118_v54 = vadd.f32 %v252_v26, %v117_v48 }
  0x9d   :  { %v100_v53 = vadd.f32 %v252_v26, %v99_v51  ;;  %133 = vst.msk [vmem:[%s483_s3 + $0xa0] sm:$0xff] %vm122_vm2, %v108_v49 }
  0x9e   :  { %126 = vst.msk [vmem:[%s483_s3 + $0x30] sm:$0xff] %vm122_vm2, %v90_v52  ;;  %175 = vrot.lane.b32.xlu1 %v108_v49, %s253_s21 }
  0x9f   :  { %173 = vrot.lane.b32.xlu0 %v105_v41, %s253_s21  ;;  %130 = vst.msk [vmem:[%s483_s3 + $0x70] sm:$0xff] %vm122_vm2, %v100_v53 }
  0xa0   :  { %137 = vst.msk [vmem:[%s483_s3 + $0xe0] sm:$0xff] %vm122_vm2, %v118_v54 }
  0xa2   :  { %v109_v55 = vpop.f32.mrf.mxu2 }
  0xa3   :  { %v119_v56 = vpop.f32.mrf.mxu3  ;;  %v110_v57 = vadd.f32 %v252_v26, %v109_v55 }
  0xa4   :  { %v120_v58 = vadd.f32 %v252_v26, %v119_v56 }
  0xa5   :  { %134 = vst.msk [vmem:[%s483_s3 + $0xb0] sm:$0xff] %vm122_vm2, %v110_v57  ;;  %177 = vrot.lane.b32.xlu2 %v110_v57, %s253_s21 }
  0xa6   :  { %161 = vrot.lane.b32.xlu1 %v90_v52, %s253_s21  ;;  %138 = vst.msk [vmem:[%s483_s3 + $0xf0] sm:$0xff] %vm122_vm2, %v120_v58 }
  0xa7   :  { %167 = vrot.lane.b32.xlu0 %v98_v46, %s253_s21 }
  0xad   :  { %183 = vrot.lane.b32.xlu2 %v118_v54, %s253_s21 }
  0xae   :  { %169 = vrot.lane.b32.xlu1 %v100_v53, %s253_s21 }
  0xaf   :  { %185 = vrot.lane.b32.xlu0 %v120_v58, %s253_s21 }
  0xb6   :  { %181 = vrot.lane.b32.xlu1 %v115_v43, %s253_s21 }
  0xe0   :  { %v164_v59 = vpop.permute.xlu2 %163 }
  0xe1   :  { %236 = vst.msk [vmem:[%s483_s3 + $0x48] sm:$0xff] %vm122_vm2, %v164_v59 }
  0xe8   :  { %v172_v60 = vpop.permute.xlu2 %171 }
  0xe9   :  { %240 = vst.msk [vmem:[%s483_s3 + $0x88] sm:$0xff] %vm122_vm2, %v172_v60 }
  0xf0   :  { %v166_v61 = vpop.permute.xlu2 %165 }
  0xf1   :  { %237 = vst.msk [vmem:[%s483_s3 + $0x58] sm:$0xff] %vm122_vm2, %v166_v61 }
  0xf8   :  { %v156_v62 = vpop.permute.xlu0 %155 }
  0xf9   :  { %232 = vst.msk [vmem:[%s483_s3 + $0x8] sm:$0xff] %vm122_vm2, %v156_v62 }
  0xff   :  { %v178_v63 = vpop.permute.xlu2 %177 }
 0x100   :  { %243 = vst.msk [vmem:[%s483_s3 + $0xb8] sm:$0xff] %vm122_vm2, %v178_v63  ;;  %v180_v0 = vpop.permute.xlu0 %179 }
 0x101   :  { %244 = vst.msk [vmem:[%s483_s3 + $0xc8] sm:$0xff] %vm122_vm2, %v180_v0 }
 0x107   :  { %v184_v1 = vpop.permute.xlu2 %183 }
 0x108   :  { %246 = vst.msk [vmem:[%s483_s3 + $0xe8] sm:$0xff] %vm122_vm2, %v184_v1  ;;  %v160_v2 = vpop.permute.xlu1 %159 }
 0x109   :  { %234 = vst.msk [vmem:[%s483_s3 + $0x28] sm:$0xff] %vm122_vm2, %v160_v2  ;;  %v158_v3 = vpop.permute.xlu0 %157 }
 0x10a   :  { %233 = vst.msk [vmem:[%s483_s3 + $0x18] sm:$0xff] %vm122_vm2, %v158_v3 }
 0x110   :  { %v176_v4 = vpop.permute.xlu1 %175 }
 0x111   :  { %242 = vst.msk [vmem:[%s483_s3 + $0xa8] sm:$0xff] %vm122_vm2, %v176_v4  ;;  %v174_v5 = vpop.permute.xlu0 %173 }
 0x112   :  { %241 = vst.msk [vmem:[%s483_s3 + $0x98] sm:$0xff] %vm122_vm2, %v174_v5 }
 0x118   :  { %v162_v6 = vpop.permute.xlu1 %161 }
 0x119   :  { %235 = vst.msk [vmem:[%s483_s3 + $0x38] sm:$0xff] %vm122_vm2, %v162_v6  ;;  %v168_v7 = vpop.permute.xlu0 %167 }
 0x11a   :  { %238 = vst.msk [vmem:[%s483_s3 + $0x68] sm:$0xff] %vm122_vm2, %v168_v7 }
 0x120   :  { %v170_v8 = vpop.permute.xlu1 %169 }
 0x121   :  { %239 = vst.msk [vmem:[%s483_s3 + $0x78] sm:$0xff] %vm122_vm2, %v170_v8  ;;  %v186_v9 = vpop.permute.xlu0 %185 }
 0x122   :  { %247 = vst.msk [vmem:[%s483_s3 + $0xf8] sm:$0xff] %vm122_vm2, %v186_v9 }
 0x128   :  { %v182_v10 = vpop.permute.xlu1 %181 }
 0x129   :  { %245 = vst.msk [vmem:[%s483_s3 + $0xd8] sm:$0xff] %vm122_vm2, %v182_v10 }

// kernel: up_forward.5
= control target key start
LH: loop header
LB: loop body
LE: loop exit
PB: predicated region body
PF: predicated region fallthrough
CT: control target
= control target key end

     0   :  { %s2236_s21 = smov 0   ;;  %s2238_s22 = smov 0   ;;  %s3306_s0 = inlined_call_operand.vmem [shape: f32[2,16,16,8], index: 0, kind: input, shape index: {}, may-alias: {0,1,2}]   ;;  %s3307_s1 = inlined_call_operand.vmem [shape: f32[2,16,16,8], index: 1, kind: input, shape index: {}, may-alias: {0,1,2}]   ;;  %s3308_s2 = inlined_call_operand.vmem [shape: f32[2,16,16,8], index: 2, kind: input, shape index: {}, may-alias: {0,1,2}]   ;;  %s3309_s3 = inlined_call_operand.vmem [shape: bf16[72,8], index: 3, kind: input, shape index: {}]   ;;  %s3310_s4 = inlined_call_operand.vmem [shape: f32[1,8], index: 4, kind: input, shape index: {}]   ;;  %s3311_s5 = inlined_call_operand.vmem [shape: f32[1,8], index: 5, kind: input, shape index: {}]   ;;  %s3312_s6 = inlined_call_operand.vmem [shape: f32[2,16,16,8], index: 6, kind: output, shape index: {}]  }
   0x1   :  { %s2240_s1 = smov 0  }
   0x2 LB: > { %s28_s2 = sadd.s32 1, %s2186_s22  ;;  %p2066_p0 = scmp.ge.s32.totalorder %s2190_s1, 1  ;;  %s2190_s1 = sphi %s2240_s1, %s16_s1   ;;  %s2186_s22 = sphi %s2238_s22, %s3341_s22   ;;  %s2182_s21 = sphi %s2236_s21, %s3340_s21  }
   0x3   : > { %p30_p1 = scmp.ge.s32.totalorder %s28_s2, 2  ;;  %p298_p2 = scmp.lt.s32.totalorder %s2190_s1, 3 }
   0x5   : > { %s3343_s2 = smov (%p30_p1, %s28_s2), 0  ;;  %p299_p3 = pnand %p2066_p0, %p298_p2 }
   0x7   : > { %302 = sbr.rel (%p299_p3) target bundleno = 653 (0x28d), region = 44 }
   0xc   : > { %v2192_v0 = vmov 0.0|0.0   ;;  %p365_p4 = scmp.lt.s32.totalorder %s2182_s21, 1  ;;  %vm759_vm0 = vcmask 1040384   ;;  %vm760_vm1 = vsmask.f32 256  ;;  %s2193_s27 = smov 8  }
   0xd   : > { %v543_v1 = vunpack.c.l.b16 %v2192_v0  ;;  %vm2257_vm2 = vmand %vm759_vm0, %vm760_vm1  ;;  %vm798_vm3 = vsmask.f32 7424  ;;  %vm1023_vm4 = vcmask 1046528   ;;  %s2194_s28 = smov 16   ;;  %s2195_s29 = smov 24   ;;  %vm1395_vm5 = vcmask 130048  }
   0xe   : > { %s3345_s21 = smov (!%p365_p4, %s2182_s21), 1  ;;  %s2196_s30 = smov 32   ;;  %vm1362_vm6 = vcmask 64512   ;;  %vm1428_vm7 = vcmask 195584   ;;  %vm1695_vm8 = vcmask 1043456   ;;  %vm1461_vm9 = vcmask 261120  }
   0xf   : > { %v579_v2 = vpack.c.b16 %v543_v1, %v543_v1  ;;  %s2109_s23 = sshll.u32 %s3345_s21, 8  ;;  %s2197_s7 = smov 40   ;;  %vm1494_vm10 = vcmask 326656   ;;  %vm1527_vm11 = vcmask 392192   ;;  %vm1560_vm12 = vcmask 457728  }
  0x10   : > { %s2266_s26 = scalar_lea.vmem %s3306_s0, %s2109_s23  ;;  %s2198_s8 = smov 48   ;;  %vm1593_vm13 = vcmask 523264   ;;  %vm1662_vm14 = vcmask 588800  }
  0x11   : > { %v598_v3 = vshrl.u32 %v579_v2, 16  ;;  %v601_v4 = vshll.u32 %v579_v2, 16  ;;  %v445_v7 = vld [vmem:[%s2266_s26 + $0x30] sm:$0xff]  ;;  %v446_v8 = vld [vmem:[%s2266_s26 + $0x38] sm:$0xff]  ;;  %v439_v14 = vld [vmem:[%s2266_s26] sm:$0xff]  ;;  %s2199_s9 = smov 56  }
  0x12   : > { %v441_v9 = vld [vmem:[%s2266_s26 + $0x10] sm:$0xff]  ;;  %v479_v10 = vpack.c.bf16 %v445_v7, %v445_v7  ;;  %v480_v11 = vpack.c.bf16 %v446_v8, %v446_v8  ;;  %v442_v12 = vld [vmem:[%s2266_s26 + $0x18] sm:$0xff]  ;;  %v440_v15 = vld [vmem:[%s2266_s26 + $0x8] sm:$0xff]  ;;  %v473_v19 = vpack.c.bf16 %v439_v14, %v439_v14  ;;  %s2200_s10 = smov 64  }
  0x13   : > { %v600_v6 = vrot.slane %v598_v3, 7  ;;  %v475_v13 = vpack.c.bf16 %v441_v9, %v441_v9  ;;  %v476_v18 = vpack.c.bf16 %v442_v12, %v442_v12  ;;  %v447_v24 = vld [vmem:[%s2266_s26 + $0x40] sm:$0xff]  ;;  %v448_v25 = vld [vmem:[%s2266_s26 + $0x48] sm:$0xff]  ;;  %v474_v28 = vpack.c.bf16 %v440_v15, %v440_v15  ;;  %v449_v9 = vld [vmem:[%s2266_s26 + $0x50] sm:$0xff] }
  0x14   : > { %v551_v21 = vunpack.c.l.b16 %v479_v10  ;;  %v552_v22 = vunpack.c.l.b16 %v480_v11  ;;  %v545_v29 = vunpack.c.l.b16 %v473_v19  ;;  %v443_v30 = vld [vmem:[%s2266_s26 + $0x20] sm:$0xff]  ;;  %v481_v37 = vpack.c.bf16 %v447_v24, %v447_v24  ;;  %v444_v39 = vld [vmem:[%s2266_s26 + $0x28] sm:$0xff] }
  0x15   : > { %v603_v16 = vor.u32 %v601_v4, %v600_v6  ;;  %v2276_v17 = vsel %vm2257_vm2, %v600_v6, 0  ;;  %v547_v23 = vunpack.c.l.b16 %v475_v13  ;;  %v548_v27 = vunpack.c.l.b16 %v476_v18 }
  0x16   : > { %v807_v20 = vshll.u32 %v2276_v17, 16  ;;  %v583_v34 = vpack.c.b16 %v552_v22, %v551_v21  ;;  %v546_v36 = vunpack.c.l.b16 %v474_v28  ;;  %v482_v38 = vpack.c.bf16 %v448_v25, %v448_v25 }
  0x17   : > { %v2283_v26 = vsel %vm2257_vm2, 0, %v603_v16  ;;  %v581_v35 = vpack.c.b16 %v548_v27, %v547_v23  ;;  %v477_v43 = vpack.c.bf16 %v443_v30, %v443_v30  ;;  %v553_v47 = vunpack.c.l.b16 %v481_v37  ;;  %v453_v37 = vld [vmem:[%s2266_s26 + $0x70] sm:$0xff] }
  0x18   : > { %v800_v31 = vshrl.u32 %v2283_v26, 16  ;;  %v802_v32 = vshll.u32 %v2283_v26, 16  ;;  %v809_v33 = vrot.slane %v807_v20, 1  ;;  %v626_v41 = vshrl.u32 %v583_v34, 16 }
  0x19   : > { %v629_v42 = vshll.u32 %v583_v34, 16  ;;  %v612_v44 = vshrl.u32 %v581_v35, 16  ;;  %v615_v45 = vshll.u32 %v581_v35, 16  ;;  %v580_v46 = vpack.c.b16 %v546_v36, %v545_v29 }
  0x1a   : > { %v804_v40 = vrot.slane %v802_v32, 1  ;;  %v628_v49 = vrot.slane %v626_v41, 7  ;;  %v554_v50 = vunpack.c.l.b16 %v482_v38  ;;  %v478_v51 = vpack.c.bf16 %v444_v39, %v444_v39  ;;  %v450_v32 = vld [vmem:[%s2266_s26 + $0x58] sm:$0xff] }
  0x1b   : > { %v614_v52 = vrot.slane %v612_v44, 7  ;;  %v605_v53 = vshrl.u32 %v580_v46, 16  ;;  %v608_v54 = vshll.u32 %v580_v46, 16  ;;  %v549_v55 = vunpack.c.l.b16 %v477_v43  ;;  %v451_v43 = vld [vmem:[%s2266_s26 + $0x60] sm:$0xff] }
  0x1c   : > { %v805_v48 = vor.u32 %v804_v40, %v800_v31  ;;  %v631_v57 = vor.u32 %v629_v42, %v628_v49  ;;  %v2294_v58 = vsel %vm2257_vm2, %v628_v49, 0  ;;  %v584_v59 = vpack.c.b16 %v554_v50, %v553_v47  ;;  %v454_v42 = vld [vmem:[%s2266_s26 + $0x78] sm:$0xff] }
  0x1d   : > { %v855_v60 = vshll.u32 %v2294_v58, 16  ;;  %v617_v61 = vor.u32 %v615_v45, %v614_v52  ;;  %v2301_v62 = vsel %vm2257_vm2, %v614_v52, 0  ;;  %v607_v63 = vrot.slane %v605_v53, 7  ;;  %v452_v52 = vld [vmem:[%s2266_s26 + $0x68] sm:$0xff] }
  0x1e   : > { %v2290_v56 = vsel %vm798_vm3, %v805_v48, %v809_v33  ;;  %v2305_v0 = vsel %vm2257_vm2, 0, %v631_v57  ;;  %v831_v1 = vshll.u32 %v2301_v62, 16  ;;  %v633_v2 = vshrl.u32 %v584_v59, 16 }
  0x1f   : > { %3324 = vst [vmem:[#allocation2_spill] sm:$0xff] %v2290_v56  ;;  %1106 = vrot.lane.b32.xlu0 %v2290_v56, %s2193_s27  ;;  %v636_v3 = vshll.u32 %v584_v59, 16  ;;  %v848_v4 = vshrl.u32 %v2305_v0, 16  ;;  %v850_v6 = vshll.u32 %v2305_v0, 16  ;;  %v857_v7 = vrot.slane %v855_v60, 1  ;;  %v455_v59 = vld [vmem:[%s2266_s26 + $0x80] sm:$0xff] }
  0x20   : > { %v2312_v8 = vsel %vm2257_vm2, 0, %v617_v61  ;;  %v833_v12 = vrot.slane %v831_v1, 1  ;;  %v610_v13 = vor.u32 %v608_v54, %v607_v63  ;;  %v2319_v15 = vsel %vm2257_vm2, %v607_v63, 0 }
  0x21   : > { %v824_v10 = vshrl.u32 %v2312_v8, 16  ;;  %v826_v11 = vshll.u32 %v2312_v8, 16  ;;  %v852_v14 = vrot.slane %v850_v6, 1  ;;  %v635_v16 = vrot.slane %v633_v2, 7 }
  0x22   : > { %v550_v18 = vunpack.c.l.b16 %v478_v51  ;;  %v2323_v20 = vsel %vm2257_vm2, 0, %v610_v13  ;;  %v819_v21 = vshll.u32 %v2319_v15, 16  ;;  %v483_v22 = vpack.c.bf16 %v449_v9, %v449_v9  ;;  %v459_v13 = vld [vmem:[%s2266_s26 + $0xa0] sm:$0xff] }
  0x23   : > { %v828_v19 = vrot.slane %v826_v11, 1  ;;  %v853_v23 = vor.u32 %v852_v14, %v848_v4  ;;  %v812_v24 = vshrl.u32 %v2323_v20, 16  ;;  %v814_v25 = vshll.u32 %v2323_v20, 16 }
  0x24   : > { %v638_v27 = vor.u32 %v636_v3, %v635_v16  ;;  %v821_v29 = vrot.slane %v819_v21, 1  ;;  %v2330_v30 = vsel %vm2257_vm2, %v635_v16, 0  ;;  %v582_v31 = vpack.c.b16 %v550_v18, %v549_v55 }
  0x25   : > { %v829_v28 = vor.u32 %v828_v19, %v824_v10  ;;  %v2334_v33 = vsel %vm798_vm3, %v853_v23, %v857_v7  ;;  %v816_v34 = vrot.slane %v814_v25, 1  ;;  %v867_v36 = vshll.u32 %v2330_v30, 16  ;;  %v456_v7 = vld [vmem:[%s2266_s26 + $0x88] sm:$0xff] }
  0x26   : > { %v2338_v35 = vsel %vm2257_vm2, 0, %v638_v27  ;;  %1114 = vrot.lane.b32.xlu2 %v2334_v33, %s2193_s27  ;;  %v619_v41 = vshrl.u32 %v582_v31, 16  ;;  %v622_v46 = vshll.u32 %v582_v31, 16  ;;  %v484_v47 = vpack.c.bf16 %v450_v32, %v450_v32  ;;  %v460_v25 = vld [vmem:[%s2266_s26 + $0xa8] sm:$0xff] }
  0x27   : > { %v2345_v38 = vsel %vm798_vm3, %v829_v28, %v833_v12  ;;  %v860_v39 = vshrl.u32 %v2338_v35, 16  ;;  %v862_v40 = vshll.u32 %v2338_v35, 16  ;;  %v817_v44 = vor.u32 %v816_v34, %v812_v24 }
  0x28   : > { %1110 = vrot.lane.b32.xlu1 %v2345_v38, %s2193_s27  ;;  %v869_v45 = vrot.slane %v867_v36, 1  ;;  %v621_v49 = vrot.slane %v619_v41, 7  ;;  %v555_v50 = vunpack.c.l.b16 %v483_v22  ;;  %v487_v51 = vpack.c.bf16 %v453_v37, %v453_v37 }
  0x29   : > { %v864_v48 = vrot.slane %v862_v40, 1  ;;  %v2355_v53 = vsel %vm798_vm3, %v817_v44, %v821_v29  ;;  %v556_v54 = vunpack.c.l.b16 %v484_v47  ;;  %v488_v55 = vpack.c.bf16 %v454_v42, %v454_v42 }
  0x2a   : > { %v485_v57 = vpack.c.bf16 %v451_v43, %v451_v43  ;;  %1108 = vrot.lane.b32.xlu0 %v2355_v53, %s2193_s27  ;;  %v624_v61 = vor.u32 %v622_v46, %v621_v49  ;;  %v2362_v63 = vsel %vm2257_vm2, %v621_v49, 0  ;;  %v559_v1 = vunpack.c.l.b16 %v487_v51 }
  0x2b   : > { %v865_v60 = vor.u32 %v864_v48, %v860_v39  ;;  %v843_v2 = vshll.u32 %v2362_v63, 16  ;;  %v585_v3 = vpack.c.b16 %v556_v54, %v555_v50  ;;  %v560_v4 = vunpack.c.l.b16 %v488_v55 }
  0x2c   : > { %v486_v6 = vpack.c.bf16 %v452_v52, %v452_v52  ;;  %v2371_v10 = vsel %vm2257_vm2, 0, %v624_v61  ;;  %v557_v11 = vunpack.c.l.b16 %v485_v57  ;;  %v489_v12 = vpack.c.bf16 %v455_v59, %v455_v59 }
  0x2d   : > { %v2367_v9 = vsel %vm798_vm3, %v865_v60, %v869_v45  ;;  %v836_v14 = vshrl.u32 %v2371_v10, 16  ;;  %v838_v16 = vshll.u32 %v2371_v10, 16  ;;  %v845_v18 = vrot.slane %v843_v2, 1 }
  0x2e   : > { %3325 = vst [vmem:[#allocation3_spill] sm:$0xff] %v2367_v9  ;;  %v640_v19 = vshrl.u32 %v585_v3, 16  ;;  %1116 = vrot.lane.b32.xlu2 %v2367_v9, %s2193_s27  ;;  %v643_v21 = vshll.u32 %v585_v3, 16  ;;  %v587_v22 = vpack.c.b16 %v560_v4, %v559_v1  ;;  %v558_v23 = vunpack.c.l.b16 %v486_v6  ;;  %v457_v6 = vld [vmem:[%s2266_s26 + $0x90] sm:$0xff] }
  0x2f   : > { %v490_v24 = vpack.c.bf16 %v456_v7, %v456_v7  ;;  %v840_v27 = vrot.slane %v838_v16, 1  ;;  %v561_v29 = vunpack.c.l.b16 %v489_v12  ;;  %v493_v31 = vpack.c.bf16 %v459_v13, %v459_v13 }
  0x30   : > { %v642_v28 = vrot.slane %v640_v19, 7  ;;  %v654_v32 = vshrl.u32 %v587_v22, 16  ;;  %v657_v34 = vshll.u32 %v587_v22, 16  ;;  %v586_v36 = vpack.c.b16 %v558_v23, %v557_v11 }
  0x31   : > { %v562_v37 = vunpack.c.l.b16 %v490_v24  ;;  %v841_v39 = vor.u32 %v840_v27, %v836_v14  ;;  %v494_v42 = vpack.c.bf16 %v460_v25, %v460_v25  ;;  %v565_v50 = vunpack.c.l.b16 %v493_v31  ;;  %v458_v24 = vld [vmem:[%s2266_s26 + $0x98] sm:$0xff] }
  0x32   : > { %v645_v40 = vor.u32 %v643_v21, %v642_v28  ;;  %v2381_v41 = vsel %vm2257_vm2, %v642_v28, 0  ;;  %v656_v44 = vrot.slane %v654_v32, 7  ;;  %v647_v45 = vshrl.u32 %v586_v36, 16 }
  0x33   : > { %v879_v43 = vshll.u32 %v2381_v41, 16  ;;  %v650_v46 = vshll.u32 %v586_v36, 16  ;;  %v2385_v47 = vsel %vm798_vm3, %v841_v39, %v845_v18  ;;  %v588_v49 = vpack.c.b16 %v562_v37, %v561_v29 }
  0x34   : > { %v2389_v48 = vsel %vm2257_vm2, 0, %v645_v40  ;;  %1112 = vrot.lane.b32.xlu1 %v2385_v47, %s2193_s27  ;;  %v659_v55 = vor.u32 %v657_v34, %v656_v44  ;;  %v2397_v57 = vsel %vm2257_vm2, %v656_v44, 0  ;;  %v649_v59 = vrot.slane %v647_v45, 7  ;;  %v461_v44 = vld [vmem:[%s2266_s26 + $0xb0] sm:$0xff] }
  0x35   : > { %v872_v51 = vshrl.u32 %v2389_v48, 16  ;;  %v874_v52 = vshll.u32 %v2389_v48, 16  ;;  %v881_v54 = vrot.slane %v879_v43, 1  ;;  %v661_v60 = vshrl.u32 %v588_v49, 16 }
  0x36   : > { %v664_v61 = vshll.u32 %v588_v49, 16  ;;  %v2401_v2 = vsel %vm2257_vm2, 0, %v659_v55  ;;  %v903_v3 = vshll.u32 %v2397_v57, 16  ;;  %v566_v4 = vunpack.c.l.b16 %v494_v42 }
  0x37   : > { %v876_v1 = vrot.slane %v874_v52, 1  ;;  %v896_v7 = vshrl.u32 %v2401_v2, 16  ;;  %v898_v11 = vshll.u32 %v2401_v2, 16  ;;  %v652_v12 = vor.u32 %v650_v46, %v649_v59 }
  0x38   : > { %v2409_v13 = vsel %vm2257_vm2, %v649_v59, 0  ;;  %v905_v16 = vrot.slane %v903_v3, 1  ;;  %v663_v19 = vrot.slane %v661_v60, 7  ;;  %v590_v23 = vpack.c.b16 %v566_v4, %v565_v50  ;;  %v465_v60 = vld [vmem:[%s2266_s26 + $0xd0] sm:$0xff] }
  0x39   : > { %v877_v14 = vor.u32 %v876_v1, %v872_v51  ;;  %v891_v18 = vshll.u32 %v2409_v13, 16  ;;  %v900_v21 = vrot.slane %v898_v11, 1  ;;  %v2414_v22 = vsel %vm2257_vm2, 0, %v652_v12  ;;  %v462_v51 = vld [vmem:[%s2266_s26 + $0xb8] sm:$0xff] }
  0x3a   : > { %v491_v25 = vpack.c.bf16 %v457_v6, %v457_v6  ;;  %v884_v28 = vshrl.u32 %v2414_v22, 16  ;;  %v886_v29 = vshll.u32 %v2414_v22, 16  ;;  %v666_v34 = vor.u32 %v664_v61, %v663_v19 }
  0x3b   : > { %v2418_v27 = vsel %vm798_vm3, %v877_v14, %v881_v54  ;;  %v893_v31 = vrot.slane %v891_v18, 1  ;;  %v901_v32 = vor.u32 %v900_v21, %v896_v7  ;;  %v2426_v36 = vsel %vm2257_vm2, %v663_v19, 0  ;;  %v466_v14 = vld [vmem:[%s2266_s26 + $0xd8] sm:$0xff] }
  0x3c   : > { %1118 = vrot.lane.b32.xlu0 %v2418_v27, %s2193_s27  ;;  %v675_v37 = vshrl.u32 %v590_v23, 16  ;;  %v888_v39 = vrot.slane %v886_v29, 1  ;;  %v915_v40 = vshll.u32 %v2426_v36, 16  ;;  %v678_v42 = vshll.u32 %v590_v23, 16  ;;  %v463_v23 = vld [vmem:[%s2266_s26 + $0xc0] sm:$0xff] }
  0x3d   : > { %v492_v43 = vpack.c.bf16 %v458_v24, %v458_v24  ;;  %v2431_v45 = vsel %vm798_vm3, %v901_v32, %v905_v16  ;;  %v2435_v46 = vsel %vm2257_vm2, 0, %v666_v34  ;;  %v563_v50 = vunpack.c.l.b16 %v491_v25 }
  0x3e   : > { %v677_v49 = vrot.slane %v675_v37, 7  ;;  %1122 = vrot.lane.b32.xlu2 %v2431_v45, %s2193_s27  ;;  %v889_v52 = vor.u32 %v888_v39, %v884_v28  ;;  %v908_v54 = vshrl.u32 %v2435_v46, 16  ;;  %v910_v55 = vshll.u32 %v2435_v46, 16 }
  0x3f   : > { %v917_v59 = vrot.slane %v915_v40, 1  ;;  %v564_v3 = vunpack.c.l.b16 %v492_v43  ;;  %v495_v4 = vpack.c.bf16 %v461_v44, %v461_v44  ;;  %v496_v12 = vpack.c.bf16 %v462_v51, %v462_v51  ;;  %v467_v40 = vld [vmem:[%s2266_s26 + $0xe0] sm:$0xff] }
  0x40   : > { %v680_v61 = vor.u32 %v678_v42, %v677_v49  ;;  %v2445_v1 = vsel %vm2257_vm2, %v677_v49, 0  ;;  %v2448_v6 = vsel %vm798_vm3, %v889_v52, %v893_v31  ;;  %v912_v7 = vrot.slane %v910_v55, 1  ;;  %v464_v31 = vld [vmem:[%s2266_s26 + $0xc8] sm:$0xff] }
  0x41   : > { %v939_v11 = vshll.u32 %v2445_v1, 16  ;;  %1120 = vrot.lane.b32.xlu1 %v2448_v6, %s2193_s27  ;;  %v589_v18 = vpack.c.b16 %v564_v3, %v563_v50  ;;  %v567_v19 = vunpack.c.l.b16 %v495_v4  ;;  %v499_v21 = vpack.c.bf16 %v465_v60, %v465_v60  ;;  %v468_v42 = vld [vmem:[%s2266_s26 + $0xe8] sm:$0xff] }
  0x42   : > { %v2456_v16 = vsel %vm2257_vm2, 0, %v680_v61  ;;  %v913_v24 = vor.u32 %v912_v7, %v908_v54  ;;  %v568_v37 = vunpack.c.l.b16 %v496_v12  ;;  %v500_v39 = vpack.c.bf16 %v466_v14, %v466_v14 }
  0x43   : > { %v932_v25 = vshrl.u32 %v2456_v16, 16  ;;  %v934_v28 = vshll.u32 %v2456_v16, 16  ;;  %v941_v29 = vrot.slane %v939_v11, 1  ;;  %v668_v32 = vshrl.u32 %v589_v18, 16 }
  0x44   : > { %v671_v34 = vshll.u32 %v589_v18, 16  ;;  %v2465_v43 = vsel %vm798_vm3, %v913_v24, %v917_v59  ;;  %v571_v49 = vunpack.c.l.b16 %v499_v21  ;;  %v497_v50 = vpack.c.bf16 %v463_v23, %v463_v23 }
  0x45   : > { %3326 = vst [vmem:[#allocation4_spill] sm:$0xff] %v2465_v43  ;;  %v936_v44 = vrot.slane %v934_v28, 1  ;;  %1124 = vrot.lane.b32.xlu0 %v2465_v43, %s2193_s27  ;;  %v670_v51 = vrot.slane %v668_v32, 7  ;;  %v591_v52 = vpack.c.b16 %v568_v37, %v567_v19  ;;  %v572_v54 = vunpack.c.l.b16 %v500_v39 }
  0x46   : > { %v498_v55 = vpack.c.bf16 %v464_v31, %v464_v31  ;;  %v569_v61 = vunpack.c.l.b16 %v497_v50  ;;  %v501_v3 = vpack.c.bf16 %v467_v40, %v467_v40  ;;  %v502_v4 = vpack.c.bf16 %v468_v42, %v468_v42 }
  0x47   : > { %v937_v60 = vor.u32 %v936_v44, %v932_v25  ;;  %v673_v7 = vor.u32 %v671_v34, %v670_v51  ;;  %v2471_v11 = vsel %vm2257_vm2, %v670_v51, 0  ;;  %v682_v59 = vshrl.u32 %v591_v52, 16 }
  0x48   : > { %v685_v12 = vshll.u32 %v591_v52, 16  ;;  %v927_v18 = vshll.u32 %v2471_v11, 16  ;;  %v593_v21 = vpack.c.b16 %v572_v54, %v571_v49  ;;  %v570_v19 = vunpack.c.l.b16 %v498_v55 }
  0x49   : > { %v2474_v14 = vsel %vm798_vm3, %v937_v60, %v941_v29  ;;  %v2481_v23 = vsel %vm2257_vm2, 0, %v673_v7  ;;  %v684_v24 = vrot.slane %v682_v59, 7  ;;  %v573_v25 = vunpack.c.l.b16 %v501_v3 }
  0x4a   : > { %1128 = vrot.lane.b32.xlu2 %v2474_v14, %s2193_s27  ;;  %v574_v28 = vunpack.c.l.b16 %v502_v4  ;;  %v920_v31 = vshrl.u32 %v2481_v23, 16  ;;  %v922_v32 = vshll.u32 %v2481_v23, 16  ;;  %v929_v29 = vrot.slane %v927_v18, 1 }
  0x4b   : > { %v696_v34 = vshrl.u32 %v593_v21, 16  ;;  %v687_v37 = vor.u32 %v685_v12, %v684_v24  ;;  %v2487_v39 = vsel %vm2257_vm2, %v684_v24, 0  ;;  %v699_v40 = vshll.u32 %v593_v21, 16 }
  0x4c   : > { %v592_v42 = vpack.c.b16 %v570_v19, %v569_v61  ;;  %v924_v44 = vrot.slane %v922_v32, 1  ;;  %v951_v49 = vshll.u32 %v2487_v39, 16  ;;  %v594_v51 = vpack.c.b16 %v574_v28, %v573_v25 }
  0x4d   : > { %v698_v50 = vrot.slane %v696_v34, 7  ;;  %v2492_v52 = vsel %vm2257_vm2, 0, %v687_v37 }
  0x4e   : > { %v689_v54 = vshrl.u32 %v592_v42, 16  ;;  %v692_v55 = vshll.u32 %v592_v42, 16  ;;  %v925_v60 = vor.u32 %v924_v44, %v920_v31  ;;  %v944_v3 = vshrl.u32 %v2492_v52, 16 }
  0x4f   : > { %v946_v4 = vshll.u32 %v2492_v52, 16  ;;  %v953_v7 = vrot.slane %v951_v49, 1  ;;  %v701_v59 = vor.u32 %v699_v40, %v698_v50  ;;  %v2498_v61 = vsel %vm2257_vm2, %v698_v50, 0 }
  0x50   : > { %v691_v12 = vrot.slane %v689_v54, 7  ;;  %v703_v18 = vshrl.u32 %v594_v51, 16  ;;  %v2501_v21 = vsel %vm798_vm3, %v925_v60, %v929_v29  ;;  %v975_v24 = vshll.u32 %v2498_v61, 16 }
  0x51   : > { %v948_v19 = vrot.slane %v946_v4, 1  ;;  %v706_v25 = vshll.u32 %v594_v51, 16  ;;  %1126 = vrot.lane.b32.xlu1 %v2501_v21, %s2193_s27  ;;  %v2508_v28 = vsel %vm2257_vm2, 0, %v701_v59 }
  0x52   : > { %v694_v31 = vor.u32 %v692_v55, %v691_v12  ;;  %v2512_v32 = vsel %vm2257_vm2, %v691_v12, 0  ;;  %v705_v34 = vrot.slane %v703_v18, 7  ;;  %v968_v29 = vshrl.u32 %v2508_v28, 16 }
  0x53   : > { %v949_v37 = vor.u32 %v948_v19, %v944_v3  ;;  %v970_v40 = vshll.u32 %v2508_v28, 16  ;;  %v977_v42 = vrot.slane %v975_v24, 1  ;;  %v963_v49 = vshll.u32 %v2512_v32, 16 }
  0x54   : > { %v2518_v44 = vsel %vm2257_vm2, 0, %v694_v31  ;;  %v708_v50 = vor.u32 %v706_v25, %v705_v34  ;;  %v2523_v51 = vsel %vm2257_vm2, %v705_v34, 0 }
  0x55   : > { %v2526_v54 = vsel %vm798_vm3, %v949_v37, %v953_v7  ;;  %v972_v55 = vrot.slane %v970_v40, 1  ;;  %v956_v60 = vshrl.u32 %v2518_v44, 16  ;;  %v958_v3 = vshll.u32 %v2518_v44, 16 }
  0x56   : > { %1130 = vrot.lane.b32.xlu0 %v2526_v54, %s2193_s27  ;;  %v965_v4 = vrot.slane %v963_v49, 1  ;;  %v2534_v59 = vsel %vm2257_vm2, 0, %v708_v50  ;;  %v987_v12 = vshll.u32 %v2523_v51, 16  ;;  %v1028_v50 = vrot.slane %v2319_v15, 1 }
  0x57   : > { %v973_v18 = vor.u32 %v972_v55, %v968_v29  ;;  %v960_v19 = vrot.slane %v958_v3, 1  ;;  %v980_v7 = vshrl.u32 %v2534_v59, 16  ;;  %v982_v24 = vshll.u32 %v2534_v59, 16 }
  0x58   : > { %v989_v37 = vrot.slane %v987_v12, 1  ;;  %v1027_v29 = vrot.slane %v2323_v20, 1  ;;  %v1024_v55 = vrot.slane %v2283_v26, 1  ;;  %v1031_v15 = vrot.slane %v2301_v62, 1 }
  0x59   : > { %v2540_v25 = vsel %vm798_vm3, %v973_v18, %v977_v42  ;;  %v961_v31 = vor.u32 %v960_v19, %v956_v60  ;;  %v984_v34 = vrot.slane %v982_v24, 1  ;;  %v1025_v60 = vrot.slane %v2276_v17, 1 }
  0x5a   : > { %1134 = vrot.lane.b32.xlu2 %v2540_v25, %s2193_s27  ;;  %v2559_v3 = vsel %vm1023_vm4, %v1027_v29, %v1028_v50  ;;  %v1036_v17 = vrot.slane %v2305_v0, 1  ;;  %v1037_v19 = vrot.slane %v2294_v58, 1  ;;  %v1034_v62 = vrot.slane %v2362_v63, 1 }
  0x5b   : > { %v2545_v40 = vsel %vm798_vm3, %v961_v31, %v965_v4  ;;  %v985_v49 = vor.u32 %v984_v34, %v980_v7  ;;  %v1030_v4 = vrot.slane %v2312_v8, 1  ;;  %v2564_v12 = vsel %vm1023_vm4, %v1024_v55, %v1025_v60 }
  0x5c   : > { %3327 = vst [vmem:[#allocation5_spill] sm:$0xff] %v2545_v40  ;;  %1132 = vrot.lane.b32.xlu1 %v2545_v40, %s2193_s27  ;;  %v1033_v7 = vrot.slane %v2371_v10, 1  ;;  %v2580_v24 = vsel %vm1023_vm4, %v1036_v17, %v1037_v19  ;;  %v1039_v31 = vrot.slane %v2338_v35, 1  ;;  %v1040_v34 = vrot.slane %v2330_v30, 1 }
  0x5d   : > { %v2552_v42 = vsel %vm798_vm3, %v985_v49, %v989_v37  ;;  %3328 = vst [vmem:[#allocation6_spill] sm:$0xff] %v2564_v12  ;;  %v2569_v18 = vsel %vm1023_vm4, %v1030_v4, %v1031_v15  ;;  %v1045_v63 = vrot.slane %v2414_v22, 1  ;;  %v1046_v49 = vrot.slane %v2409_v13, 1 }
  0x5e   : > { %1136 = vrot.lane.b32.xlu0 %v2552_v42, %s2193_s27  ;;  %3329 = vst [vmem:[#allocation7_spill] sm:$0xff] %v2580_v24  ;;  %v2585_v37 = vsel %vm1023_vm4, %v1033_v7, %v1034_v62  ;;  %v2590_v58 = vsel %vm1023_vm4, %v1039_v31, %v1040_v34  ;;  %v1042_v29 = vrot.slane %v2389_v48, 1  ;;  %v1043_v30 = vrot.slane %v2381_v41, 1 }
  0x5f   : > { %v2601_v50 = vsel %vm1023_vm4, %v1045_v63, %v1046_v49  ;;  %v1048_v55 = vrot.slane %v2401_v2, 1  ;;  %v1049_v60 = vrot.slane %v2397_v57, 1  ;;  %v1054_v41 = vrot.slane %v2481_v23, 1 }
  0x60   : > { %v2606_v4 = vsel %vm1023_vm4, %v1042_v29, %v1043_v30  ;;  %v1055_v15 = vrot.slane %v2471_v11, 1  ;;  %v1051_v17 = vrot.slane %v2435_v46, 1  ;;  %v1052_v57 = vrot.slane %v2426_v36, 1 }
  0x61   : > { %v2611_v13 = vsel %vm1023_vm4, %v1048_v55, %v1049_v60  ;;  %v1057_v7 = vrot.slane %v2456_v16, 1  ;;  %v1058_v62 = vrot.slane %v2445_v1, 1  ;;  %v1063_v36 = vrot.slane %v2518_v44, 1 }
  0x62   : > { %1140 = vrot.lane.b32.xlu2 %v2559_v3, %s2194_s28  ;;  %v2622_v19 = vsel %vm1023_vm4, %v1054_v41, %v1055_v15  ;;  %v2627_v31 = vsel %vm1023_vm4, %v1051_v17, %v1052_v57  ;;  %v1064_v34 = vrot.slane %v2512_v32, 1  ;;  %v1060_v63 = vrot.slane %v2492_v52, 1  ;;  %v470_v15 = vld [vmem:[%s2266_s26 + $0xf8] sm:$0xff] }
  0x63   : > { %3330 = vst [vmem:[#allocation8_spill] sm:$0xff] %v2627_v31  ;;  %v2632_v11 = vsel %vm1023_vm4, %v1057_v7, %v1058_v62  ;;  %v1061_v1 = vrot.slane %v2487_v39, 1  ;;  %v1066_v29 = vrot.slane %v2508_v28, 1  ;;  %v1067_v30 = vrot.slane %v2498_v61, 1 }
  0x64   : > { %1138 = vrot.lane.b32.xlu1 %v2564_v12, %s2194_s28  ;;  %v2643_v49 = vsel %vm1023_vm4, %v1063_v36, %v1064_v34  ;;  %v1069_v55 = vrot.slane %v2534_v59, 1  ;;  %v1070_v60 = vrot.slane %v2523_v51, 1  ;;  %v469_v51 = vld [vmem:[%s2266_s26 + $0xf0] sm:$0xff]  ;;  %v504_v7 = vpack.c.bf16 %v470_v15, %v470_v15 }
  0x65   : > { %3331 = vst [vmem:[#allocation9_spill] sm:$0xff] %v2643_v49  ;;  %v2648_v32 = vsel %vm1023_vm4, %v1060_v63, %v1061_v1  ;;  %v2653_v39 = vsel %vm1023_vm4, %v1066_v29, %v1067_v30  ;;  %v503_v57 = vpack.c.bf16 %v469_v51, %v469_v51 }
  0x66   : > { %1142 = vrot.lane.b32.xlu0 %v2569_v18, %s2194_s28  ;;  %v2662_v61 = vsel %vm1023_vm4, %v1069_v55, %v1070_v60  ;;  %v576_v36 = vunpack.c.l.b16 %v504_v7 }
  0x67   : > { %v575_v62 = vunpack.c.l.b16 %v503_v57 }
  0x69   : > { %v595_v34 = vpack.c.b16 %v576_v36, %v575_v62 }
  0x6a   : > { %1146 = vrot.lane.b32.xlu2 %v2580_v24, %s2194_s28 }
  0x6b   : > { %v710_v29 = vshrl.u32 %v595_v34, 16  ;;  %v713_v60 = vshll.u32 %v595_v34, 16 }
  0x6c   : > { %1144 = vrot.lane.b32.xlu1 %v2585_v37, %s2194_s28 }
  0x6d   : > { %v2694_v55 = vrot.slane %v710_v29, 7 }
  0x6e   : > { %1148 = vrot.lane.b32.xlu0 %v2590_v58, %s2194_s28 }
  0x6f   : > { %v715_v57 = vor.u32 %v713_v60, %v2694_v55 }
  0x71   : > { %v2707_v7 = vsel %vm2257_vm2, 0, %v715_v57 }
  0x72   : > { %1152 = vrot.lane.b32.xlu2 %v2601_v50, %s2194_s28 }
  0x74   : > { %1150 = vrot.lane.b32.xlu1 %v2606_v4, %s2194_s28 }
  0x76   : > { %1154 = vrot.lane.b32.xlu0 %v2611_v13, %s2194_s28 }
  0x7a   : > { %1158 = vrot.lane.b32.xlu2 %v2622_v19, %s2194_s28 }
  0x7c   : > { %1156 = vrot.lane.b32.xlu1 %v2627_v31, %s2194_s28 }
  0x7e   : > { %1160 = vrot.lane.b32.xlu0 %v2632_v11, %s2194_s28 }
  0x80   : > { %v1115_v41 = vpop.permute.xlu2 %1114 }
  0x81   : > { %v1372_v56 = vsel %vm1362_vm6, %v2305_v0, %v1115_v41 }
  0x82   : > { %1164 = vrot.lane.b32.xlu2 %v2643_v49, %s2194_s28 }
  0x84   : > { %1162 = vrot.lane.b32.xlu1 %v2648_v32, %s2194_s28 }
  0x86   : > { %1166 = vrot.lane.b32.xlu0 %v2653_v39, %s2194_s28 }
  0x88   : > { %v2678_v17 = vpop.permute.xlu2 %1116 }
  0x8a   : > { %1170 = vrot.lane.b32.xlu2 %v2323_v20, %s2195_s29 }
  0x8c   : > { %1168 = vrot.lane.b32.xlu1 %v2662_v61, %s2194_s28 }
  0x8e   : > { %1172 = vrot.lane.b32.xlu0 %v2312_v8, %s2195_s29 }
  0x91   : > { %v1107_v63 = vpop.permute.xlu0 %1106 }
  0x92   : > { %1176 = vrot.lane.b32.xlu2 %v2305_v0, %s2195_s29 }
  0x94   : > { %1174 = vrot.lane.b32.xlu1 %v2371_v10, %s2195_s29 }
  0x96   : > { %1178 = vrot.lane.b32.xlu0 %v2338_v35, %s2195_s29 }
  0x98   : > { %v2686_v1 = vpop.permute.xlu2 %1122 }
  0x9a   : > { %1182 = vrot.lane.b32.xlu2 %v2414_v22, %s2195_s29  ;;  %v1111_v30 = vpop.permute.xlu1 %1110 }
  0x9c   : > { %1180 = vrot.lane.b32.xlu1 %v2389_v48, %s2195_s29  ;;  %v1109_v15 = vpop.permute.xlu0 %1108 }
  0x9d   : > { %v1366_v60 = vsel %vm1362_vm6, %v2323_v20, %v1109_v15 }
  0x9e   : > { %1184 = vrot.lane.b32.xlu0 %v2401_v2, %s2195_s29 }
  0xa2   : > { %1188 = vrot.lane.b32.xlu2 %v2481_v23, %s2195_s29 }
  0xa4   : > { %1186 = vrot.lane.b32.xlu1 %v2435_v46, %s2195_s29  ;;  %v2698_v51 = vpop.permute.xlu2 %1128 }
  0xa6   : > { %1190 = vrot.lane.b32.xlu0 %v2456_v16, %s2195_s29  ;;  %v1113_v62 = vpop.permute.xlu1 %1112 }
  0xaa   : > { %1194 = vrot.lane.b32.xlu2 %v2518_v44, %s2195_s29 }
  0xac   : > { %1192 = vrot.lane.b32.xlu1 %v2492_v52, %s2195_s29 }
  0xae   : > { %1196 = vrot.lane.b32.xlu0 %v2508_v28, %s2195_s29  ;;  %v2715_v34 = vpop.permute.xlu0 %1118 }
  0xb2   : > { %1200 = vrot.lane.b32.xlu2 %v2707_v7, %s2195_s29 }
  0xb3   : > { %v1121_v29 = vpop.permute.xlu1 %1120 }
  0xb4   : > { %1198 = vrot.lane.b32.xlu1 %v2534_v59, %s2195_s29  ;;  %v2713_v36 = vpop.permute.xlu2 %1134  ;;  %v1378_v41 = vsel %vm1362_vm6, %v2414_v22, %v1121_v29 }
  0xb6   : > { %1202 = vrot.lane.b32.xlu0 %v2355_v53, %s2196_s30 }
  0xb7   : > { %v1125_v53 = vpop.permute.xlu0 %1124 }
  0xba   : > { %1226 = vrot.lane.b32.xlu2 %v2545_v40, %s2196_s30 }
  0xbc   : > { %1218 = vrot.lane.b32.xlu1 %v2465_v43, %s2196_s30  ;;  %v1141_v57 = vpop.permute.xlu2 %1140 }
  0xbd   : > { %v2726_v12 = vsel %vm1395_vm5, %v1366_v60, %v1141_v57 }
  0xbe   : > { %1250 = vrot.lane.b32.xlu0 %v2627_v31, %s2197_s7 }
  0xc2   : > { %1282 = vrot.lane.b32.xlu2 %v2481_v23, %s2198_s8 }
  0xc3   : > { %v1127_v20 = vpop.permute.xlu1 %1126 }
  0xc4   : > { %1258 = vrot.lane.b32.xlu1 %v2643_v49, %s2197_s7  ;;  %v1147_v15 = vpop.permute.xlu2 %1146  ;;  %v1384_v29 = vsel %vm1362_vm6, %v2481_v23, %v1127_v20 }
  0xc5   : > { %v2737_v60 = vsel %vm1395_vm5, %v1372_v56, %v1147_v15 }
  0xc6   : > { %1290 = vrot.lane.b32.xlu0 %v2508_v28, %s2198_s8 }
  0xc8   : > { %v2741_v57 = vpop.permute.xlu0 %1130 }
  0xca   : > { %1322 = vrot.lane.b32.xlu2 %v2540_v25, %s2199_s9 }
  0xcc   : > { %1314 = vrot.lane.b32.xlu1 %v2501_v21, %s2199_s9  ;;  %v1153_v31 = vpop.permute.xlu2 %1152 }
  0xcd   : > { %v2750_v43 = vsel %vm1395_vm5, %v1378_v41, %v1153_v31  ;;  %v1364_v41 = vsel %vm1362_vm6, %v2283_v26, %v1107_v63 }
  0xce   : > { %1346 = vrot.lane.b32.xlu0 %v2622_v19, %s2200_s10  ;;  %v1133_v56 = vpop.permute.xlu1 %1132 }
  0xd0   : > { %v2754_v15 = vpop.permute.xlu0 %1136 }
  0xd2   : > { %1210 = vrot.lane.b32.xlu2 %v2367_v9, %s2196_s30  ;;  %v1368_v9 = vsel %vm1362_vm6, %v2312_v8, %v1111_v30 }
  0xd4   : > { %1354 = vrot.lane.b32.xlu1 %v2653_v39, %s2200_s10  ;;  %v1159_v49 = vpop.permute.xlu2 %1158 }
  0xd5   : > { %v2763_v31 = vsel %vm1395_vm5, %v1384_v29, %v1159_v49  ;;  %v1390_v49 = vsel %vm1362_vm6, %v2518_v44, %v1133_v56 }
  0xd6   : > { %1234 = vrot.lane.b32.xlu0 %v2559_v3, %s2197_s7  ;;  %v1139_v40 = vpop.permute.xlu1 %1138 }
  0xd7   : > { %v1397_v24 = vsel %vm1395_vm5, %v1364_v41, %v1139_v40  ;;  %v1370_v40 = vsel %vm1362_vm6, %v2371_v10, %v1113_v62 }
  0xd8   : > { %v1143_v23 = vpop.permute.xlu0 %1142 }
  0xd9   : > { %v2773_v20 = vsel %vm1395_vm5, %v1368_v9, %v1143_v23  ;;  %v1376_v23 = vsel %vm1362_vm6, %v2389_v48, %v2715_v34  ;;  %v1382_v34 = vsel %vm1362_vm6, %v2435_v46, %v1125_v53 }
  0xda   : > { %1266 = vrot.lane.b32.xlu2 %v2312_v8, %s2198_s8  ;;  %v1374_v8 = vsel %vm1362_vm6, %v2338_v35, %v2678_v17 }
  0xdc   : > { %1242 = vrot.lane.b32.xlu1 %v2590_v58, %s2197_s7  ;;  %v1165_v3 = vpop.permute.xlu2 %1164 }
  0xdd   : > { %v2782_v63 = vsel %vm1395_vm5, %v1390_v49, %v1165_v3  ;;  %v1380_v3 = vsel %vm1362_vm6, %v2401_v2, %v2686_v1 }
  0xde   : > { %1274 = vrot.lane.b32.xlu0 %v2389_v48, %s2198_s8  ;;  %v1145_v9 = vpop.permute.xlu1 %1144 }
  0xdf   : > { %v1403_v30 = vsel %vm1395_vm5, %v1370_v40, %v1145_v9 }
  0xe0   : > { %v1149_v56 = vpop.permute.xlu0 %1148 }
  0xe1   : > { %v2793_v29 = vsel %vm1395_vm5, %v1374_v8, %v1149_v56 }
  0xe2   : > { %1306 = vrot.lane.b32.xlu2 %v2418_v27, %s2199_s9 }
  0xe4   : > { %1298 = vrot.lane.b32.xlu1 %v2345_v38, %s2199_s9  ;;  %v1171_v62 = vpop.permute.xlu2 %1170 }
  0xe5   : > { %v2800_v41 = vsel %vm1428_vm7, %v1397_v24, %v1171_v62 }
  0xe6   : > { %1330 = vrot.lane.b32.xlu0 %v2569_v18, %s2200_s10  ;;  %v1151_v17 = vpop.permute.xlu1 %1150 }
  0xe7   : > { %v1409_v49 = vsel %vm1395_vm5, %v1376_v23, %v1151_v17 }
  0xe8   : > { %v1155_v40 = vpop.permute.xlu0 %1154 }
  0xe9   : > { %v2812_v9 = vsel %vm1395_vm5, %v1380_v3, %v1155_v40 }
  0xea   : > { %1220 = vrot.lane.b32.xlu2 %v2501_v21, %s2196_s30  ;;  %v1386_v21 = vsel %vm1362_vm6, %v2456_v16, %v2698_v51 }
  0xec   : > { %1338 = vrot.lane.b32.xlu1 %v2606_v4, %s2200_s10  ;;  %v1177_v48 = vpop.permute.xlu2 %1176 }
  0xed   : > { %v2819_v24 = vsel %vm1428_vm7, %v1403_v30, %v1177_v48  ;;  %v1388_v30 = vsel %vm1362_vm6, %v2492_v52, %v2741_v57 }
  0xee   : > { %1228 = vrot.lane.b32.xlu0 %v2540_v25, %s2196_s30  ;;  %v1157_v1 = vpop.permute.xlu1 %1156 }
  0xef   : > { %v1415_v8 = vsel %vm1395_vm5, %v1382_v34, %v1157_v1  ;;  %v1634_v1 = vld [vmem:[%s3309_s3 + $0x20] sm:$0xf] }
  0xf0   : > { %v1161_v56 = vpop.permute.xlu0 %1160 }
  0xf1   : > { %v2830_v62 = vsel %vm1395_vm5, %v1386_v21, %v1161_v56 }
  0xf2   : > { %1260 = vrot.lane.b32.xlu2 %v2653_v39, %s2197_s7  ;;  %v1392_v39 = vsel %vm1362_vm6, %v2508_v28, %v2713_v36 }
  0xf4   : > { %1252 = vrot.lane.b32.xlu1 %v2622_v19, %s2197_s7  ;;  %v1183_v53 = vpop.permute.xlu2 %1182 }
  0xf5   : > { %v2837_v25 = vsel %vm1428_vm7, %v1409_v49, %v1183_v53  ;;  %v1394_v49 = vsel %vm1362_vm6, %v2534_v59, %v2754_v15 }
  0xf6   : > { %1284 = vrot.lane.b32.xlu0 %v2456_v16, %s2198_s8  ;;  %v1163_v51 = vpop.permute.xlu1 %1162 }
  0xf7   : > { %v2845_v23 = vsel %vm1395_vm5, %v1388_v30, %v1163_v51  ;;  %v2117_v30 = vld [vmem:[%s3309_s3 + $0x18] sm:$0xff] }
  0xf8   : > { %v1167_v19 = vpop.permute.xlu0 %1166 }
  0xf9   : > { %v2851_v17 = vsel %vm1395_vm5, %v1392_v39, %v1167_v19  ;;  %v2114_v19 = vld [vmem:[%s3309_s3] sm:$0xff] }
  0xfa   : > { %1316 = vrot.lane.b32.xlu2 %v2474_v14, %s2199_s9 }
  0xfc   : > { %1292 = vrot.lane.b32.xlu1 %v2534_v59, %s2198_s8  ;;  %v1189_v57 = vpop.permute.xlu2 %1188 }
  0xfd   : > { %v2858_v16 = vsel %vm1428_vm7, %v1415_v8, %v1189_v57  ;;  %v1652_v8 = vunpack.c.l.b16 %v1634_v1 }
  0xfe   : > { %1324 = vrot.lane.b32.xlu0 %v2552_v42, %s2199_s9  ;;  %v1169_v28 = vpop.permute.xlu1 %1168 }
  0xff   : > { %v1427_v36 = vsel %vm1395_vm5, %v1394_v49, %v1169_v28  ;;  %v1657_v21 = vpack.c.b16 %v1652_v8, %v1652_v8 }
 0x100   : > { %v1173_v3 = vpop.permute.xlu0 %1172 }
 0x101   : > { %v2868_v40 = vsel %vm1428_vm7, %v2726_v12, %v1173_v3  ;;  %v1697_v56 = vsel %vm1695_vm8, %v1657_v21, 0  ;;  %v1086_v21 = vrot.slane %v2707_v7, 1 }
 0x102   : > { %1356 = vrot.lane.b32.xlu2 %v2662_v61, %s2200_s10  ;;  %2119 = vmatpush.bf16.msra.mxu2 %v1697_v56 }
 0x103   : > { %2120 = vmatpush.bf16.msra.mxu3 %v1697_v56  ;;  %1702 = vmatpush.bf16.msra.mxu0 %v1697_v56 }
 0x104   : > { %1348 = vrot.lane.b32.xlu1 %v2632_v11, %s2200_s10  ;;  %v2874_v48 = vpop.permute.xlu2 %1194  ;;  %2118 = vmatpush.bf16.msra.mxu1 %v1697_v56 }
 0x106   : > { %1204 = vrot.lane.b32.xlu0 %v2345_v38, %s2196_s30  ;;  %v1175_v59 = vpop.permute.xlu1 %1174  ;;  %2122 = vmatpush.bf16.msra.mxu2 %v2117_v30 }
 0x107   : > { %v2880_v15 = vsel %vm1428_vm7, %v2773_v20, %v1175_v59  ;;  %2123 = vmatpush.bf16.msra.mxu3 %v2117_v30  ;;  %1703 = vmatpush.bf16.msra.mxu0 %v2117_v30 }
 0x108   : > { %v1179_v34 = vpop.permute.xlu0 %1178  ;;  %2121 = vmatpush.bf16.msra.mxu1 %v2117_v30 }
 0x109   : > { %v2884_v12 = vsel %vm1428_vm7, %v2737_v60, %v1179_v34 }
 0x10a   : > { %1236 = vrot.lane.b32.xlu2 %v2569_v18, %s2197_s7 }
 0x10c   : > { %1212 = vrot.lane.b32.xlu1 %v2418_v27, %s2196_s30  ;;  %v1201_v38 = vpop.permute.xlu2 %1200 }
 0x10d   : > { %v2894_v20 = vsel %vm1428_vm7, %v1427_v36, %v1201_v38  ;;  %v1075_v36 = vshll.u32 %v2707_v7, 16 }
 0x10e   : > { %1244 = vrot.lane.b32.xlu0 %v2606_v4, %s2197_s7  ;;  %v1181_v60 = vpop.permute.xlu1 %1180 }
 0x10f   : > { %v2900_v18 = vsel %vm1428_vm7, %v2793_v29, %v1181_v60  ;;  %v2116_v29 = vld [vmem:[%s3309_s3 + $0x10] sm:$0xff]  ;;  %v1077_v34 = vrot.slane %v1075_v36, 1 }
 0x110   : > { %v1185_v53 = vpop.permute.xlu0 %1184  ;;  %2125 = vmatpush.bf16.msra.mxu2 %v2116_v29  ;;  %2126 = vmatpush.bf16.msra.mxu3 %v2116_v29 }
 0x111   : > { %v2904_v27 = vsel %vm1428_vm7, %v2750_v43, %v1185_v53  ;;  %1704 = vmatpush.bf16.msra.mxu0 %v2116_v29  ;;  %2124 = vmatpush.bf16.msra.mxu1 %v2116_v29 }
 0x112   : > { %1276 = vrot.lane.b32.xlu2 %v2414_v22, %s2198_s8 }
 0x114   : > { %1268 = vrot.lane.b32.xlu1 %v2371_v10, %s2198_s8  ;;  %v2913_v4 = vpop.permute.xlu2 %1226  ;;  %v2115_v10 = vld [vmem:[%s3309_s3 + $0x8] sm:$0xff] }
 0x115   : > { %2128 = vmatpush.bf16.msra.mxu2 %v2115_v10  ;;  %2129 = vmatpush.bf16.msra.mxu3 %v2115_v10 }
 0x116   : > { %1300 = vrot.lane.b32.xlu0 %v2385_v47, %s2199_s9  ;;  %v1187_v43 = vpop.permute.xlu1 %1186  ;;  %1705 = vmatpush.bf16.msra.mxu0 %v2115_v10 }
 0x117   : > { %2127 = vmatpush.bf16.msra.mxu1 %v2115_v10  ;;  %v1446_v56 = vsel %vm1428_vm7, %v2812_v9, %v1187_v43  ;;  %v1454_v9 = vsel %vm1428_vm7, %v2845_v23, %v2874_v48 }
 0x118   : > { %v1191_v51 = vpop.permute.xlu0 %1190 }
 0x119   : > { %v2922_v22 = vsel %vm1428_vm7, %v2763_v31, %v1191_v51  ;;  %2131 = vmatpush.bf16.msra.mxu2 %v2114_v19  ;;  %2132 = vmatpush.bf16.msra.mxu3 %v2114_v19 }
 0x11a   : > { %1332 = vrot.lane.b32.xlu2 %v2585_v37, %s2200_s10  ;;  %1706 = vmatpush.bf16.msra.mxu0 %v2114_v19 }
 0x11b   : > { %2130 = vmatpush.bf16.msra.mxu1 %v2114_v19 }
 0x11c   : > { %1308 = vrot.lane.b32.xlu1 %v2448_v6, %s2199_s9  ;;  %v1283_v39 = vpop.permute.xlu2 %1282 }
 0x11e   : > { %1340 = vrot.lane.b32.xlu0 %v2601_v50, %s2200_s10  ;;  %v1193_v31 = vpop.permute.xlu1 %1192 }
 0x11f   : > { %v2938_v57 = vsel %vm1428_vm7, %v2830_v62, %v1193_v31  ;;  %v796_v62 = vsel %vm2257_vm2, %v2694_v55, 0 }
 0x120   : > { %v1197_v49 = vpop.permute.xlu0 %1196  ;;  %v1080_v1 = vshll.u32 %v796_v62, 16  ;;  %v1087_v60 = vrot.slane %v796_v62, 1 }
 0x121   : > { %v2942_v28 = vsel %vm1428_vm7, %v2782_v63, %v1197_v49 }
 0x122   : > { %1230 = vrot.lane.b32.xlu2 %v2552_v42, %s2196_s30  ;;  %v1073_v42 = vshrl.u32 %v2707_v7, 16  ;;  %v1082_v38 = vrot.slane %v1080_v1, 1  ;;  %v1088_v29 = vsel %vm1023_vm4, %v1086_v21, %v1087_v60 }
 0x124   : > { %1222 = vrot.lane.b32.xlu1 %v2474_v14, %s2196_s30  ;;  %v1323_v3 = vpop.permute.xlu2 %1322  ;;  %v1078_v14 = vor.u32 %v1077_v34, %v1073_v42  ;;  %v3332_v42 = vld [vmem:[#allocation7_spill] sm:$0xff] }
 0x126   : > { %1254 = vrot.lane.b32.xlu0 %v2632_v11, %s2197_s7  ;;  %v1199_v63 = vpop.permute.xlu1 %1198  ;;  %v2966_v55 = vsel %vm798_vm3, %v1078_v14, %v1082_v38 }
 0x127   : > { %v2956_v59 = vsel %vm1428_vm7, %v2851_v17, %v1199_v63 }
 0x128   : > { %v1203_v8 = vpop.permute.xlu0 %1202 }
 0x12a   : > { %1286 = vrot.lane.b32.xlu2 %v2492_v52, %s2198_s8 }
 0x12c   : > { %1262 = vrot.lane.b32.xlu1 %v2662_v61, %s2197_s7  ;;  %v1211_v5 = vpop.permute.xlu2 %1210 }
 0x12d   : > { %v1471_v14 = vsel %vm1461_vm9, %v2884_v12, %v1211_v5 }
 0x12e   : > { %1294 = vrot.lane.b32.xlu0 %v2707_v7, %s2198_s8  ;;  %v1219_v11 = vpop.permute.xlu1 %1218 }
 0x12f   : > { %v1479_v53 = vsel %vm1461_vm9, %v1446_v56, %v1219_v11  ;;  %v3334_v56 = vld [vmem:[#allocation9_spill] sm:$0xff] }
 0x130   : > { %v1251_v17 = vpop.permute.xlu0 %1250 }
 0x131   : > { %v1512_v7 = vsel %vm1494_vm10, %v1479_v53, %v1251_v17 }
 0x132   : > { %1326 = vrot.lane.b32.xlu2 %v2966_v55, %s2199_s9  ;;  %v1545_v10 = vsel %vm1527_vm11, %v1512_v7, %v1283_v39 }
 0x134   : > { %1318 = vrot.lane.b32.xlu1 %v2526_v54, %s2199_s9  ;;  %v1267_v52 = vpop.permute.xlu2 %1266 }
 0x136   : > { %1350 = vrot.lane.b32.xlu0 %v2648_v32, %s2200_s10  ;;  %v1259_v61 = vpop.permute.xlu1 %1258 }
 0x138   : > { %v1291_v30 = vpop.permute.xlu0 %1290 }
 0x13a   : > { %1206 = vrot.lane.b32.xlu2 %v2385_v47, %s2196_s30  ;;  %v1487_v47 = vsel %vm1461_vm9, %v1454_v9, %v2913_v4 }
 0x13b   : > { %v1520_v19 = vsel %vm1494_vm10, %v1487_v47, %v1259_v61 }
 0x13c   : > { %1358 = vrot.lane.b32.xlu1 %v1088_v29, %s2200_s10  ;;  %v1307_v51 = vpop.permute.xlu2 %1306 }
 0x13e   : > { %1214 = vrot.lane.b32.xlu0 %v2448_v6, %s2196_s30  ;;  %v1315_v43 = vpop.permute.xlu1 %1314  ;;  %v1553_v6 = vsel %vm1527_vm11, %v1520_v19, %v1291_v30  ;;  %v3335_v30 = vld [vmem:[#allocation2_spill] sm:$0xff] }
 0x13f   : > { %v1578_v31 = vsel %vm1560_vm12, %v1545_v10, %v1315_v43  ;;  %v1586_v4 = vsel %vm1560_vm12, %v1553_v6, %v1323_v3  ;;  %v1463_v3 = vsel %vm1461_vm9, %v2800_v41, %v1203_v8 }
 0x140   : > { %v1347_v49 = vpop.permute.xlu0 %1346 }
 0x141   : > { %v1611_v36 = vsel %vm1593_vm13, %v1578_v31, %v1347_v49 }
 0x142   : > { %2099 = vmatmul.msk.bf16.vlgmr.msra.gmra.mxu2 %vm1662_vm14, %v1611_v36  ;;  %1246 = vrot.lane.b32.xlu2 %v2601_v50, %s2197_s7 }
 0x144   : > { %1238 = vrot.lane.b32.xlu1 %v2585_v37, %s2197_s7  ;;  %v1221_v23 = vpop.permute.xlu2 %1220 }
 0x146   : > { %1270 = vrot.lane.b32.xlu0 %v2305_v0, %s2198_s8  ;;  %v1355_v48 = vpop.permute.xlu1 %1354 }
 0x147   : > { %v1619_v39 = vsel %vm1593_vm13, %v1586_v4, %v1355_v48  ;;  %v3337_v48 = vld [vmem:[#allocation4_spill] sm:$0xff] }
 0x148   : > { %v1235_v62 = vpop.permute.xlu0 %1234  ;;  %2103 = vmatmul.msk.bf16.vlgmr.msra.gmra.mxu3 %vm1662_vm14, %v1619_v39  ;;  %v3338_v39 = vld [vmem:[#allocation3_spill] sm:$0xff] }
 0x149   : > { %v1496_v63 = vsel %vm1494_vm10, %v1463_v3, %v1235_v62 }
 0x14a   : > { %1302 = vrot.lane.b32.xlu2 %v2334_v33, %s2199_s9  ;;  %v1529_v1 = vsel %vm1527_vm11, %v1496_v63, %v1267_v52 }
 0x14c   : > { %1278 = vrot.lane.b32.xlu1 %v2401_v2, %s2198_s8  ;;  %v1261_v50 = vpop.permute.xlu2 %1260 }
 0x14e   : > { %1310 = vrot.lane.b32.xlu0 %v2431_v45, %s2199_s9  ;;  %v1243_v37 = vpop.permute.xlu1 %1242 }
 0x14f   : > { %v1504_v8 = vsel %vm1494_vm10, %v1471_v14, %v1243_v37 }
 0x150   : > { %v1275_v0 = vpop.permute.xlu0 %1274 }
 0x152   : > { %1342 = vrot.lane.b32.xlu2 %v2611_v13, %s2200_s10 }
 0x154   : > { %1334 = vrot.lane.b32.xlu1 %v3332_v42, %s2200_s10  ;;  %v1317_v34 = vpop.permute.xlu2 %1316 }
 0x156   : > { %1224 = vrot.lane.b32.xlu0 %v2526_v54, %s2196_s30  ;;  %v1299_v2 = vpop.permute.xlu1 %1298  ;;  %v1537_v54 = vsel %vm1527_vm11, %v1504_v8, %v1275_v0 }
 0x157   : > { %v1562_v41 = vsel %vm1560_vm12, %v1529_v1, %v1299_v2  ;;  %v1570_v5 = vsel %vm1560_vm12, %v1537_v54, %v1307_v51  ;;  %v1481_v51 = vsel %vm1461_vm9, %v2858_v16, %v1221_v23 }
 0x158   : > { %v1331_v38 = vpop.permute.xlu0 %1330 }
 0x159   : > { %v1595_v11 = vsel %vm1593_vm13, %v1562_v41, %v1331_v38 }
 0x15a   : > { %2091 = vmatmul.msk.bf16.vlgmr.msra.gmra.mxu0 %vm1662_vm14, %v1595_v11  ;;  %1256 = vrot.lane.b32.xlu2 %v2648_v32, %s2197_s7 }
 0x15c   : > { %1232 = vrot.lane.b32.xlu1 %v2966_v55, %s2196_s30  ;;  %v1357_v17 = vpop.permute.xlu2 %1356  ;;  %v3333_v55 = vld [vmem:[#allocation5_spill] sm:$0xff] }
 0x15e   : > { %1264 = vrot.lane.b32.xlu0 %v1088_v29, %s2197_s7  ;;  %v1339_v12 = vpop.permute.xlu1 %1338 }
 0x15f   : > { %v1603_v52 = vsel %vm1593_vm13, %v1570_v5, %v1339_v12 }
 0x160   : > { %v1229_v21 = vpop.permute.xlu0 %1228  ;;  %2095 = vmatmul.msk.bf16.vlgmr.msra.gmra.mxu1 %vm1662_vm14, %v1603_v52 }
 0x161   : > { %v1489_v53 = vsel %vm1461_vm9, %v2942_v28, %v1229_v21 }
 0x162   : > { %1296 = vrot.lane.b32.xlu2 %v2283_v26, %s2198_s8  ;;  %v3336_v26 = vld [vmem:[#allocation6_spill] sm:$0xff]  ;;  %v1522_v7 = vsel %vm1494_vm10, %v1489_v53, %v1261_v50 }
 0x164   : > { %1288 = vrot.lane.b32.xlu1 %v2518_v44, %s2198_s8  ;;  %v1237_v32 = vpop.permute.xlu2 %1236 }
 0x166   : > { %1320 = vrot.lane.b32.xlu0 %v3333_v55, %s2199_s9  ;;  %v1253_v60 = vpop.permute.xlu1 %1252 }
 0x167   : > { %v1514_v43 = vsel %vm1494_vm10, %v1481_v51, %v1253_v60 }
 0x168   : > { %v1285_v61 = vpop.permute.xlu0 %1284 }
 0x169   : > { %v1547_v31 = vsel %vm1527_vm11, %v1514_v43, %v1285_v61 }
 0x16a   : > { %1352 = vrot.lane.b32.xlu2 %v3334_v56, %s2200_s10  ;;  %v1580_v49 = vsel %vm1560_vm12, %v1547_v31, %v1317_v34 }
 0x16c   : > { %1328 = vrot.lane.b32.xlu1 %v3335_v30, %s2199_s9  ;;  %v1277_v29 = vpop.permute.xlu2 %1276 }
 0x16e   : > { %1360 = vrot.lane.b32.xlu0 %v3336_v26, %s2200_s10  ;;  %v1293_v44 = vpop.permute.xlu1 %1292 }
 0x16f   : > { %v1555_v9 = vsel %vm1527_vm11, %v1522_v7, %v1293_v44 }
 0x170   : > { %v1325_v10 = vpop.permute.xlu0 %1324 }
 0x171   : > { %v1588_v28 = vsel %vm1560_vm12, %v1555_v9, %v1325_v10 }
 0x172   : > { %v1621_v47 = vsel %vm1593_vm13, %v1588_v28, %v1357_v17  ;;  %1216 = vrot.lane.b32.xlu2 %v2431_v45, %s2196_s30 }
 0x173   : > { %2104 = vmatmul.msk.bf16.gmra.mxu3 %vm1662_vm14, %v1621_v47 }
 0x174   : > { %1208 = vrot.lane.b32.xlu1 %v2334_v33, %s2196_s30  ;;  %v1333_v16 = vpop.permute.xlu2 %1332  ;;  %s3141_s30 = scalar_lea.vmem %s3312_s6, %s2109_s23 }
 0x176   : > { %1240 = vrot.lane.b32.xlu0 %v3332_v42, %s2197_s7  ;;  %v1349_v19 = vpop.permute.xlu1 %1348 }
 0x177   : > { %v1613_v36 = vsel %vm1593_vm13, %v1580_v49, %v1349_v19 }
 0x178   : > { %v1205_v6 = vpop.permute.xlu0 %1204  ;;  %2100 = vmatmul.msk.bf16.gmra.mxu2 %vm1662_vm14, %v1613_v36 }
 0x179   : > { %v1465_v4 = vsel %vm1461_vm9, %v2868_v40, %v1205_v6 }
 0x17a   : > { %1272 = vrot.lane.b32.xlu2 %v2338_v35, %s2198_s8 }
 0x17c   : > { %1248 = vrot.lane.b32.xlu1 %v2611_v13, %s2197_s7  ;;  %v1231_v45 = vpop.permute.xlu2 %1230  ;;  %v1498_v13 = vsel %vm1494_vm10, %v1465_v4, %v1237_v32 }
 0x17d   : > { %v1491_v52 = vsel %vm1461_vm9, %v2956_v59, %v1231_v45 }
 0x17e   : > { %1280 = vrot.lane.b32.xlu0 %v2435_v46, %s2198_s8  ;;  %v1213_v33 = vpop.permute.xlu1 %1212 }
 0x17f   : > { %v1473_v62 = vsel %vm1461_vm9, %v2900_v18, %v1213_v33 }
 0x180   : > { %v1245_v23 = vpop.permute.xlu0 %1244 }
 0x181   : > { %v1506_v3 = vsel %vm1494_vm10, %v1473_v62, %v1245_v23 }
 0x182   : > { %1312 = vrot.lane.b32.xlu2 %v3337_v48, %s2199_s9  ;;  %v1539_v42 = vsel %vm1527_vm11, %v1506_v3, %v1277_v29 }
 0x184   : > { %1304 = vrot.lane.b32.xlu1 %v3338_v39, %s2199_s9  ;;  %v1287_v37 = vpop.permute.xlu2 %1286 }
 0x186   : > { %1336 = vrot.lane.b32.xlu0 %v2590_v58, %s2200_s10  ;;  %v1269_v35 = vpop.permute.xlu1 %1268  ;;  %v3339_v58 = vld [vmem:[#allocation8_spill] sm:$0xff] }
 0x187   : > { %v1531_v46 = vsel %vm1527_vm11, %v1498_v13, %v1269_v35 }
 0x188   : > { %v1301_v50 = vpop.permute.xlu0 %1300 }
 0x189   : > { %v1564_v0 = vsel %vm1560_vm12, %v1531_v46, %v1301_v50 }
 0x18a   : > { %v1597_v40 = vsel %vm1593_vm13, %v1564_v0, %v1333_v16 }
 0x18b   : > { %2092 = vmatmul.msk.bf16.gmra.mxu0 %vm1662_vm14, %v1597_v40 }
 0x18c   : > { %1344 = vrot.lane.b32.xlu1 %v3339_v58, %s2200_s10  ;;  %v1327_v1 = vpop.permute.xlu2 %1326 }
 0x18e   : > { %v1309_v63 = vpop.permute.xlu1 %1308 }
 0x18f   : > { %v1572_v34 = vsel %vm1560_vm12, %v1539_v42, %v1309_v63 }
 0x190   : > { %v1341_v2 = vpop.permute.xlu0 %1340 }
 0x191   : > { %v1605_v18 = vsel %vm1593_vm13, %v1572_v34, %v1341_v2 }
 0x192   : > { %2096 = vmatmul.msk.bf16.gmra.mxu1 %vm1662_vm14, %v1605_v18 }
 0x194   : > { %v1207_v8 = vpop.permute.xlu2 %1206 }
 0x195   : > { %v1467_v10 = vsel %vm1461_vm9, %v2880_v15, %v1207_v8  ;;  %v3129_v15 = vld [vmem:[%s3311_s5] ss:$0 sm:$0xff] }
 0x196   : > { %v1223_v14 = vpop.permute.xlu1 %1222 }
 0x197   : > { %v1483_v11 = vsel %vm1461_vm9, %v2922_v22, %v1223_v14 }
 0x198   : > { %v1255_v41 = vpop.permute.xlu0 %1254 }
 0x199   : > { %v1516_v17 = vsel %vm1494_vm10, %v1483_v11, %v1255_v41 }
 0x19a   : > { %v1549_v5 = vsel %vm1527_vm11, %v1516_v17, %v1287_v37 }
 0x19c   : > { %v1247_v21 = vpop.permute.xlu2 %1246 }
 0x19e   : > { %v1263_v38 = vpop.permute.xlu1 %1262 }
 0x19f   : > { %v1524_v55 = vsel %vm1494_vm10, %v1491_v52, %v1263_v38 }
 0x1a0   : > { %v1295_v54 = vpop.permute.xlu0 %1294 }
 0x1a1   : > { %v1557_v22 = vsel %vm1527_vm11, %v1524_v55, %v1295_v54 }
 0x1a2   : > { %v1590_v53 = vsel %vm1560_vm12, %v1557_v22, %v1327_v1 }
 0x1a4   : > { %v1303_v59 = vpop.permute.xlu2 %1302 }
 0x1a6   : > { %v1319_v12 = vpop.permute.xlu1 %1318 }
 0x1a7   : > { %v1582_v32 = vsel %vm1560_vm12, %v1549_v5, %v1319_v12 }
 0x1a8   : > { %v1351_v60 = vpop.permute.xlu0 %1350 }
 0x1a9   : > { %v1615_v61 = vsel %vm1593_vm13, %v1582_v32, %v1351_v60 }
 0x1aa   : > { %2101 = vmatmul.msk.bf16.gmra.mxu2 %vm1662_vm14, %v1615_v61 }
 0x1ac   : > { %v1343_v7 = vpop.permute.xlu2 %1342 }
 0x1ae   : > { %v1359_v56 = vpop.permute.xlu1 %1358 }
 0x1af   : > { %v1623_v30 = vsel %vm1593_vm13, %v1590_v53, %v1359_v56 }
 0x1b0   : > { %v1215_v29 = vpop.permute.xlu0 %1214  ;;  %2105 = vmatmul.msk.bf16.gmra.mxu3 %vm1662_vm14, %v1623_v30 }
 0x1b1   : > { %v1475_v51 = vsel %vm1461_vm9, %v2837_v25, %v1215_v29  ;;  %v3122_v25 = vld [vmem:[%s3310_s4] ss:$0 sm:$0xff] }
 0x1b2   : > { %v1508_v43 = vsel %vm1494_vm10, %v1475_v51, %v1247_v21 }
 0x1b4   : > { %v1257_v36 = vpop.permute.xlu2 %1256 }
 0x1b6   : > { %v1239_v26 = vpop.permute.xlu1 %1238 }
 0x1b7   : > { %v1500_v47 = vsel %vm1494_vm10, %v1467_v10, %v1239_v26 }
 0x1b8   : > { %v1271_v44 = vpop.permute.xlu0 %1270 }
 0x1b9   : > { %v1533_v49 = vsel %vm1527_vm11, %v1500_v47, %v1271_v44 }
 0x1ba   : > { %v1566_v23 = vsel %vm1560_vm12, %v1533_v49, %v1303_v59 }
 0x1bc   : > { %v1297_v40 = vpop.permute.xlu2 %1296 }
 0x1be   : > { %v1279_v9 = vpop.permute.xlu1 %1278 }
 0x1bf   : > { %v1541_v28 = vsel %vm1527_vm11, %v1508_v43, %v1279_v9 }
 0x1c0   : > { %v1311_v31 = vpop.permute.xlu0 %1310 }
 0x1c1   : > { %v1574_v16 = vsel %vm1560_vm12, %v1541_v28, %v1311_v31 }
 0x1c2   : > { %v1607_v19 = vsel %vm1593_vm13, %v1574_v16, %v1343_v7 }
 0x1c3   : > { %2097 = vmatmul.msk.bf16.gmra.mxu1 %vm1662_vm14, %v1607_v19 }
 0x1c4   : > { %v1353_v12 = vpop.permute.xlu2 %1352 }
 0x1c5   : > { %v1748_v6 = vpop.f32.mrf.mxu2 }
 0x1c6   : > { %v1808_v33 = vmul.f32 %v3122_v25, %v1748_v6  ;;  %v1335_v45 = vpop.permute.xlu1 %1334 }
 0x1c7   : > { %v1599_v48 = vsel %vm1593_vm13, %v1566_v23, %v1335_v45 }
 0x1c8   : > { %v1844_v4 = vadd.f32 %v3129_v15, %v1808_v33  ;;  %v1225_v39 = vpop.permute.xlu0 %1224  ;;  %2093 = vmatmul.msk.bf16.gmra.mxu0 %vm1662_vm14, %v1599_v48 }
 0x1c9   : > { %v1485_v34 = vsel %vm1461_vm9, %v2938_v57, %v1225_v39 }
 0x1ca   : > { %v1876_v35 = vmax.f32 %v1844_v4, 0.0  ;;  %v1518_v41 = vsel %vm1494_vm10, %v1485_v34, %v1257_v36 }
 0x1cb   : > { %v1768_v13 = vpop.f32.mrf.mxu3 }
 0x1cc   : > { %1908 = vst.msk [vmem:[%s3141_s30 + $0x80] sm:$0xff] %vm1362_vm6, %v1876_v35  ;;  %v1816_v46 = vmul.f32 %v3122_v25, %v1768_v13  ;;  %v1217_v31 = vpop.permute.xlu2 %1216 }
 0x1cd   : > { %v1750_v62 = vpop.f32.mrf.mxu2  ;;  %v1477_v4 = vsel %vm1461_vm9, %v2904_v27, %v1217_v31 }
 0x1ce   : > { %v1852_v50 = vadd.f32 %v3129_v15, %v1816_v46  ;;  %v1809_v37 = vmul.f32 %v3122_v25, %v1750_v62  ;;  %v1233_v0 = vpop.permute.xlu1 %1232 }
 0x1cf   : > { %v1493_v11 = vsel %vm1461_vm9, %v2894_v20, %v1233_v0 }
 0x1d0   : > { %v1884_v3 = vmax.f32 %v1852_v50, 0.0  ;;  %v1845_v58 = vadd.f32 %v3129_v15, %v1809_v37  ;;  %v1265_v63 = vpop.permute.xlu0 %1264 }
 0x1d1   : > { %v1526_v32 = vsel %vm1494_vm10, %v1493_v11, %v1265_v63 }
 0x1d2   : > { %1916 = vst.msk [vmem:[%s3141_s30 + $0xc0] sm:$0xff] %vm1362_vm6, %v1884_v3  ;;  %v1877_v42 = vmax.f32 %v1845_v58, 0.0  ;;  %v1559_v22 = vsel %vm1527_vm11, %v1526_v32, %v1297_v40 }
 0x1d3   : > { %v1770_v2 = vpop.f32.mrf.mxu3 }
 0x1d4   : > { %1909 = vst.msk [vmem:[%s3141_s30 + $0x88] sm:$0xff] %vm1362_vm6, %v1877_v42  ;;  %v1817_v18 = vmul.f32 %v3122_v25, %v1770_v2  ;;  %v1273_v6 = vpop.permute.xlu2 %1272 }
 0x1d6   : > { %v1853_v1 = vadd.f32 %v3129_v15, %v1817_v18  ;;  %v1289_v14 = vpop.permute.xlu1 %1288 }
 0x1d7   : > { %v1551_v8 = vsel %vm1527_vm11, %v1518_v41, %v1289_v14  ;;  %v1708_v38 = vpop.f32.mrf.mxu0 }
 0x1d8   : > { %v1885_v54 = vmax.f32 %v1853_v1, 0.0  ;;  %v1792_v57 = vmul.f32 %v3122_v25, %v1708_v38  ;;  %v1321_v17 = vpop.permute.xlu0 %1320 }
 0x1d9   : > { %v1584_v5 = vsel %vm1560_vm12, %v1551_v8, %v1321_v17 }
 0x1da   : > { %1917 = vst.msk [vmem:[%s3141_s30 + $0xc8] sm:$0xff] %vm1362_vm6, %v1885_v54  ;;  %v1828_v52 = vadd.f32 %v3129_v15, %v1792_v57  ;;  %v1617_v21 = vsel %vm1593_vm13, %v1584_v5, %v1353_v12 }
 0x1db   : > { %2102 = vmatmul.msk.bf16.gmra.mxu2 %vm1662_vm14, %v1617_v21 }
 0x1dc   : > { %v1860_v55 = vmax.f32 %v1828_v52, 0.0  ;;  %v1313_v37 = vpop.permute.xlu2 %1312 }
 0x1dd   : > { %v1728_v20 = vpop.f32.mrf.mxu1 }
 0x1de   : > { %1892 = vst.msk [vmem:[%s3141_s30] sm:$0xff] %vm1362_vm6, %v1860_v55  ;;  %v1800_v60 = vmul.f32 %v3122_v25, %v1728_v20  ;;  %v1329_v61 = vpop.permute.xlu1 %1328 }
 0x1df   : > { %v1592_v56 = vsel %vm1560_vm12, %v1559_v22, %v1329_v61  ;;  %v1710_v53 = vpop.f32.mrf.mxu0 }
 0x1e0   : > { %v1836_v30 = vadd.f32 %v3129_v15, %v1800_v60  ;;  %v1793_v29 = vmul.f32 %v3122_v25, %v1710_v53  ;;  %v1361_v59 = vpop.permute.xlu0 %1360 }
 0x1e1   : > { %v1625_v26 = vsel %vm1593_vm13, %v1592_v56, %v1361_v59 }
 0x1e2   : > { %v1868_v44 = vmax.f32 %v1836_v30, 0.0  ;;  %v1829_v7 = vadd.f32 %v3129_v15, %v1793_v29  ;;  %2106 = vmatmul.msk.bf16.gmra.mxu3 %vm1662_vm14, %v1625_v26 }
 0x1e4   : > { %1900 = vst.msk [vmem:[%s3141_s30 + $0x40] sm:$0xff] %vm1362_vm6, %v1868_v44  ;;  %v1861_v51 = vmax.f32 %v1829_v7, 0.0 }
 0x1e5   : > { %v1730_v9 = vpop.f32.mrf.mxu1 }
 0x1e6   : > { %1893 = vst.msk [vmem:[%s3141_s30 + $0x8] sm:$0xff] %vm1362_vm6, %v1861_v51  ;;  %v1801_v43 = vmul.f32 %v3122_v25, %v1730_v9  ;;  %v1209_v10 = vpop.permute.xlu1 %1208 }
 0x1e7   : > { %v1469_v49 = vsel %vm1461_vm9, %v2819_v24, %v1209_v10 }
 0x1e8   : > { %v1837_v28 = vadd.f32 %v3129_v15, %v1801_v43  ;;  %v1241_v47 = vpop.permute.xlu0 %1240 }
 0x1e9   : > { %v1502_v33 = vsel %vm1494_vm10, %v1469_v49, %v1241_v47 }
 0x1ea   : > { %v1869_v16 = vmax.f32 %v1837_v28, 0.0  ;;  %v1535_v45 = vsel %vm1527_vm11, %v1502_v33, %v1273_v6 }
 0x1ec   : > { %1901 = vst.msk [vmem:[%s3141_s30 + $0x48] sm:$0xff] %vm1362_vm6, %v1869_v16 }
 0x1ee   : > { %v1249_v19 = vpop.permute.xlu1 %1248 }
 0x1ef   : > { %v1510_v13 = vsel %vm1494_vm10, %v1477_v4, %v1249_v19 }
 0x1f0   : > { %v1281_v36 = vpop.permute.xlu0 %1280 }
 0x1f1   : > { %v1543_v50 = vsel %vm1527_vm11, %v1510_v13, %v1281_v36 }
 0x1f2   : > { %v1576_v3 = vsel %vm1560_vm12, %v1543_v50, %v1313_v37 }
 0x1f6   : > { %v1773_v23 = vpop.f32.mrf.mxu3  ;;  %v1305_v48 = vpop.permute.xlu1 %1304 }
 0x1f7   : > { %v1818_v39 = vmul.f32 %v3122_v25, %v1773_v23  ;;  %v1568_v35 = vsel %vm1560_vm12, %v1535_v45, %v1305_v48 }
 0x1f8   : > { %v1337_v46 = vpop.permute.xlu0 %1336 }
 0x1f9   : > { %v1854_v24 = vadd.f32 %v3129_v15, %v1818_v39  ;;  %v1601_v62 = vsel %vm1593_vm13, %v1568_v35, %v1337_v46 }
 0x1fa   : > { %2094 = vmatmul.msk.bf16.gmra.mxu0 %vm1662_vm14, %v1601_v62 }
 0x1fb   : > { %v1886_v0 = vmax.f32 %v1854_v24, 0.0  ;;  %v1753_v40 = vpop.f32.mrf.mxu2 }
 0x1fc   : > { %v1810_v27 = vmul.f32 %v3122_v25, %v1753_v40 }
 0x1fd   : > { %1918 = vst.msk [vmem:[%s3141_s30 + $0xd0] sm:$0xff] %vm1362_vm6, %v1886_v0 }
 0x1fe   : > { %v1846_v58 = vadd.f32 %v3129_v15, %v1810_v27  ;;  %v1775_v63 = vpop.f32.mrf.mxu3  ;;  %v1345_v42 = vpop.permute.xlu1 %1344 }
 0x1ff   : > { %v1819_v34 = vmul.f32 %v3122_v25, %v1775_v63  ;;  %v1609_v2 = vsel %vm1593_vm13, %v1576_v3, %v1345_v42 }
 0x200   : > { %v1878_v18 = vmax.f32 %v1846_v58, 0.0  ;;  %2098 = vmatmul.msk.bf16.gmra.mxu1 %vm1662_vm14, %v1609_v2 }
 0x201   : > { %v1855_v1 = vadd.f32 %v3129_v15, %v1819_v34 }
 0x202   : > { %1910 = vst.msk [vmem:[%s3141_s30 + $0x90] sm:$0xff] %vm1362_vm6, %v1878_v18 }
 0x203   : > { %v1887_v14 = vmax.f32 %v1855_v1, 0.0  ;;  %v1755_v41 = vpop.f32.mrf.mxu2 }
 0x204   : > { %v1811_v8 = vmul.f32 %v3122_v25, %v1755_v41 }
 0x205   : > { %1919 = vst.msk [vmem:[%s3141_s30 + $0xd8] sm:$0xff] %vm1362_vm6, %v1887_v14 }
 0x206   : > { %v1847_v38 = vadd.f32 %v3129_v15, %v1811_v8 }
 0x208   : > { %v1879_v11 = vmax.f32 %v1847_v38, 0.0  ;;  %v1713_v54 = vpop.f32.mrf.mxu0 }
 0x209   : > { %v1794_v57 = vmul.f32 %v3122_v25, %v1713_v54 }
 0x20a   : > { %1911 = vst.msk [vmem:[%s3141_s30 + $0x98] sm:$0xff] %vm1362_vm6, %v1879_v11 }
 0x20b   : > { %v1830_v17 = vadd.f32 %v3129_v15, %v1794_v57 }
 0x20d   : > { %v1862_v12 = vmax.f32 %v1830_v17, 0.0 }
 0x20f   : > { %1894 = vst.msk [vmem:[%s3141_s30 + $0x10] sm:$0xff] %vm1362_vm6, %v1862_v12  ;;  %v1733_v5 = vpop.f32.mrf.mxu1 }
 0x210   : > { %v1802_v52 = vmul.f32 %v3122_v25, %v1733_v5  ;;  %v1715_v21 = vpop.f32.mrf.mxu0 }
 0x211   : > { %v1795_v32 = vmul.f32 %v3122_v25, %v1715_v21 }
 0x212   : > { %v1838_v55 = vadd.f32 %v3129_v15, %v1802_v52 }
 0x213   : > { %v1831_v20 = vadd.f32 %v3129_v15, %v1795_v32 }
 0x214   : > { %v1870_v60 = vmax.f32 %v1838_v55, 0.0 }
 0x215   : > { %v1863_v61 = vmax.f32 %v1831_v20, 0.0 }
 0x216   : > { %1902 = vst.msk [vmem:[%s3141_s30 + $0x50] sm:$0xff] %vm1362_vm6, %v1870_v60 }
 0x217   : > { %1895 = vst.msk [vmem:[%s3141_s30 + $0x18] sm:$0xff] %vm1362_vm6, %v1863_v61  ;;  %v1735_v22 = vpop.f32.mrf.mxu1 }
 0x218   : > { %v1803_v56 = vmul.f32 %v3122_v25, %v1735_v22 }
 0x21a   : > { %v1839_v53 = vadd.f32 %v3129_v15, %v1803_v56 }
 0x21c   : > { %v1871_v30 = vmax.f32 %v1839_v53, 0.0 }
 0x21e   : > { %1903 = vst.msk [vmem:[%s3141_s30 + $0x58] sm:$0xff] %vm1362_vm6, %v1871_v30 }
 0x22d   : > { %v1758_v29 = vpop.f32.mrf.mxu2 }
 0x22e   : > { %v1812_v59 = vmul.f32 %v3122_v25, %v1758_v29 }
 0x230   : > { %v1848_v26 = vadd.f32 %v3129_v15, %v1812_v59 }
 0x232   : > { %v1880_v44 = vmax.f32 %v1848_v26, 0.0 }
 0x233   : > { %v1778_v7 = vpop.f32.mrf.mxu3 }
 0x234   : > { %1912 = vst.msk [vmem:[%s3141_s30 + $0xa0] sm:$0xff] %vm1362_vm6, %v1880_v44  ;;  %v1820_v51 = vmul.f32 %v3122_v25, %v1778_v7 }
 0x235   : > { %v1760_v9 = vpop.f32.mrf.mxu2 }
 0x236   : > { %v1856_v43 = vadd.f32 %v3129_v15, %v1820_v51  ;;  %v1813_v10 = vmul.f32 %v3122_v25, %v1760_v9 }
 0x238   : > { %v1888_v28 = vmax.f32 %v1856_v43, 0.0  ;;  %v1849_v47 = vadd.f32 %v3129_v15, %v1813_v10 }
 0x23a   : > { %1920 = vst.msk [vmem:[%s3141_s30 + $0xe0] sm:$0xff] %vm1362_vm6, %v1888_v28  ;;  %v1881_v31 = vmax.f32 %v1849_v47, 0.0 }
 0x23b   : > { %v1780_v16 = vpop.f32.mrf.mxu3 }
 0x23c   : > { %1913 = vst.msk [vmem:[%s3141_s30 + $0xa8] sm:$0xff] %vm1362_vm6, %v1881_v31  ;;  %v1821_v19 = vmul.f32 %v3122_v25, %v1780_v16 }
 0x23e   : > { %v1857_v49 = vadd.f32 %v3129_v15, %v1821_v19 }
 0x240   : > { %v1889_v36 = vmax.f32 %v1857_v49, 0.0  ;;  %v1738_v6 = vpop.f32.mrf.mxu1 }
 0x241   : > { %v1804_v33 = vmul.f32 %v3122_v25, %v1738_v6 }
 0x242   : > { %1921 = vst.msk [vmem:[%s3141_s30 + $0xe8] sm:$0xff] %vm1362_vm6, %v1889_v36 }
 0x243   : > { %v1840_v45 = vadd.f32 %v3129_v15, %v1804_v33 }
 0x245   : > { %v1872_v23 = vmax.f32 %v1840_v45, 0.0  ;;  %v1718_v48 = vpop.f32.mrf.mxu0 }
 0x246   : > { %v1796_v4 = vmul.f32 %v3122_v25, %v1718_v48 }
 0x247   : > { %1904 = vst.msk [vmem:[%s3141_s30 + $0x60] sm:$0xff] %vm1362_vm6, %v1872_v23 }
 0x248   : > { %v1832_v39 = vadd.f32 %v3129_v15, %v1796_v4  ;;  %v1740_v35 = vpop.f32.mrf.mxu1 }
 0x249   : > { %v1805_v13 = vmul.f32 %v3122_v25, %v1740_v35 }
 0x24a   : > { %v1864_v46 = vmax.f32 %v1832_v39, 0.0 }
 0x24b   : > { %v1841_v24 = vadd.f32 %v3129_v15, %v1805_v13 }
 0x24c   : > { %1896 = vst.msk [vmem:[%s3141_s30 + $0x20] sm:$0xff] %vm1362_vm6, %v1864_v46 }
 0x24d   : > { %v1873_v62 = vmax.f32 %v1841_v24, 0.0  ;;  %v1720_v50 = vpop.f32.mrf.mxu0 }
 0x24e   : > { %v1797_v37 = vmul.f32 %v3122_v25, %v1720_v50 }
 0x24f   : > { %1905 = vst.msk [vmem:[%s3141_s30 + $0x68] sm:$0xff] %vm1362_vm6, %v1873_v62 }
 0x250   : > { %v1833_v0 = vadd.f32 %v3129_v15, %v1797_v37 }
 0x252   : > { %v1865_v40 = vmax.f32 %v1833_v0, 0.0 }
 0x254   : > { %1897 = vst.msk [vmem:[%s3141_s30 + $0x28] sm:$0xff] %vm1362_vm6, %v1865_v40 }
 0x25e   : > { %v1763_v27 = vpop.f32.mrf.mxu2 }
 0x25f   : > { %v1814_v3 = vmul.f32 %v3122_v25, %v1763_v27 }
 0x261   : > { %v1850_v58 = vadd.f32 %v3129_v15, %v1814_v3 }
 0x263   : > { %v1882_v63 = vmax.f32 %v1850_v58, 0.0 }
 0x265   : > { %1914 = vst.msk [vmem:[%s3141_s30 + $0xb0] sm:$0xff] %vm1362_vm6, %v1882_v63  ;;  %v1783_v42 = vpop.f32.mrf.mxu3 }
 0x266   : > { %v1822_v34 = vmul.f32 %v3122_v25, %v1783_v42  ;;  %v1765_v2 = vpop.f32.mrf.mxu2 }
 0x267   : > { %v1815_v18 = vmul.f32 %v3122_v25, %v1765_v2 }
 0x268   : > { %v1858_v1 = vadd.f32 %v3129_v15, %v1822_v34 }
 0x269   : > { %v1851_v14 = vadd.f32 %v3129_v15, %v1815_v18 }
 0x26a   : > { %v1890_v41 = vmax.f32 %v1858_v1, 0.0 }
 0x26b   : > { %v1883_v8 = vmax.f32 %v1851_v14, 0.0 }
 0x26c   : > { %1922 = vst.msk [vmem:[%s3141_s30 + $0xf0] sm:$0xff] %vm1362_vm6, %v1890_v41 }
 0x26d   : > { %1915 = vst.msk [vmem:[%s3141_s30 + $0xb8] sm:$0xff] %vm1362_vm6, %v1883_v8  ;;  %v1785_v38 = vpop.f32.mrf.mxu3 }
 0x26e   : > { %v1823_v11 = vmul.f32 %v3122_v25, %v1785_v38 }
 0x270   : > { %v1859_v54 = vadd.f32 %v3129_v15, %v1823_v11 }
 0x272   : > { %v1891_v57 = vmax.f32 %v1859_v54, 0.0 }
 0x274   : > { %1923 = vst.msk [vmem:[%s3141_s30 + $0xf8] sm:$0xff] %vm1362_vm6, %v1891_v57 }
 0x277   : > { %v1723_v17 = vpop.f32.mrf.mxu0 }
 0x278   : > { %v1798_v12 = vmul.f32 %v3122_v25, %v1723_v17 }
 0x27a   : > { %v1834_v5 = vadd.f32 %v3129_v15, %v1798_v12 }
 0x27c   : > { %v1866_v52 = vmax.f32 %v1834_v5, 0.0 }
 0x27d   : > { %v1743_v21 = vpop.f32.mrf.mxu1 }
 0x27e   : > { %1898 = vst.msk [vmem:[%s3141_s30 + $0x30] sm:$0xff] %vm1362_vm6, %v1866_v52  ;;  %v1806_v32 = vmul.f32 %v3122_v25, %v1743_v21 }
 0x27f   : > { %v1725_v55 = vpop.f32.mrf.mxu0 }
 0x280   : > { %v1842_v20 = vadd.f32 %v3129_v15, %v1806_v32  ;;  %v1799_v60 = vmul.f32 %v3122_v25, %v1725_v55 }
 0x282   : > { %v1874_v61 = vmax.f32 %v1842_v20, 0.0  ;;  %v1835_v22 = vadd.f32 %v3129_v15, %v1799_v60 }
 0x284   : > { %1906 = vst.msk [vmem:[%s3141_s30 + $0x70] sm:$0xff] %vm1362_vm6, %v1874_v61  ;;  %v1867_v56 = vmax.f32 %v1835_v22, 0.0 }
 0x285   : > { %v1745_v53 = vpop.f32.mrf.mxu1 }
 0x286   : > { %1899 = vst.msk [vmem:[%s3141_s30 + $0x38] sm:$0xff] %vm1362_vm6, %v1867_v56  ;;  %v1807_v30 = vmul.f32 %v3122_v25, %v1745_v53 }
 0x288   : > { %v1843_v29 = vadd.f32 %v3129_v15, %v1807_v30 }
 0x28a   : > { %v1875_v59 = vmax.f32 %v1843_v29, 0.0 }
 0x28c   : > { %1907 = vst.msk [vmem:[%s3141_s30 + $0x78] sm:$0xff] %vm1362_vm6, %v1875_v59 }
 0x28d PF: > { %s16_s1 = sadd.s32 1, %s2190_s1   ;;  %s3340_s21 = smov %s2186_s22 }
 0x28e   : > { %p13_p5 = scmp.ge.s32.totalorder %s16_s1, 4   ;;  %s3341_s22 = smov %s3343_s2 }
 0x290   :  { %15 = sbr.rel (!%p13_p5) target bundleno = 2 (0x2), region = 80 }

// kernel: up_forward.4
= control target key start
LH: loop header
LB: loop body
LE: loop exit
PB: predicated region body
PF: predicated region fallthrough
CT: control target
= control target key end

     0   :  { %s3917_s11 = smov 0   ;;  %s3919_s4 = smov 0   ;;  %s6091_s0 = inlined_call_operand.vmem [shape: f32[2,16,16,4], index: 0, kind: input, shape index: {}, may-alias: {0,1,2}]   ;;  %s6092_s1 = inlined_call_operand.vmem [shape: f32[2,16,16,4], index: 1, kind: input, shape index: {}, may-alias: {0,1,2}]   ;;  %s6093_s2 = inlined_call_operand.vmem [shape: f32[2,16,16,4], index: 2, kind: input, shape index: {}, may-alias: {0,1,2}]   ;;  %s6094_s3 = inlined_call_operand.vmem [shape: f32[2,16,16,4], index: 3, kind: input, shape index: {}, may-alias: {3,4,5}]   ;;  %s6095_s4 = inlined_call_operand.vmem [shape: f32[2,16,16,4], index: 4, kind: input, shape index: {}, may-alias: {3,4,5}]   ;;  %s6096_s5 = inlined_call_operand.vmem [shape: f32[2,16,16,4], index: 5, kind: input, shape index: {}, may-alias: {3,4,5}]   ;;  %s6097_s6 = inlined_call_operand.vmem [shape: bf16[36,8], index: 6, kind: input, shape index: {}]   ;;  %s6098_s7 = inlined_call_operand.vmem [shape: bf16[36,8], index: 7, kind: input, shape index: {}]   ;;  %s6099_s8 = inlined_call_operand.vmem [shape: f32[1,8], index: 8, kind: input, shape index: {}]   ;;  %s6100_s9 = inlined_call_operand.vmem [shape: f32[1,8], index: 9, kind: input, shape index: {}]   ;;  %s6101_s10 = inlined_call_operand.vmem [shape: f32[2,16,16,8], index: 10, kind: output, shape index: {}]  }
   0x1   :  { %s3921_s5 = smov 0  }
   0x2 LB: > { %s32_s12 = sadd.s32 1, %s3847_s4  ;;  %p3710_p0 = scmp.ge.s32.totalorder %s3851_s5, 1  ;;  %s3851_s5 = sphi %s3921_s5, %s20_s5   ;;  %s3847_s4 = sphi %s3919_s4, %s6416_s4   ;;  %s3843_s11 = sphi %s3917_s11, %s6415_s11  }
   0x3   : > { %p34_p1 = scmp.ge.s32.totalorder %s32_s12, 2  ;;  %p480_p2 = scmp.lt.s32.totalorder %s3851_s5, 3 }
   0x5   : > { %s6418_s12 = smov (%p34_p1, %s32_s12), 0  ;;  %p481_p3 = pnand %p3710_p0, %p480_p2 }
   0x7   : > { %484 = sbr.rel (%p481_p3) target bundleno = 993 (0x3e1), region = 60 }
   0xc   : > { %v3853_v0 = vmov 0.0|0.0   ;;  %p591_p4 = scmp.lt.s32.totalorder %s3843_s11, 1  ;;  %vm1030_vm0 = vcmask 1040384   ;;  %vm1031_vm1 = vsmask.f32 256  ;;  %v6159_v5 = vmov 0 }
   0xd   : > { %v814_v1 = vunpack.c.l.b16 %v3853_v0  ;;  %vm3937_vm2 = vmand %vm1030_vm0, %vm1031_vm1  ;;  %vm1069_vm3 = vsmask.f32 7424  ;;  %s3854_s17 = smov 4   ;;  %vm1294_vm4 = vcmask 1046528   ;;  %s3855_s18 = smov 8   ;;  %vm3137_vm5 = vcmask 1041408  }
   0xe   : > { %s6420_s11 = smov (!%p591_p4, %s3843_s11), 1  ;;  %v6160_v5 = vsel %vm3937_vm2, 4294967295, %v6159_v5  ;;  %s3856_s19 = smov 12   ;;  %vm1633_vm6 = vcmask 31744   ;;  %vm1699_vm7 = vcmask 97280   ;;  %vm1666_vm8 = vcmask 64512  }
   0xf   : > { %v850_v2 = vpack.c.b16 %v814_v1, %v814_v1  ;;  %s3935_s13 = sshll.u32 %s6420_s11, 8  ;;  %6161 = vst [vmem:[#allocation2_spill] sm:$0xff] %v6160_v5  ;;  %s3857_s20 = smov 16   ;;  %vm1732_vm9 = vcmask 130048   ;;  %vm1798_vm10 = vcmask 195584   ;;  %vm1765_vm11 = vcmask 162816  }
  0x10   : > { %s3945_s16 = scalar_lea.vmem %s6091_s0, %s3935_s13  ;;  %s3858_s21 = smov 20   ;;  %vm1831_vm12 = vcmask 228352   ;;  %vm3104_vm13 = vcmask 293888   ;;  %vm1864_vm14 = vcmask 261120  }
  0x11   : > { %v869_v3 = vshrl.u32 %v850_v2, 16  ;;  %v872_v4 = vshll.u32 %v850_v2, 16  ;;  %v716_v7 = vld [vmem:[%s3945_s16 + $0x30] sm:$0xff]  ;;  %v717_v8 = vld [vmem:[%s3945_s16 + $0x38] sm:$0xff]  ;;  %v710_v14 = vld [vmem:[%s3945_s16] sm:$0xff]  ;;  %s3859_s22 = smov 24   ;;  %s4658_s26 = scalar_lea.vmem %s6094_s3, %s3935_s13 }
  0x12   : > { %v712_v9 = vld [vmem:[%s3945_s16 + $0x10] sm:$0xff]  ;;  %v750_v10 = vpack.c.bf16 %v716_v7, %v716_v7  ;;  %v751_v11 = vpack.c.bf16 %v717_v8, %v717_v8  ;;  %v713_v12 = vld [vmem:[%s3945_s16 + $0x18] sm:$0xff]  ;;  %v711_v15 = vld [vmem:[%s3945_s16 + $0x8] sm:$0xff]  ;;  %v744_v19 = vpack.c.bf16 %v710_v14, %v710_v14  ;;  %s3860_s23 = smov 28   ;;  %s3861_s27 = smov 32  }
  0x13   : > { %v871_v6 = vrot.slane %v869_v3, 7  ;;  %v746_v13 = vpack.c.bf16 %v712_v9, %v712_v9  ;;  %v747_v18 = vpack.c.bf16 %v713_v12, %v713_v12  ;;  %v718_v24 = vld [vmem:[%s3945_s16 + $0x40] sm:$0xff]  ;;  %v719_v25 = vld [vmem:[%s3945_s16 + $0x48] sm:$0xff]  ;;  %v745_v28 = vpack.c.bf16 %v711_v15, %v711_v15  ;;  %v720_v9 = vld [vmem:[%s3945_s16 + $0x50] sm:$0xff]  ;;  %s5891_s28 = scalar_lea.vmem %s6101_s10, %s3935_s13 }
  0x14   : > { %v822_v21 = vunpack.c.l.b16 %v750_v10  ;;  %v823_v22 = vunpack.c.l.b16 %v751_v11  ;;  %v816_v29 = vunpack.c.l.b16 %v744_v19  ;;  %v714_v30 = vld [vmem:[%s3945_s16 + $0x20] sm:$0xff]  ;;  %v752_v37 = vpack.c.bf16 %v718_v24, %v718_v24  ;;  %v715_v39 = vld [vmem:[%s3945_s16 + $0x28] sm:$0xff] }
  0x15   : > { %v874_v16 = vor.u32 %v872_v4, %v871_v6  ;;  %v3955_v17 = vsel %vm3937_vm2, %v871_v6, 0  ;;  %v818_v23 = vunpack.c.l.b16 %v746_v13  ;;  %v819_v27 = vunpack.c.l.b16 %v747_v18 }
  0x16   : > { %v1078_v20 = vshll.u32 %v3955_v17, 16  ;;  %v854_v34 = vpack.c.b16 %v823_v22, %v822_v21  ;;  %v817_v36 = vunpack.c.l.b16 %v745_v28  ;;  %v753_v38 = vpack.c.bf16 %v719_v25, %v719_v25 }
  0x17   : > { %v3962_v26 = vsel %vm3937_vm2, 0, %v874_v16  ;;  %v852_v35 = vpack.c.b16 %v819_v27, %v818_v23  ;;  %v748_v43 = vpack.c.bf16 %v714_v30, %v714_v30  ;;  %v824_v47 = vunpack.c.l.b16 %v752_v37  ;;  %v724_v37 = vld [vmem:[%s3945_s16 + $0x70] sm:$0xff] }
  0x18   : > { %6162 = vst [vmem:[#allocation3_spill] sm:$0xff] %v3962_v26  ;;  %v1071_v31 = vshrl.u32 %v3962_v26, 16  ;;  %v1073_v32 = vshll.u32 %v3962_v26, 16  ;;  %v1080_v33 = vrot.slane %v1078_v20, 1  ;;  %v897_v41 = vshrl.u32 %v854_v34, 16 }
  0x19   : > { %v900_v42 = vshll.u32 %v854_v34, 16  ;;  %v883_v44 = vshrl.u32 %v852_v35, 16  ;;  %v886_v45 = vshll.u32 %v852_v35, 16  ;;  %v851_v46 = vpack.c.b16 %v817_v36, %v816_v29 }
  0x1a   : > { %v1075_v40 = vrot.slane %v1073_v32, 1  ;;  %v899_v49 = vrot.slane %v897_v41, 7  ;;  %v825_v50 = vunpack.c.l.b16 %v753_v38  ;;  %v749_v51 = vpack.c.bf16 %v715_v39, %v715_v39  ;;  %v721_v32 = vld [vmem:[%s3945_s16 + $0x58] sm:$0xff] }
  0x1b   : > { %v885_v52 = vrot.slane %v883_v44, 7  ;;  %v876_v53 = vshrl.u32 %v851_v46, 16  ;;  %v879_v54 = vshll.u32 %v851_v46, 16  ;;  %v820_v55 = vunpack.c.l.b16 %v748_v43  ;;  %v722_v43 = vld [vmem:[%s3945_s16 + $0x60] sm:$0xff] }
  0x1c   : > { %v1076_v48 = vor.u32 %v1075_v40, %v1071_v31  ;;  %v902_v57 = vor.u32 %v900_v42, %v899_v49  ;;  %v3973_v58 = vsel %vm3937_vm2, %v899_v49, 0  ;;  %v855_v59 = vpack.c.b16 %v825_v50, %v824_v47  ;;  %v725_v42 = vld [vmem:[%s3945_s16 + $0x78] sm:$0xff] }
  0x1d   : > { %v1126_v60 = vshll.u32 %v3973_v58, 16  ;;  %v888_v61 = vor.u32 %v886_v45, %v885_v52  ;;  %v3980_v62 = vsel %vm3937_vm2, %v885_v52, 0  ;;  %v878_v63 = vrot.slane %v876_v53, 7  ;;  %v723_v52 = vld [vmem:[%s3945_s16 + $0x68] sm:$0xff] }
  0x1e   : > { %v3969_v56 = vsel %vm1069_vm3, %v1076_v48, %v1080_v33  ;;  %v3984_v0 = vsel %vm3937_vm2, 0, %v902_v57  ;;  %v1102_v1 = vshll.u32 %v3980_v62, 16  ;;  %v904_v2 = vshrl.u32 %v855_v59, 16 }
  0x1f   : > { %6163 = vst [vmem:[#allocation4_spill] sm:$0xff] %v3969_v56  ;;  %1377 = vrot.lane.b32.xlu0 %v3969_v56, %s3854_s17  ;;  %v907_v3 = vshll.u32 %v855_v59, 16  ;;  %v1119_v4 = vshrl.u32 %v3984_v0, 16  ;;  %v1121_v6 = vshll.u32 %v3984_v0, 16  ;;  %v1128_v7 = vrot.slane %v1126_v60, 1  ;;  %v726_v59 = vld [vmem:[%s3945_s16 + $0x80] sm:$0xff] }
  0x20   : > { %6164 = vst [vmem:[#allocation5_spill] sm:$0xff] %v3984_v0  ;;  %v3991_v8 = vsel %vm3937_vm2, 0, %v888_v61  ;;  %v1104_v12 = vrot.slane %v1102_v1, 1  ;;  %v881_v13 = vor.u32 %v879_v54, %v878_v63  ;;  %v3998_v15 = vsel %vm3937_vm2, %v878_v63, 0 }
  0x21   : > { %6165 = vst [vmem:[#allocation6_spill] sm:$0xff] %v3991_v8  ;;  %v1095_v10 = vshrl.u32 %v3991_v8, 16  ;;  %v1097_v11 = vshll.u32 %v3991_v8, 16  ;;  %v1123_v14 = vrot.slane %v1121_v6, 1  ;;  %v906_v16 = vrot.slane %v904_v2, 7 }
  0x22   : > { %v821_v18 = vunpack.c.l.b16 %v749_v51  ;;  %v4002_v20 = vsel %vm3937_vm2, 0, %v881_v13  ;;  %v1090_v21 = vshll.u32 %v3998_v15, 16  ;;  %v754_v22 = vpack.c.bf16 %v720_v9, %v720_v9  ;;  %v730_v13 = vld [vmem:[%s3945_s16 + $0xa0] sm:$0xff] }
  0x23   : > { %v1099_v19 = vrot.slane %v1097_v11, 1  ;;  %6166 = vst [vmem:[#allocation7_spill] sm:$0xff] %v4002_v20  ;;  %v1124_v23 = vor.u32 %v1123_v14, %v1119_v4  ;;  %v1083_v24 = vshrl.u32 %v4002_v20, 16  ;;  %v1085_v25 = vshll.u32 %v4002_v20, 16 }
  0x24   : > { %v909_v27 = vor.u32 %v907_v3, %v906_v16  ;;  %v1092_v29 = vrot.slane %v1090_v21, 1  ;;  %v4009_v30 = vsel %vm3937_vm2, %v906_v16, 0  ;;  %v853_v31 = vpack.c.b16 %v821_v18, %v820_v55 }
  0x25   : > { %v1100_v28 = vor.u32 %v1099_v19, %v1095_v10  ;;  %v4013_v33 = vsel %vm1069_vm3, %v1124_v23, %v1128_v7  ;;  %v1087_v34 = vrot.slane %v1085_v25, 1  ;;  %v1138_v36 = vshll.u32 %v4009_v30, 16  ;;  %v727_v7 = vld [vmem:[%s3945_s16 + $0x88] sm:$0xff] }
  0x26   : > { %v4017_v35 = vsel %vm3937_vm2, 0, %v909_v27  ;;  %1385 = vrot.lane.b32.xlu2 %v4013_v33, %s3854_s17  ;;  %v890_v41 = vshrl.u32 %v853_v31, 16  ;;  %v893_v46 = vshll.u32 %v853_v31, 16  ;;  %v755_v47 = vpack.c.bf16 %v721_v32, %v721_v32  ;;  %v731_v25 = vld [vmem:[%s3945_s16 + $0xa8] sm:$0xff] }
  0x27   : > { %6167 = vst [vmem:[#allocation8_spill] sm:$0xff] %v4017_v35  ;;  %v4024_v38 = vsel %vm1069_vm3, %v1100_v28, %v1104_v12  ;;  %v1131_v39 = vshrl.u32 %v4017_v35, 16  ;;  %v1133_v40 = vshll.u32 %v4017_v35, 16  ;;  %v1088_v44 = vor.u32 %v1087_v34, %v1083_v24 }
  0x28   : > { %1381 = vrot.lane.b32.xlu1 %v4024_v38, %s3854_s17  ;;  %v1140_v45 = vrot.slane %v1138_v36, 1  ;;  %v892_v49 = vrot.slane %v890_v41, 7  ;;  %v826_v50 = vunpack.c.l.b16 %v754_v22  ;;  %v758_v51 = vpack.c.bf16 %v724_v37, %v724_v37 }
  0x29   : > { %v1135_v48 = vrot.slane %v1133_v40, 1  ;;  %v4034_v53 = vsel %vm1069_vm3, %v1088_v44, %v1092_v29  ;;  %v827_v54 = vunpack.c.l.b16 %v755_v47  ;;  %v759_v55 = vpack.c.bf16 %v725_v42, %v725_v42 }
  0x2a   : > { %v756_v57 = vpack.c.bf16 %v722_v43, %v722_v43  ;;  %1379 = vrot.lane.b32.xlu0 %v4034_v53, %s3854_s17  ;;  %v895_v61 = vor.u32 %v893_v46, %v892_v49  ;;  %v4041_v63 = vsel %vm3937_vm2, %v892_v49, 0  ;;  %v830_v1 = vunpack.c.l.b16 %v758_v51 }
  0x2b   : > { %v1136_v60 = vor.u32 %v1135_v48, %v1131_v39  ;;  %v1114_v2 = vshll.u32 %v4041_v63, 16  ;;  %v856_v3 = vpack.c.b16 %v827_v54, %v826_v50  ;;  %v831_v4 = vunpack.c.l.b16 %v759_v55 }
  0x2c   : > { %v757_v6 = vpack.c.bf16 %v723_v52, %v723_v52  ;;  %v4050_v10 = vsel %vm3937_vm2, 0, %v895_v61  ;;  %v828_v11 = vunpack.c.l.b16 %v756_v57  ;;  %v760_v12 = vpack.c.bf16 %v726_v59, %v726_v59 }
  0x2d   : > { %v4046_v9 = vsel %vm1069_vm3, %v1136_v60, %v1140_v45  ;;  %6168 = vst [vmem:[#allocation9_spill] sm:$0xff] %v4050_v10  ;;  %v1107_v14 = vshrl.u32 %v4050_v10, 16  ;;  %v1109_v16 = vshll.u32 %v4050_v10, 16  ;;  %v1116_v18 = vrot.slane %v1114_v2, 1 }
  0x2e   : > { %v911_v19 = vshrl.u32 %v856_v3, 16  ;;  %1387 = vrot.lane.b32.xlu2 %v4046_v9, %s3854_s17  ;;  %v914_v21 = vshll.u32 %v856_v3, 16  ;;  %v858_v22 = vpack.c.b16 %v831_v4, %v830_v1  ;;  %v829_v23 = vunpack.c.l.b16 %v757_v6  ;;  %v728_v6 = vld [vmem:[%s3945_s16 + $0x90] sm:$0xff] }
  0x2f   : > { %v761_v24 = vpack.c.bf16 %v727_v7, %v727_v7  ;;  %v1111_v27 = vrot.slane %v1109_v16, 1  ;;  %v832_v29 = vunpack.c.l.b16 %v760_v12  ;;  %v764_v31 = vpack.c.bf16 %v730_v13, %v730_v13 }
  0x30   : > { %v913_v28 = vrot.slane %v911_v19, 7  ;;  %v925_v32 = vshrl.u32 %v858_v22, 16  ;;  %v928_v34 = vshll.u32 %v858_v22, 16  ;;  %v857_v36 = vpack.c.b16 %v829_v23, %v828_v11 }
  0x31   : > { %v833_v37 = vunpack.c.l.b16 %v761_v24  ;;  %v1112_v39 = vor.u32 %v1111_v27, %v1107_v14  ;;  %v765_v42 = vpack.c.bf16 %v731_v25, %v731_v25  ;;  %v836_v50 = vunpack.c.l.b16 %v764_v31  ;;  %v729_v24 = vld [vmem:[%s3945_s16 + $0x98] sm:$0xff] }
  0x32   : > { %v916_v40 = vor.u32 %v914_v21, %v913_v28  ;;  %v4060_v41 = vsel %vm3937_vm2, %v913_v28, 0  ;;  %v927_v44 = vrot.slane %v925_v32, 7  ;;  %v918_v45 = vshrl.u32 %v857_v36, 16 }
  0x33   : > { %v1150_v43 = vshll.u32 %v4060_v41, 16  ;;  %v921_v46 = vshll.u32 %v857_v36, 16  ;;  %v4064_v47 = vsel %vm1069_vm3, %v1112_v39, %v1116_v18  ;;  %v859_v49 = vpack.c.b16 %v833_v37, %v832_v29 }
  0x34   : > { %v4068_v48 = vsel %vm3937_vm2, 0, %v916_v40  ;;  %1383 = vrot.lane.b32.xlu1 %v4064_v47, %s3854_s17  ;;  %v930_v55 = vor.u32 %v928_v34, %v927_v44  ;;  %v4076_v57 = vsel %vm3937_vm2, %v927_v44, 0  ;;  %v920_v59 = vrot.slane %v918_v45, 7  ;;  %v732_v44 = vld [vmem:[%s3945_s16 + $0xb0] sm:$0xff] }
  0x35   : > { %6169 = vst [vmem:[#allocation10_spill] sm:$0xff] %v4068_v48  ;;  %v1143_v51 = vshrl.u32 %v4068_v48, 16  ;;  %v1145_v52 = vshll.u32 %v4068_v48, 16  ;;  %v1152_v54 = vrot.slane %v1150_v43, 1  ;;  %v932_v60 = vshrl.u32 %v859_v49, 16 }
  0x36   : > { %v935_v61 = vshll.u32 %v859_v49, 16  ;;  %v4080_v2 = vsel %vm3937_vm2, 0, %v930_v55  ;;  %v1174_v3 = vshll.u32 %v4076_v57, 16  ;;  %v837_v4 = vunpack.c.l.b16 %v765_v42 }
  0x37   : > { %v1147_v1 = vrot.slane %v1145_v52, 1  ;;  %6170 = vst [vmem:[#allocation11_spill] sm:$0xff] %v4080_v2  ;;  %v1167_v7 = vshrl.u32 %v4080_v2, 16  ;;  %v1169_v11 = vshll.u32 %v4080_v2, 16  ;;  %v923_v12 = vor.u32 %v921_v46, %v920_v59 }
  0x38   : > { %v4088_v13 = vsel %vm3937_vm2, %v920_v59, 0  ;;  %v1176_v16 = vrot.slane %v1174_v3, 1  ;;  %v934_v19 = vrot.slane %v932_v60, 7  ;;  %v861_v23 = vpack.c.b16 %v837_v4, %v836_v50  ;;  %v736_v60 = vld [vmem:[%s3945_s16 + $0xd0] sm:$0xff] }
  0x39   : > { %v1148_v14 = vor.u32 %v1147_v1, %v1143_v51  ;;  %v1162_v18 = vshll.u32 %v4088_v13, 16  ;;  %v1171_v21 = vrot.slane %v1169_v11, 1  ;;  %v4093_v22 = vsel %vm3937_vm2, 0, %v923_v12  ;;  %v733_v51 = vld [vmem:[%s3945_s16 + $0xb8] sm:$0xff] }
  0x3a   : > { %6171 = vst [vmem:[#allocation12_spill] sm:$0xff] %v4093_v22  ;;  %v762_v25 = vpack.c.bf16 %v728_v6, %v728_v6  ;;  %v1155_v28 = vshrl.u32 %v4093_v22, 16  ;;  %v1157_v29 = vshll.u32 %v4093_v22, 16  ;;  %v937_v34 = vor.u32 %v935_v61, %v934_v19 }
  0x3b   : > { %v4097_v27 = vsel %vm1069_vm3, %v1148_v14, %v1152_v54  ;;  %v1164_v31 = vrot.slane %v1162_v18, 1  ;;  %v1172_v32 = vor.u32 %v1171_v21, %v1167_v7  ;;  %v4105_v36 = vsel %vm3937_vm2, %v934_v19, 0  ;;  %v737_v14 = vld [vmem:[%s3945_s16 + $0xd8] sm:$0xff] }
  0x3c   : > { %1389 = vrot.lane.b32.xlu0 %v4097_v27, %s3854_s17  ;;  %v946_v37 = vshrl.u32 %v861_v23, 16  ;;  %v1159_v39 = vrot.slane %v1157_v29, 1  ;;  %v1186_v40 = vshll.u32 %v4105_v36, 16  ;;  %v949_v42 = vshll.u32 %v861_v23, 16  ;;  %v734_v23 = vld [vmem:[%s3945_s16 + $0xc0] sm:$0xff] }
  0x3d   : > { %v763_v43 = vpack.c.bf16 %v729_v24, %v729_v24  ;;  %v4110_v45 = vsel %vm1069_vm3, %v1172_v32, %v1176_v16  ;;  %v4114_v46 = vsel %vm3937_vm2, 0, %v937_v34  ;;  %v834_v50 = vunpack.c.l.b16 %v762_v25 }
  0x3e   : > { %6172 = vst [vmem:[#allocation13_spill] sm:$0xff] %v4114_v46  ;;  %v948_v49 = vrot.slane %v946_v37, 7  ;;  %1393 = vrot.lane.b32.xlu2 %v4110_v45, %s3854_s17  ;;  %v1160_v52 = vor.u32 %v1159_v39, %v1155_v28  ;;  %v1179_v54 = vshrl.u32 %v4114_v46, 16  ;;  %v1181_v55 = vshll.u32 %v4114_v46, 16 }
  0x3f   : > { %v1188_v59 = vrot.slane %v1186_v40, 1  ;;  %v835_v3 = vunpack.c.l.b16 %v763_v43  ;;  %v766_v4 = vpack.c.bf16 %v732_v44, %v732_v44  ;;  %v767_v12 = vpack.c.bf16 %v733_v51, %v733_v51  ;;  %v738_v40 = vld [vmem:[%s3945_s16 + $0xe0] sm:$0xff] }
  0x40   : > { %v951_v61 = vor.u32 %v949_v42, %v948_v49  ;;  %v4124_v1 = vsel %vm3937_vm2, %v948_v49, 0  ;;  %v4127_v6 = vsel %vm1069_vm3, %v1160_v52, %v1164_v31  ;;  %v1183_v7 = vrot.slane %v1181_v55, 1  ;;  %v735_v31 = vld [vmem:[%s3945_s16 + $0xc8] sm:$0xff] }
  0x41   : > { %v1210_v11 = vshll.u32 %v4124_v1, 16  ;;  %1391 = vrot.lane.b32.xlu1 %v4127_v6, %s3854_s17  ;;  %v860_v18 = vpack.c.b16 %v835_v3, %v834_v50  ;;  %v838_v19 = vunpack.c.l.b16 %v766_v4  ;;  %v770_v21 = vpack.c.bf16 %v736_v60, %v736_v60  ;;  %v739_v42 = vld [vmem:[%s3945_s16 + $0xe8] sm:$0xff] }
  0x42   : > { %v4135_v16 = vsel %vm3937_vm2, 0, %v951_v61  ;;  %v1184_v24 = vor.u32 %v1183_v7, %v1179_v54  ;;  %v839_v37 = vunpack.c.l.b16 %v767_v12  ;;  %v771_v39 = vpack.c.bf16 %v737_v14, %v737_v14 }
  0x43   : > { %6173 = vst [vmem:[#allocation14_spill] sm:$0xff] %v4135_v16  ;;  %v1203_v25 = vshrl.u32 %v4135_v16, 16  ;;  %v1205_v28 = vshll.u32 %v4135_v16, 16  ;;  %v1212_v29 = vrot.slane %v1210_v11, 1  ;;  %v939_v32 = vshrl.u32 %v860_v18, 16 }
  0x44   : > { %v942_v34 = vshll.u32 %v860_v18, 16  ;;  %v4144_v43 = vsel %vm1069_vm3, %v1184_v24, %v1188_v59  ;;  %v842_v49 = vunpack.c.l.b16 %v770_v21  ;;  %v768_v50 = vpack.c.bf16 %v734_v23, %v734_v23 }
  0x45   : > { %v1207_v44 = vrot.slane %v1205_v28, 1  ;;  %1395 = vrot.lane.b32.xlu0 %v4144_v43, %s3854_s17  ;;  %v941_v51 = vrot.slane %v939_v32, 7  ;;  %v862_v52 = vpack.c.b16 %v839_v37, %v838_v19  ;;  %v843_v54 = vunpack.c.l.b16 %v771_v39 }
  0x46   : > { %v769_v55 = vpack.c.bf16 %v735_v31, %v735_v31  ;;  %v840_v61 = vunpack.c.l.b16 %v768_v50  ;;  %v772_v3 = vpack.c.bf16 %v738_v40, %v738_v40  ;;  %v773_v4 = vpack.c.bf16 %v739_v42, %v739_v42 }
  0x47   : > { %v1208_v60 = vor.u32 %v1207_v44, %v1203_v25  ;;  %v944_v7 = vor.u32 %v942_v34, %v941_v51  ;;  %v4150_v11 = vsel %vm3937_vm2, %v941_v51, 0  ;;  %v953_v59 = vshrl.u32 %v862_v52, 16 }
  0x48   : > { %v956_v12 = vshll.u32 %v862_v52, 16  ;;  %v1198_v18 = vshll.u32 %v4150_v11, 16  ;;  %v864_v21 = vpack.c.b16 %v843_v54, %v842_v49  ;;  %v841_v19 = vunpack.c.l.b16 %v769_v55 }
  0x49   : > { %v4153_v14 = vsel %vm1069_vm3, %v1208_v60, %v1212_v29  ;;  %v4160_v23 = vsel %vm3937_vm2, 0, %v944_v7  ;;  %v955_v24 = vrot.slane %v953_v59, 7  ;;  %v844_v25 = vunpack.c.l.b16 %v772_v3 }
  0x4a   : > { %1399 = vrot.lane.b32.xlu2 %v4153_v14, %s3854_s17  ;;  %6174 = vst [vmem:[#allocation15_spill] sm:$0xff] %v4160_v23  ;;  %v845_v28 = vunpack.c.l.b16 %v773_v4  ;;  %v1191_v31 = vshrl.u32 %v4160_v23, 16  ;;  %v1193_v32 = vshll.u32 %v4160_v23, 16  ;;  %v1200_v29 = vrot.slane %v1198_v18, 1 }
  0x4b   : > { %v967_v34 = vshrl.u32 %v864_v21, 16  ;;  %v958_v37 = vor.u32 %v956_v12, %v955_v24  ;;  %v4166_v39 = vsel %vm3937_vm2, %v955_v24, 0  ;;  %v970_v40 = vshll.u32 %v864_v21, 16 }
  0x4c   : > { %v863_v42 = vpack.c.b16 %v841_v19, %v840_v61  ;;  %v1195_v44 = vrot.slane %v1193_v32, 1  ;;  %v1222_v49 = vshll.u32 %v4166_v39, 16  ;;  %v865_v51 = vpack.c.b16 %v845_v28, %v844_v25 }
  0x4d   : > { %v969_v50 = vrot.slane %v967_v34, 7  ;;  %v4171_v52 = vsel %vm3937_vm2, 0, %v958_v37 }
  0x4e   : > { %6175 = vst [vmem:[#allocation16_spill] sm:$0xff] %v4171_v52  ;;  %v960_v54 = vshrl.u32 %v863_v42, 16  ;;  %v963_v55 = vshll.u32 %v863_v42, 16  ;;  %v1196_v60 = vor.u32 %v1195_v44, %v1191_v31  ;;  %v1215_v3 = vshrl.u32 %v4171_v52, 16 }
  0x4f   : > { %v1217_v4 = vshll.u32 %v4171_v52, 16  ;;  %v1224_v7 = vrot.slane %v1222_v49, 1  ;;  %v972_v59 = vor.u32 %v970_v40, %v969_v50  ;;  %v4177_v61 = vsel %vm3937_vm2, %v969_v50, 0 }
  0x50   : > { %v962_v12 = vrot.slane %v960_v54, 7  ;;  %v974_v18 = vshrl.u32 %v865_v51, 16  ;;  %v4180_v21 = vsel %vm1069_vm3, %v1196_v60, %v1200_v29  ;;  %v1246_v24 = vshll.u32 %v4177_v61, 16 }
  0x51   : > { %v1219_v19 = vrot.slane %v1217_v4, 1  ;;  %v977_v25 = vshll.u32 %v865_v51, 16  ;;  %1397 = vrot.lane.b32.xlu1 %v4180_v21, %s3854_s17  ;;  %v4187_v28 = vsel %vm3937_vm2, 0, %v972_v59 }
  0x52   : > { %6176 = vst [vmem:[#allocation17_spill] sm:$0xff] %v4187_v28  ;;  %v965_v31 = vor.u32 %v963_v55, %v962_v12  ;;  %v4191_v32 = vsel %vm3937_vm2, %v962_v12, 0  ;;  %v976_v34 = vrot.slane %v974_v18, 7  ;;  %v1239_v29 = vshrl.u32 %v4187_v28, 16 }
  0x53   : > { %v1220_v37 = vor.u32 %v1219_v19, %v1215_v3  ;;  %v1241_v40 = vshll.u32 %v4187_v28, 16  ;;  %v1248_v42 = vrot.slane %v1246_v24, 1  ;;  %v1234_v49 = vshll.u32 %v4191_v32, 16 }
  0x54   : > { %v4197_v44 = vsel %vm3937_vm2, 0, %v965_v31  ;;  %v979_v50 = vor.u32 %v977_v25, %v976_v34  ;;  %v4202_v51 = vsel %vm3937_vm2, %v976_v34, 0 }
  0x55   : > { %v4205_v54 = vsel %vm1069_vm3, %v1220_v37, %v1224_v7  ;;  %v1243_v55 = vrot.slane %v1241_v40, 1  ;;  %v1227_v60 = vshrl.u32 %v4197_v44, 16  ;;  %v1229_v3 = vshll.u32 %v4197_v44, 16 }
  0x56   : > { %1401 = vrot.lane.b32.xlu0 %v4205_v54, %s3854_s17  ;;  %v1236_v4 = vrot.slane %v1234_v49, 1  ;;  %v4213_v59 = vsel %vm3937_vm2, 0, %v979_v50  ;;  %v1258_v12 = vshll.u32 %v4202_v51, 16  ;;  %v1299_v50 = vrot.slane %v3998_v15, 1 }
  0x57   : > { %6177 = vst [vmem:[#allocation18_spill] sm:$0xff] %v4213_v59  ;;  %v1244_v18 = vor.u32 %v1243_v55, %v1239_v29  ;;  %v1231_v19 = vrot.slane %v1229_v3, 1  ;;  %v1251_v7 = vshrl.u32 %v4213_v59, 16  ;;  %v1253_v24 = vshll.u32 %v4213_v59, 16 }
  0x58   : > { %v1260_v37 = vrot.slane %v1258_v12, 1  ;;  %v1298_v29 = vrot.slane %v4002_v20, 1  ;;  %v1295_v55 = vrot.slane %v3962_v26, 1  ;;  %v1302_v15 = vrot.slane %v3980_v62, 1 }
  0x59   : > { %v4219_v25 = vsel %vm1069_vm3, %v1244_v18, %v1248_v42  ;;  %v1232_v31 = vor.u32 %v1231_v19, %v1227_v60  ;;  %v1255_v34 = vrot.slane %v1253_v24, 1  ;;  %v1296_v60 = vrot.slane %v3955_v17, 1 }
  0x5a   : > { %1405 = vrot.lane.b32.xlu2 %v4219_v25, %s3854_s17  ;;  %v4238_v3 = vsel %vm1294_vm4, %v1298_v29, %v1299_v50  ;;  %v1307_v17 = vrot.slane %v3984_v0, 1  ;;  %v1308_v19 = vrot.slane %v3973_v58, 1  ;;  %v1305_v62 = vrot.slane %v4041_v63, 1 }
  0x5b   : > { %v4224_v40 = vsel %vm1069_vm3, %v1232_v31, %v1236_v4  ;;  %v1256_v49 = vor.u32 %v1255_v34, %v1251_v7  ;;  %v1301_v4 = vrot.slane %v3991_v8, 1  ;;  %v4243_v12 = vsel %vm1294_vm4, %v1295_v55, %v1296_v60 }
  0x5c   : > { %1403 = vrot.lane.b32.xlu1 %v4224_v40, %s3854_s17  ;;  %6178 = vst [vmem:[#allocation19_spill] sm:$0xff] %v4243_v12  ;;  %v1304_v7 = vrot.slane %v4050_v10, 1  ;;  %v4259_v24 = vsel %vm1294_vm4, %v1307_v17, %v1308_v19  ;;  %v1310_v31 = vrot.slane %v4017_v35, 1  ;;  %v1311_v34 = vrot.slane %v4009_v30, 1 }
  0x5d   : > { %v4231_v42 = vsel %vm1069_vm3, %v1256_v49, %v1260_v37  ;;  %v4248_v18 = vsel %vm1294_vm4, %v1301_v4, %v1302_v15  ;;  %v1316_v63 = vrot.slane %v4093_v22, 1  ;;  %v1317_v49 = vrot.slane %v4088_v13, 1 }
  0x5e   : > { %1407 = vrot.lane.b32.xlu0 %v4231_v42, %s3854_s17  ;;  %v4264_v37 = vsel %vm1294_vm4, %v1304_v7, %v1305_v62  ;;  %v4269_v58 = vsel %vm1294_vm4, %v1310_v31, %v1311_v34  ;;  %v1313_v29 = vrot.slane %v4068_v48, 1  ;;  %v1314_v30 = vrot.slane %v4060_v41, 1 }
  0x5f   : > { %v4280_v50 = vsel %vm1294_vm4, %v1316_v63, %v1317_v49  ;;  %v1319_v55 = vrot.slane %v4080_v2, 1  ;;  %v1320_v60 = vrot.slane %v4076_v57, 1  ;;  %v1325_v41 = vrot.slane %v4160_v23, 1 }
  0x60   : > { %v4285_v4 = vsel %vm1294_vm4, %v1313_v29, %v1314_v30  ;;  %v1326_v15 = vrot.slane %v4150_v11, 1  ;;  %v1322_v17 = vrot.slane %v4114_v46, 1  ;;  %v1323_v57 = vrot.slane %v4105_v36, 1 }
  0x61   : > { %v4290_v13 = vsel %vm1294_vm4, %v1319_v55, %v1320_v60  ;;  %v1328_v7 = vrot.slane %v4135_v16, 1  ;;  %v1329_v62 = vrot.slane %v4124_v1, 1  ;;  %v1334_v36 = vrot.slane %v4197_v44, 1 }
  0x62   : > { %1411 = vrot.lane.b32.xlu2 %v4238_v3, %s3855_s18  ;;  %v4301_v19 = vsel %vm1294_vm4, %v1325_v41, %v1326_v15  ;;  %v4306_v31 = vsel %vm1294_vm4, %v1322_v17, %v1323_v57  ;;  %v1335_v34 = vrot.slane %v4191_v32, 1  ;;  %v1331_v63 = vrot.slane %v4171_v52, 1  ;;  %v741_v15 = vld [vmem:[%s3945_s16 + $0xf8] sm:$0xff] }
  0x63   : > { %v4311_v11 = vsel %vm1294_vm4, %v1328_v7, %v1329_v62  ;;  %v1332_v1 = vrot.slane %v4166_v39, 1  ;;  %v1337_v29 = vrot.slane %v4187_v28, 1  ;;  %v1338_v30 = vrot.slane %v4177_v61, 1 }
  0x64   : > { %1409 = vrot.lane.b32.xlu1 %v4243_v12, %s3855_s18  ;;  %v4322_v49 = vsel %vm1294_vm4, %v1334_v36, %v1335_v34  ;;  %v1340_v55 = vrot.slane %v4213_v59, 1  ;;  %v1341_v60 = vrot.slane %v4202_v51, 1  ;;  %v740_v51 = vld [vmem:[%s3945_s16 + $0xf0] sm:$0xff]  ;;  %v775_v7 = vpack.c.bf16 %v741_v15, %v741_v15 }
  0x65   : > { %v4327_v32 = vsel %vm1294_vm4, %v1331_v63, %v1332_v1  ;;  %v4332_v39 = vsel %vm1294_vm4, %v1337_v29, %v1338_v30  ;;  %v774_v57 = vpack.c.bf16 %v740_v51, %v740_v51 }
  0x66   : > { %1413 = vrot.lane.b32.xlu0 %v4248_v18, %s3855_s18  ;;  %v4341_v61 = vsel %vm1294_vm4, %v1340_v55, %v1341_v60  ;;  %v847_v36 = vunpack.c.l.b16 %v775_v7 }
  0x67   : > { %v846_v62 = vunpack.c.l.b16 %v774_v57 }
  0x69   : > { %v866_v34 = vpack.c.b16 %v847_v36, %v846_v62 }
  0x6a   : > { %1417 = vrot.lane.b32.xlu2 %v4259_v24, %s3855_s18 }
  0x6b   : > { %v981_v29 = vshrl.u32 %v866_v34, 16  ;;  %v984_v60 = vshll.u32 %v866_v34, 16 }
  0x6c   : > { %1415 = vrot.lane.b32.xlu1 %v4264_v37, %s3855_s18 }
  0x6d   : > { %v983_v55 = vrot.slane %v981_v29, 7 }
  0x6e   : > { %1419 = vrot.lane.b32.xlu0 %v4269_v58, %s3855_s18 }
  0x6f   : > { %v986_v57 = vor.u32 %v984_v60, %v983_v55 }
  0x71   : > { %v4391_v7 = vsel %vm3937_vm2, 0, %v986_v57 }
  0x72   : > { %1423 = vrot.lane.b32.xlu2 %v4280_v50, %s3855_s18 }
  0x74   : > { %1421 = vrot.lane.b32.xlu1 %v4285_v4, %s3855_s18 }
  0x76   : > { %1425 = vrot.lane.b32.xlu0 %v4290_v13, %s3855_s18 }
  0x7a   : > { %1429 = vrot.lane.b32.xlu2 %v4301_v19, %s3855_s18 }
  0x7c   : > { %1427 = vrot.lane.b32.xlu1 %v4306_v31, %s3855_s18 }
  0x7e   : > { %1431 = vrot.lane.b32.xlu0 %v4311_v11, %s3855_s18 }
  0x80   : > { %v4347_v41 = vpop.permute.xlu2 %1385 }
  0x81   : > { %6179 = vst [vmem:[#allocation20_spill] sm:$0xff] %v4347_v41 }
  0x82   : > { %1435 = vrot.lane.b32.xlu2 %v4322_v49, %s3855_s18 }
  0x84   : > { %1433 = vrot.lane.b32.xlu1 %v4327_v32, %s3855_s18 }
  0x86   : > { %1437 = vrot.lane.b32.xlu0 %v4332_v39, %s3855_s18 }
  0x88   : > { %v4359_v17 = vpop.permute.xlu2 %1387 }
  0x89   : > { %6180 = vst [vmem:[#allocation21_spill] sm:$0xff] %v4359_v17 }
  0x8a   : > { %1441 = vrot.lane.b32.xlu2 %v4002_v20, %s3856_s19 }
  0x8c   : > { %1439 = vrot.lane.b32.xlu1 %v4341_v61, %s3855_s18 }
  0x8e   : > { %1443 = vrot.lane.b32.xlu0 %v3991_v8, %s3856_s19 }
  0x91   : > { %v4367_v63 = vpop.permute.xlu0 %1377 }
  0x92   : > { %1447 = vrot.lane.b32.xlu2 %v3984_v0, %s3856_s19 }
  0x94   : > { %1445 = vrot.lane.b32.xlu1 %v4050_v10, %s3856_s19 }
  0x96   : > { %1449 = vrot.lane.b32.xlu0 %v4017_v35, %s3856_s19 }
  0x98   : > { %v4369_v1 = vpop.permute.xlu2 %1393 }
  0x99   : > { %6181 = vst [vmem:[#allocation22_spill] sm:$0xff] %v4369_v1 }
  0x9a   : > { %1453 = vrot.lane.b32.xlu2 %v4093_v22, %s3856_s19  ;;  %v4377_v30 = vpop.permute.xlu1 %1381 }
  0x9b   : > { %6182 = vst [vmem:[#allocation23_spill] sm:$0xff] %v4377_v30 }
  0x9c   : > { %1451 = vrot.lane.b32.xlu1 %v4068_v48, %s3856_s19  ;;  %v4383_v15 = vpop.permute.xlu0 %1379 }
  0x9d   : > { %6184 = vst [vmem:[#allocation25_spill] sm:$0xff] %v4383_v15 }
  0x9e   : > { %1455 = vrot.lane.b32.xlu0 %v4080_v2, %s3856_s19 }
  0xa2   : > { %1459 = vrot.lane.b32.xlu2 %v4160_v23, %s3856_s19 }
  0xa4   : > { %1457 = vrot.lane.b32.xlu1 %v4114_v46, %s3856_s19  ;;  %v4381_v51 = vpop.permute.xlu2 %1399 }
  0xa5   : > { %6183 = vst [vmem:[#allocation24_spill] sm:$0xff] %v4381_v51 }
  0xa6   : > { %1461 = vrot.lane.b32.xlu0 %v4135_v16, %s3856_s19  ;;  %v4393_v62 = vpop.permute.xlu1 %1383 }
  0xa7   : > { %6185 = vst [vmem:[#allocation26_spill] sm:$0xff] %v4393_v62 }
  0xaa   : > { %1465 = vrot.lane.b32.xlu2 %v4197_v44, %s3856_s19 }
  0xac   : > { %1463 = vrot.lane.b32.xlu1 %v4171_v52, %s3856_s19 }
  0xae   : > { %1467 = vrot.lane.b32.xlu0 %v4187_v28, %s3856_s19  ;;  %v4401_v34 = vpop.permute.xlu0 %1389 }
  0xaf   : > { %6187 = vst [vmem:[#allocation28_spill] sm:$0xff] %v4401_v34 }
  0xb2   : > { %1471 = vrot.lane.b32.xlu2 %v4391_v7, %s3856_s19 }
  0xb3   : > { %v4407_v29 = vpop.permute.xlu1 %1391 }
  0xb4   : > { %1469 = vrot.lane.b32.xlu1 %v4213_v59, %s3856_s19  ;;  %v4399_v36 = vpop.permute.xlu2 %1405  ;;  %6188 = vst [vmem:[#allocation29_spill] sm:$0xff] %v4407_v29 }
  0xb5   : > { %6186 = vst [vmem:[#allocation27_spill] sm:$0xff] %v4399_v36 }
  0xb6   : > { %1473 = vrot.lane.b32.xlu0 %v4034_v53, %s3857_s20 }
  0xb7   : > { %v4415_v57 = vpop.permute.xlu0 %1395 }
  0xb8   : > { %6190 = vst [vmem:[#allocation31_spill] sm:$0xff] %v4415_v57 }
  0xba   : > { %1477 = vrot.lane.b32.xlu2 %v4064_v47, %s3857_s20 }
  0xbc   : > { %1475 = vrot.lane.b32.xlu1 %v4024_v38, %s3857_s20  ;;  %v4411_v60 = vpop.permute.xlu2 %1411 }
  0xbd   : > { %6189 = vst [vmem:[#allocation30_spill] sm:$0xff] %v4411_v60 }
  0xbe   : > { %1479 = vrot.lane.b32.xlu0 %v4013_v33, %s3857_s20 }
  0xc2   : > { %1483 = vrot.lane.b32.xlu2 %v4097_v27, %s3857_s20 }
  0xc3   : > { %v4421_v53 = vpop.permute.xlu1 %1397 }
  0xc4   : > { %1481 = vrot.lane.b32.xlu1 %v4046_v9, %s3857_s20  ;;  %6191 = vst [vmem:[#allocation32_spill] sm:$0xff] %v4421_v53  ;;  %v4423_v34 = vpop.permute.xlu2 %1417  ;;  %v1344_v53 = vshrl.u32 %v4391_v7, 16 }
  0xc5   : > { %6192 = vst [vmem:[#allocation33_spill] sm:$0xff] %v4423_v34  ;;  %v1346_v34 = vshll.u32 %v4391_v7, 16 }
  0xc6   : > { %1485 = vrot.lane.b32.xlu0 %v4127_v6, %s3857_s20 }
  0xc7   : > { %v1348_v62 = vrot.slane %v1346_v34, 1 }
  0xc8   : > { %v4427_v29 = vpop.permute.xlu0 %1401 }
  0xc9   : > { %6193 = vst [vmem:[#allocation34_spill] sm:$0xff] %v4427_v29  ;;  %v1067_v29 = vsel %vm3937_vm2, %v983_v55, 0 }
  0xca   : > { %1489 = vrot.lane.b32.xlu2 %v4144_v43, %s3857_s20  ;;  %v1351_v57 = vshll.u32 %v1067_v29, 16 }
  0xcc   : > { %1487 = vrot.lane.b32.xlu1 %v4110_v45, %s3857_s20  ;;  %v4433_v17 = vpop.permute.xlu2 %1423  ;;  %v1353_v30 = vrot.slane %v1351_v57, 1 }
  0xcd   : > { %6194 = vst [vmem:[#allocation35_spill] sm:$0xff] %v4433_v17 }
  0xce   : > { %1491 = vrot.lane.b32.xlu0 %v4180_v21, %s3857_s20  ;;  %v4437_v51 = vpop.permute.xlu1 %1403 }
  0xd0   : > { %v4440_v41 = vpop.permute.xlu0 %1407 }
  0xd1   : > { %6195 = vst [vmem:[#allocation36_spill] sm:$0xff] %v4440_v41  ;;  %v1349_v41 = vor.u32 %v1348_v62, %v1344_v53 }
  0xd2   : > { %1495 = vrot.lane.b32.xlu2 %v4205_v54, %s3857_s20 }
  0xd3   : > { %v4460_v34 = vsel %vm1069_vm3, %v1349_v41, %v1353_v30 }
  0xd4   : > { %1493 = vrot.lane.b32.xlu1 %v4153_v14, %s3857_s20  ;;  %v4449_v17 = vpop.permute.xlu2 %1429 }
  0xd5   : > { %6196 = vst [vmem:[#allocation37_spill] sm:$0xff] %v4449_v17 }
  0xd6   : > { %1497 = vrot.lane.b32.xlu0 %v4224_v40, %s3857_s20  ;;  %v4453_v36 = vpop.permute.xlu1 %1409 }
  0xd8   : > { %v4455_v55 = vpop.permute.xlu0 %1413 }
  0xd9   : > { %6197 = vst [vmem:[#allocation38_spill] sm:$0xff] %v4455_v55  ;;  %v1358_v55 = vrot.slane %v1067_v29, 1 }
  0xda   : > { %1501 = vrot.lane.b32.xlu2 %v4231_v42, %s3857_s20 }
  0xdc   : > { %1499 = vrot.lane.b32.xlu1 %v4219_v25, %s3857_s20  ;;  %v4464_v1 = vpop.permute.xlu2 %1435 }
  0xdd   : > { %6198 = vst [vmem:[#allocation39_spill] sm:$0xff] %v4464_v1 }
  0xde   : > { %1503 = vrot.lane.b32.xlu0 %v4460_v34, %s3857_s20  ;;  %v4468_v17 = vpop.permute.xlu1 %1415 }
  0xdf   : > { %6199 = vst [vmem:[#allocation40_spill] sm:$0xff] %v4468_v17 }
  0xe0   : > { %v4470_v62 = vpop.permute.xlu0 %1419 }
  0xe1   : > { %6200 = vst [vmem:[#allocation41_spill] sm:$0xff] %v4470_v62 }
  0xe2   : > { %1507 = vrot.lane.b32.xlu2 %v4248_v18, %s3858_s21 }
  0xe4   : > { %1505 = vrot.lane.b32.xlu1 %v4238_v3, %s3858_s21  ;;  %v4476_v41 = vpop.permute.xlu2 %1441 }
  0xe6   : > { %1509 = vrot.lane.b32.xlu0 %v4264_v37, %s3858_s21  ;;  %v4480_v30 = vpop.permute.xlu1 %1421 }
  0xe7   : > { %6201 = vst [vmem:[#allocation42_spill] sm:$0xff] %v4480_v30 }
  0xe8   : > { %v4482_v57 = vpop.permute.xlu0 %1425 }
  0xe9   : > { %6202 = vst [vmem:[#allocation43_spill] sm:$0xff] %v4482_v57 }
  0xea   : > { %1513 = vrot.lane.b32.xlu2 %v4269_v58, %s3858_s21 }
  0xec   : > { %1511 = vrot.lane.b32.xlu1 %v4259_v24, %s3858_s21  ;;  %v4488_v53 = vpop.permute.xlu2 %1447 }
  0xed   : > { %6203 = vst [vmem:[#allocation44_spill] sm:$0xff] %v4488_v53 }
  0xee   : > { %1515 = vrot.lane.b32.xlu0 %v4285_v4, %s3858_s21  ;;  %v4492_v3 = vpop.permute.xlu1 %1427 }
  0xef   : > { %6204 = vst [vmem:[#allocation45_spill] sm:$0xff] %v4492_v3 }
  0xf0   : > { %v4494_v62 = vpop.permute.xlu0 %1431 }
  0xf1   : > { %6205 = vst [vmem:[#allocation46_spill] sm:$0xff] %v4494_v62 }
  0xf2   : > { %1519 = vrot.lane.b32.xlu2 %v4290_v13, %s3858_s21 }
  0xf4   : > { %1517 = vrot.lane.b32.xlu1 %v4280_v50, %s3858_s21  ;;  %v4500_v30 = vpop.permute.xlu2 %1453 }
  0xf5   : > { %6206 = vst [vmem:[#allocation47_spill] sm:$0xff] %v4500_v30 }
  0xf6   : > { %1521 = vrot.lane.b32.xlu0 %v4306_v31, %s3858_s21  ;;  %v4504_v17 = vpop.permute.xlu1 %1433 }
  0xf7   : > { %6207 = vst [vmem:[#allocation48_spill] sm:$0xff] %v4504_v17 }
  0xf8   : > { %v4506_v53 = vpop.permute.xlu0 %1437 }
  0xf9   : > { %6208 = vst [vmem:[#allocation49_spill] sm:$0xff] %v4506_v53  ;;  %v1357_v53 = vrot.slane %v4391_v7, 1 }
  0xfa   : > { %1525 = vrot.lane.b32.xlu2 %v4311_v11, %s3858_s21 }
  0xfc   : > { %1523 = vrot.lane.b32.xlu1 %v4301_v19, %s3858_s21  ;;  %v4512_v62 = vpop.permute.xlu2 %1459 }
  0xfd   : > { %6209 = vst [vmem:[#allocation50_spill] sm:$0xff] %v4512_v62 }
  0xfe   : > { %1527 = vrot.lane.b32.xlu0 %v4327_v32, %s3858_s21  ;;  %v4516_v3 = vpop.permute.xlu1 %1439 }
  0xff   : > { %6210 = vst [vmem:[#allocation51_spill] sm:$0xff] %v4516_v3  ;;  %v4534_v3 = vsel %vm1294_vm4, %v1357_v53, %v1358_v55 }
 0x100   : > { %v4518_v30 = vpop.permute.xlu0 %1443 }
 0x101   : > { %6211 = vst [vmem:[#allocation52_spill] sm:$0xff] %v4518_v30 }
 0x102   : > { %1531 = vrot.lane.b32.xlu2 %v4332_v39, %s3858_s21 }
 0x104   : > { %1529 = vrot.lane.b32.xlu1 %v4322_v49, %s3858_s21  ;;  %v4524_v17 = vpop.permute.xlu2 %1465 }
 0x105   : > { %6212 = vst [vmem:[#allocation53_spill] sm:$0xff] %v4524_v17 }
 0x106   : > { %1533 = vrot.lane.b32.xlu0 %v4341_v61, %s3858_s21  ;;  %v4529_v62 = vpop.permute.xlu1 %1445 }
 0x107   : > { %6213 = vst [vmem:[#allocation54_spill] sm:$0xff] %v4529_v62 }
 0x108   : > { %v4531_v57 = vpop.permute.xlu0 %1449 }
 0x109   : > { %6214 = vst [vmem:[#allocation55_spill] sm:$0xff] %v4531_v57 }
 0x10a   : > { %1537 = vrot.lane.b32.xlu2 %v3991_v8, %s3859_s22 }
 0x10c   : > { %1535 = vrot.lane.b32.xlu1 %v4534_v3, %s3858_s21  ;;  %v4540_v17 = vpop.permute.xlu2 %1471 }
 0x10d   : > { %6215 = vst [vmem:[#allocation56_spill] sm:$0xff] %v4540_v17  ;;  %v1917_v17 = vld [vmem:[%s4658_s26 + $0x38] sm:$0xff] }
 0x10e   : > { %1539 = vrot.lane.b32.xlu0 %v4050_v10, %s3859_s22  ;;  %v4544_v29 = vpop.permute.xlu1 %1451  ;;  %v1915_v10 = vld [vmem:[%s4658_s26 + $0x28] sm:$0xff] }
 0x10f   : > { %6216 = vst [vmem:[#allocation57_spill] sm:$0xff] %v4544_v29 }
 0x110   : > { %v4546_v62 = vpop.permute.xlu0 %1455 }
 0x111   : > { %6217 = vst [vmem:[#allocation58_spill] sm:$0xff] %v4546_v62 }
 0x112   : > { %1543 = vrot.lane.b32.xlu2 %v4017_v35, %s3859_s22 }
 0x114   : > { %1541 = vrot.lane.b32.xlu1 %v3984_v0, %s3859_s22  ;;  %v4552_v55 = vpop.permute.xlu2 %1477 }
 0x115   : > { %6218 = vst [vmem:[#allocation59_spill] sm:$0xff] %v4552_v55  ;;  %v1919_v55 = vld [vmem:[%s4658_s26 + $0x48] sm:$0xff] }
 0x116   : > { %1545 = vrot.lane.b32.xlu0 %v4068_v48, %s3859_s22  ;;  %v4556_v53 = vpop.permute.xlu1 %1457 }
 0x117   : > { %6219 = vst [vmem:[#allocation60_spill] sm:$0xff] %v4556_v53 }
 0x118   : > { %v4558_v57 = vpop.permute.xlu0 %1461 }
 0x119   : > { %6220 = vst [vmem:[#allocation61_spill] sm:$0xff] %v4558_v57 }
 0x11a   : > { %1549 = vrot.lane.b32.xlu2 %v4080_v2, %s3859_s22  ;;  %v1934_v2 = vld [vmem:[%s4658_s26 + $0xc0] sm:$0xff] }
 0x11c   : > { %1547 = vrot.lane.b32.xlu1 %v4093_v22, %s3859_s22  ;;  %v4564_v62 = vpop.permute.xlu2 %1483 }
 0x11d   : > { %6221 = vst [vmem:[#allocation62_spill] sm:$0xff] %v4564_v62 }
 0x11e   : > { %1551 = vrot.lane.b32.xlu0 %v4114_v46, %s3859_s22  ;;  %v4568_v29 = vpop.permute.xlu1 %1463 }
 0x11f   : > { %6222 = vst [vmem:[#allocation63_spill] sm:$0xff] %v4568_v29 }
 0x120   : > { %v4570_v35 = vpop.permute.xlu0 %1467 }
 0x121   : > { %6223 = vst [vmem:[#allocation64_spill] sm:$0xff] %v4570_v35 }
 0x122   : > { %1555 = vrot.lane.b32.xlu2 %v4135_v16, %s3859_s22 }
 0x124   : > { %1553 = vrot.lane.b32.xlu1 %v4160_v23, %s3859_s22  ;;  %v4576_v48 = vpop.permute.xlu2 %1489 }
 0x125   : > { %6224 = vst [vmem:[#allocation65_spill] sm:$0xff] %v4576_v48 }
 0x126   : > { %1557 = vrot.lane.b32.xlu0 %v4171_v52, %s3859_s22  ;;  %v4580_v22 = vpop.permute.xlu1 %1469 }
 0x127   : > { %6225 = vst [vmem:[#allocation66_spill] sm:$0xff] %v4580_v22  ;;  %v1918_v22 = vld [vmem:[%s4658_s26 + $0x40] sm:$0xff] }
 0x128   : > { %v4582_v62 = vpop.permute.xlu0 %1473 }
 0x12a   : > { %1561 = vrot.lane.b32.xlu2 %v4187_v28, %s3859_s22 }
 0x12c   : > { %1559 = vrot.lane.b32.xlu1 %v4197_v44, %s3859_s22  ;;  %v4588_v29 = vpop.permute.xlu2 %1495 }
 0x12d   : > { %6226 = vst [vmem:[#allocation67_spill] sm:$0xff] %v4588_v29 }
 0x12e   : > { %1563 = vrot.lane.b32.xlu0 %v4213_v59, %s3859_s22  ;;  %v4592_v16 = vpop.permute.xlu1 %1475 }
 0x12f   : > { %6227 = vst [vmem:[#allocation68_spill] sm:$0xff] %v4592_v16 }
 0x130   : > { %v4594_v0 = vpop.permute.xlu0 %1479 }
 0x131   : > { %6228 = vst [vmem:[#allocation69_spill] sm:$0xff] %v4594_v0 }
 0x132   : > { %1567 = vrot.lane.b32.xlu2 %v3962_v26, %s3859_s22 }
 0x134   : > { %1565 = vrot.lane.b32.xlu1 %v4391_v7, %s3859_s22  ;;  %v4600_v52 = vpop.permute.xlu2 %1501 }
 0x135   : > { %6229 = vst [vmem:[#allocation70_spill] sm:$0xff] %v4600_v52 }
 0x136   : > { %1569 = vrot.lane.b32.xlu0 %v4024_v38, %s3860_s23  ;;  %v4604_v29 = vpop.permute.xlu1 %1481 }
 0x137   : > { %6230 = vst [vmem:[#allocation71_spill] sm:$0xff] %v4604_v29 }
 0x138   : > { %v4606_v57 = vpop.permute.xlu0 %1485 }
 0x139   : > { %6231 = vst [vmem:[#allocation72_spill] sm:$0xff] %v4606_v57 }
 0x13a   : > { %1573 = vrot.lane.b32.xlu2 %v4013_v33, %s3860_s23 }
 0x13c   : > { %1571 = vrot.lane.b32.xlu1 %v4064_v47, %s3860_s23  ;;  %v4612_v0 = vpop.permute.xlu2 %1507 }
 0x13d   : > { %6232 = vst [vmem:[#allocation73_spill] sm:$0xff] %v4612_v0 }
 0x13e   : > { %1575 = vrot.lane.b32.xlu0 %v4046_v9, %s3860_s23  ;;  %v4616_v7 = vpop.permute.xlu1 %1487 }
 0x13f   : > { %6233 = vst [vmem:[#allocation74_spill] sm:$0xff] %v4616_v7 }
 0x140   : > { %v4618_v23 = vpop.permute.xlu0 %1491 }
 0x141   : > { %6234 = vst [vmem:[#allocation75_spill] sm:$0xff] %v4618_v23 }
 0x142   : > { %1579 = vrot.lane.b32.xlu2 %v4127_v6, %s3860_s23 }
 0x144   : > { %1577 = vrot.lane.b32.xlu1 %v4097_v27, %s3860_s23  ;;  %v4624_v33 = vpop.permute.xlu2 %1513 }
 0x145   : > { %6235 = vst [vmem:[#allocation76_spill] sm:$0xff] %v4624_v33 }
 0x146   : > { %1581 = vrot.lane.b32.xlu0 %v4110_v45, %s3860_s23  ;;  %v4628_v38 = vpop.permute.xlu1 %1493 }
 0x147   : > { %6236 = vst [vmem:[#allocation77_spill] sm:$0xff] %v4628_v38 }
 0x148   : > { %v4630_v47 = vpop.permute.xlu0 %1497 }
 0x149   : > { %6237 = vst [vmem:[#allocation78_spill] sm:$0xff] %v4630_v47 }
 0x14a   : > { %1585 = vrot.lane.b32.xlu2 %v4180_v21, %s3860_s23  ;;  %v1910_v21 = vld [vmem:[%s4658_s26] sm:$0xff] }
 0x14c   : > { %1583 = vrot.lane.b32.xlu1 %v4144_v43, %s3860_s23  ;;  %v4636_v9 = vpop.permute.xlu2 %1519 }
 0x14d   : > { %6238 = vst [vmem:[#allocation79_spill] sm:$0xff] %v4636_v9 }
 0x14e   : > { %1587 = vrot.lane.b32.xlu0 %v4153_v14, %s3860_s23  ;;  %v4640_v27 = vpop.permute.xlu1 %1499 }
 0x14f   : > { %6239 = vst [vmem:[#allocation80_spill] sm:$0xff] %v4640_v27  ;;  %v1968_v27 = vpack.c.bf16 %v1934_v2, %v1934_v2 }
 0x150   : > { %v4642_v6 = vpop.permute.xlu0 %1503 }
 0x151   : > { %6240 = vst [vmem:[#allocation81_spill] sm:$0xff] %v4642_v6  ;;  %v1916_v6 = vld [vmem:[%s4658_s26 + $0x30] sm:$0xff] }
 0x152   : > { %1591 = vrot.lane.b32.xlu2 %v4224_v40, %s3860_s23 }
 0x154   : > { %1589 = vrot.lane.b32.xlu1 %v4205_v54, %s3860_s23  ;;  %v4648_v45 = vpop.permute.xlu2 %1525  ;;  %v1911_v54 = vld [vmem:[%s4658_s26 + $0x8] sm:$0xff] }
 0x155   : > { %6241 = vst [vmem:[#allocation82_spill] sm:$0xff] %v4648_v45  ;;  %v1945_v40 = vpack.c.bf16 %v1911_v54, %v1911_v54  ;;  %v1913_v54 = vld [vmem:[%s4658_s26 + $0x18] sm:$0xff]  ;;  %v1914_v45 = vld [vmem:[%s4658_s26 + $0x20] sm:$0xff] }
 0x156   : > { %1593 = vrot.lane.b32.xlu0 %v4219_v25, %s3860_s23  ;;  %v4652_v43 = vpop.permute.xlu1 %1505  ;;  %v1944_v25 = vpack.c.bf16 %v1910_v21, %v1910_v21  ;;  %v1912_v21 = vld [vmem:[%s4658_s26 + $0x10] sm:$0xff]  ;;  %v1947_v38 = vpack.c.bf16 %v1913_v54, %v1913_v54  ;;  %v1948_v59 = vpack.c.bf16 %v1914_v45, %v1914_v45 }
 0x157   : > { %v2017_v57 = vunpack.c.l.b16 %v1945_v40  ;;  %v1946_v40 = vpack.c.bf16 %v1912_v21, %v1912_v21 }
 0x158   : > { %v4660_v14 = vpop.permute.xlu0 %1509  ;;  %v2016_v7 = vunpack.c.l.b16 %v1944_v25 }
 0x159   : > { %6242 = vst [vmem:[#allocation83_spill] sm:$0xff] %v4660_v14  ;;  %v2018_v23 = vunpack.c.l.b16 %v1946_v40  ;;  %v1952_v40 = vpack.c.bf16 %v1918_v22, %v1918_v22 }
 0x15a   : > { %1597 = vrot.lane.b32.xlu2 %v4460_v34, %s3860_s23  ;;  %v2051_v33 = vpack.c.b16 %v2017_v57, %v2016_v7  ;;  %v1950_v57 = vpack.c.bf16 %v1916_v6, %v1916_v6  ;;  %v1951_v7 = vpack.c.bf16 %v1917_v17, %v1917_v17 }
 0x15c   : > { %1595 = vrot.lane.b32.xlu1 %v4231_v42, %s3860_s23  ;;  %v4668_v9 = vpop.permute.xlu2 %1531  ;;  %v2076_v34 = vshrl.u32 %v2051_v33, 16  ;;  %v2079_v25 = vshll.u32 %v2051_v33, 16  ;;  %v2022_v21 = vunpack.c.l.b16 %v1950_v57  ;;  %v2023_v17 = vunpack.c.l.b16 %v1951_v7 }
 0x15d   : > { %6243 = vst [vmem:[#allocation84_spill] sm:$0xff] %v4668_v9  ;;  %v1953_v57 = vpack.c.bf16 %v1919_v55, %v1919_v55  ;;  %v2024_v55 = vunpack.c.l.b16 %v1952_v40  ;;  %v1935_v9 = vld [vmem:[%s4658_s26 + $0xc8] sm:$0xff] }
 0x15e   : > { %1599 = vrot.lane.b32.xlu0 %v3969_v56, %s3860_s23  ;;  %v4672_v47 = vpop.permute.xlu1 %1511  ;;  %v2078_v42 = vrot.slane %v2076_v34, 7  ;;  %v2020_v34 = vunpack.c.l.b16 %v1948_v59  ;;  %v2054_v14 = vpack.c.b16 %v2023_v17, %v2022_v21  ;;  %v1920_v21 = vld [vmem:[%s4658_s26 + $0x50] sm:$0xff] }
 0x15f   : > { %6244 = vst [vmem:[#allocation85_spill] sm:$0xff] %v4672_v47  ;;  %v1949_v47 = vpack.c.bf16 %v1915_v10, %v1915_v10  ;;  %v2025_v17 = vunpack.c.l.b16 %v1953_v57 }
 0x160   : > { %v4674_v29 = vpop.permute.xlu0 %1515  ;;  %v2081_v10 = vor.u32 %v2079_v25, %v2078_v42  ;;  %v2097_v25 = vshrl.u32 %v2054_v14, 16  ;;  %v2100_v22 = vshll.u32 %v2054_v14, 16 }
 0x161   : > { %6245 = vst [vmem:[#allocation86_spill] sm:$0xff] %v4674_v29  ;;  %v2021_v33 = vunpack.c.l.b16 %v1949_v47  ;;  %v2055_v40 = vpack.c.b16 %v2025_v17, %v2024_v55  ;;  %v1924_v55 = vld [vmem:[%s4658_s26 + $0x70] sm:$0xff] }
 0x162   : > { %1603 = vrot.lane.b32.xlu2 %v4264_v37, %s3861_s27  ;;  %v2019_v37 = vunpack.c.l.b16 %v1947_v38  ;;  %v4700_v59 = vsel %vm3937_vm2, 0, %v2081_v10  ;;  %v1958_v28 = vpack.c.bf16 %v1924_v55, %v1924_v55 }
 0x163   : > { %v2053_v45 = vpack.c.b16 %v2021_v33, %v2020_v34  ;;  %v2281_v7 = vshll.u32 %v4700_v59, 16 }
 0x164   : > { %1601 = vrot.lane.b32.xlu1 %v4248_v18, %s3861_s27  ;;  %v4686_v29 = vpop.permute.xlu2 %1537  ;;  %v2052_v6 = vpack.c.b16 %v2019_v37, %v2018_v23  ;;  %v4713_v37 = vsel %vm3937_vm2, %v2078_v42, 0  ;;  %v1954_v42 = vpack.c.bf16 %v1920_v21, %v1920_v21 }
 0x165   : > { %v2090_v47 = vshrl.u32 %v2053_v45, 16 }
 0x166   : > { %1605 = vrot.lane.b32.xlu0 %v4259_v24, %s3861_s27  ;;  %v4690_v54 = vpop.permute.xlu1 %1517  ;;  %v2083_v18 = vshrl.u32 %v2052_v6, 16  ;;  %v2086_v38 = vshll.u32 %v2052_v6, 16  ;;  %v2099_v6 = vrot.slane %v2097_v25, 7  ;;  %v2026_v21 = vunpack.c.l.b16 %v1954_v42 }
 0x167   : > { %6246 = vst [vmem:[#allocation87_spill] sm:$0xff] %v4690_v54  ;;  %v2092_v33 = vrot.slane %v2090_v47, 7  ;;  %v2279_v54 = vshrl.u32 %v4700_v59, 16 }
 0x168   : > { %v4692_v52 = vpop.permute.xlu0 %1521  ;;  %v2085_v24 = vrot.slane %v2083_v18, 7  ;;  %v1921_v18 = vld [vmem:[%s4658_s26 + $0x58] sm:$0xff]  ;;  %v2102_v25 = vor.u32 %v2100_v22, %v2099_v6  ;;  %v2107_v22 = vshll.u32 %v2055_v40, 16 }
 0x169   : > { %6247 = vst [vmem:[#allocation88_spill] sm:$0xff] %v4692_v52  ;;  %v1955_v14 = vpack.c.bf16 %v1921_v18, %v1921_v18  ;;  %v4754_v18 = vsel %vm3937_vm2, %v2092_v33, 0  ;;  %v2030_v52 = vunpack.c.l.b16 %v1958_v28 }
 0x16a   : > { %1609 = vrot.lane.b32.xlu2 %v4285_v4, %s3861_s27  ;;  %v2088_v34 = vor.u32 %v2086_v38, %v2085_v24  ;;  %v4764_v42 = vsel %vm3937_vm2, 0, %v2102_v25 }
 0x16b   : > { %v2315_v48 = vshrl.u32 %v4764_v42, 16 }
 0x16c   : > { %1607 = vrot.lane.b32.xlu1 %v4269_v58, %s3861_s27  ;;  %v4704_v23 = vpop.permute.xlu2 %1543  ;;  %v2093_v58 = vshll.u32 %v2053_v45, 16  ;;  %v4725_v45 = vsel %vm3937_vm2, 0, %v2088_v34  ;;  %v1923_v34 = vld [vmem:[%s4658_s26 + $0x68] sm:$0xff] }
 0x16d   : > { %6248 = vst [vmem:[#allocation89_spill] sm:$0xff] %v4704_v23  ;;  %v2286_v23 = vshll.u32 %v4713_v37, 16  ;;  %v2291_v17 = vshrl.u32 %v4725_v45, 16 }
 0x16e   : > { %1611 = vrot.lane.b32.xlu0 %v4280_v50, %s3861_s27  ;;  %v4709_v4 = vpop.permute.xlu1 %1523  ;;  %v2283_v50 = vrot.slane %v2281_v7, 1  ;;  %v2095_v38 = vor.u32 %v2093_v58, %v2092_v33 }
 0x16f   : > { %6249 = vst [vmem:[#allocation90_spill] sm:$0xff] %v4709_v4  ;;  %v4733_v7 = vrot.slane %v2286_v23, 1  ;;  %v2104_v23 = vshrl.u32 %v2055_v40, 16 }
 0x170   : > { %v4716_v10 = vpop.permute.xlu0 %1527  ;;  %v4731_v57 = vor.u32 %v2283_v50, %v2279_v54  ;;  %v4748_v54 = vsel %vm3937_vm2, 0, %v2095_v38  ;;  %v2027_v50 = vunpack.c.l.b16 %v1955_v14 }
 0x171   : > { %6250 = vst [vmem:[#allocation91_spill] sm:$0xff] %v4716_v10  ;;  %v1922_v10 = vld [vmem:[%s4658_s26 + $0x60] sm:$0xff]  ;;  %v2106_v38 = vrot.slane %v2104_v23, 7  ;;  %v2305_v33 = vshll.u32 %v4748_v54, 16  ;;  %v2303_v23 = vshrl.u32 %v4748_v54, 16 }
 0x172   : > { %1615 = vrot.lane.b32.xlu2 %v4306_v31, %s3861_s27  ;;  %v2293_v31 = vshll.u32 %v4725_v45, 16  ;;  %v1956_v40 = vpack.c.bf16 %v1922_v10, %v1922_v10  ;;  %v2056_v46 = vpack.c.b16 %v2027_v50, %v2026_v21  ;;  %v2317_v10 = vshll.u32 %v4764_v42, 16 }
 0x173   : > { %v2109_v14 = vor.u32 %v2107_v22, %v2106_v38  ;;  %v1927_v22 = vld [vmem:[%s4658_s26 + $0x88] sm:$0xff] }
 0x174   : > { %1613 = vrot.lane.b32.xlu1 %v4290_v13, %s3861_s27  ;;  %v4729_v47 = vpop.permute.xlu2 %1549  ;;  %v4744_v13 = vsel %vm3937_vm2, %v2085_v24, 0  ;;  %v2295_v4 = vrot.slane %v2293_v31, 1  ;;  %v1926_v31 = vld [vmem:[%s4658_s26 + $0x80] sm:$0xff]  ;;  %v2114_v55 = vshll.u32 %v2056_v46, 16 }
 0x175   : > { %6251 = vst [vmem:[#allocation92_spill] sm:$0xff] %v4729_v47  ;;  %v1957_v47 = vpack.c.bf16 %v1923_v34, %v1923_v34  ;;  %v2111_v34 = vshrl.u32 %v2056_v46, 16  ;;  %v4783_v0 = vsel %vm3937_vm2, 0, %v2109_v14  ;;  %v1960_v46 = vpack.c.bf16 %v1926_v31, %v1926_v31 }
 0x176   : > { %1617 = vrot.lane.b32.xlu0 %v4301_v19, %s3861_s27  ;;  %v4740_v58 = vpop.permute.xlu1 %1529  ;;  %v4758_v19 = vsel %vm3937_vm2, %v2099_v6, 0  ;;  %v2298_v6 = vshll.u32 %v4744_v13, 16 }
 0x177   : > { %6252 = vst [vmem:[#allocation93_spill] sm:$0xff] %v4740_v58  ;;  %v1925_v58 = vld [vmem:[%s4658_s26 + $0x78] sm:$0xff]  ;;  %v2029_v25 = vunpack.c.l.b16 %v1957_v47  ;;  %v2307_v47 = vrot.slane %v2305_v33, 1  ;;  %v2322_v28 = vshll.u32 %v4758_v19, 16  ;;  %v2032_v31 = vunpack.c.l.b16 %v1960_v46  ;;  %v1928_v46 = vld [vmem:[%s4658_s26 + $0x90] sm:$0xff] }
 0x178   : > { %v4760_v24 = vpop.permute.xlu0 %1533  ;;  %v1959_v8 = vpack.c.bf16 %v1925_v58, %v1925_v58  ;;  %v2113_v58 = vrot.slane %v2111_v34, 7  ;;  %v2300_v30 = vrot.slane %v2298_v6, 1 }
 0x179   : > { %6253 = vst [vmem:[#allocation94_spill] sm:$0xff] %v4760_v24  ;;  %v2028_v24 = vunpack.c.l.b16 %v1956_v40  ;;  %v2296_v40 = vor.u32 %v2295_v4, %v2291_v17  ;;  %v4792_v4 = vsel %vm3937_vm2, %v2106_v38, 0  ;;  %v1961_v17 = vpack.c.bf16 %v1927_v22, %v1927_v22 }
 0x17a   : > { %1621 = vrot.lane.b32.xlu2 %v4327_v32, %s3861_s27  ;;  %v2310_v32 = vshll.u32 %v4754_v18, 16  ;;  %v2031_v53 = vunpack.c.l.b16 %v1959_v8  ;;  %v2116_v14 = vor.u32 %v2114_v55, %v2113_v58  ;;  %v2329_v8 = vshll.u32 %v4783_v0, 16 }
 0x17b   : > { %v2057_v50 = vpack.c.b16 %v2029_v25, %v2028_v24  ;;  %v2319_v24 = vrot.slane %v2317_v10, 1  ;;  %v4801_v10 = vsel %vm3937_vm2, %v2113_v58, 0  ;;  %v2033_v22 = vunpack.c.l.b16 %v1961_v17 }
 0x17c   : > { %1619 = vrot.lane.b32.xlu1 %v4311_v11, %s3861_s27  ;;  %v4776_v21 = vpop.permute.xlu2 %1555  ;;  %v2312_v34 = vrot.slane %v2310_v32, 1  ;;  %v2346_v58 = vshll.u32 %v4801_v10, 16 }
 0x17d   : > { %6254 = vst [vmem:[#allocation95_spill] sm:$0xff] %v4776_v21  ;;  %v2118_v21 = vshrl.u32 %v2057_v50, 16  ;;  %v2121_v16 = vshll.u32 %v2057_v50, 16  ;;  %v2320_v55 = vor.u32 %v2319_v24, %v2315_v48  ;;  %v4815_v48 = vsel %vm1069_vm3, %v4731_v57, %v4733_v7 }
 0x17e   : > { %1623 = vrot.lane.b32.xlu0 %v4322_v49, %s3861_s27  ;;  %v4787_v11 = vpop.permute.xlu1 %1535  ;;  %v2058_v49 = vpack.c.b16 %v2031_v53, %v2030_v52  ;;  %v2334_v52 = vshll.u32 %v4792_v4, 16  ;;  %v4806_v53 = vsel %vm3937_vm2, 0, %v2116_v14  ;;  %6258 = vst [vmem:[#allocation99_spill] sm:$0xff] %v4815_v48  ;;  %v2327_v50 = vshrl.u32 %v4783_v0, 16 }
 0x17f   : > { %6255 = vst [vmem:[#allocation96_spill] sm:$0xff] %v4787_v11  ;;  %v2120_v25 = vrot.slane %v2118_v21, 7  ;;  %v2308_v11 = vor.u32 %v2307_v47, %v2303_v23  ;;  %v2324_v21 = vrot.slane %v2322_v28, 1  ;;  %v2331_v47 = vrot.slane %v2329_v8, 1 }
 0x180   : > { %v4794_v33 = vpop.permute.xlu0 %1539  ;;  %v2125_v38 = vshrl.u32 %v2058_v49, 16  ;;  %v2128_v32 = vshll.u32 %v2058_v49, 16  ;;  %v2059_v7 = vpack.c.b16 %v2033_v22, %v2032_v31  ;;  %v4830_v28 = vsel %vm1069_vm3, %v2296_v40, %v2300_v30  ;;  %v1929_v49 = vld [vmem:[%s4658_s26 + $0x98] sm:$0xff]  ;;  %v1930_v30 = vld [vmem:[%s4658_s26 + $0xa0] sm:$0xff]  ;;  %v1931_v40 = vld [vmem:[%s4658_s26 + $0xa8] sm:$0xff] }
 0x181   : > { %6256 = vst [vmem:[#allocation97_spill] sm:$0xff] %v4794_v33  ;;  %v2123_v6 = vor.u32 %v2121_v16, %v2120_v25  ;;  %v2341_v16 = vshll.u32 %v4806_v53, 16  ;;  %v4827_v24 = vsel %vm3937_vm2, %v2120_v25, 0  ;;  %v4833_v17 = vsel %vm1069_vm3, %v2308_v11, %v2312_v34 }
 0x182   : > { %1627 = vrot.lane.b32.xlu2 %v4341_v61, %s3861_s27  ;;  %v2127_v23 = vrot.slane %v2125_v38, 7  ;;  %6260 = vst [vmem:[#allocation101_spill] sm:$0xff] %v4833_v17  ;;  %v4838_v14 = vrot.slane %v2334_v52, 1  ;;  %v2132_v38 = vshrl.u32 %v2059_v7, 16  ;;  %v2135_v31 = vshll.u32 %v2059_v7, 16 }
 0x183   : > { %v4845_v25 = vsel %vm3937_vm2, 0, %v2123_v6  ;;  %v1962_v22 = vpack.c.bf16 %v1928_v46, %v1928_v46  ;;  %v4849_v11 = vor.u32 %v2331_v47, %v2327_v50  ;;  %v2339_v34 = vshrl.u32 %v4806_v53, 16 }
 0x184   : > { %1625 = vrot.lane.b32.xlu1 %v4332_v39, %s3861_s27  ;;  %v4810_v61 = vpop.permute.xlu2 %1561  ;;  %v2130_v57 = vor.u32 %v2128_v32, %v2127_v23  ;;  %v2343_v52 = vrot.slane %v2341_v16, 1  ;;  %v2134_v32 = vrot.slane %v2132_v38, 7  ;;  %v1963_v46 = vpack.c.bf16 %v1929_v49, %v1929_v49 }
 0x185   : > { %6257 = vst [vmem:[#allocation98_spill] sm:$0xff] %v4810_v61  ;;  %v2353_v7 = vshll.u32 %v4845_v25, 16  ;;  %v2034_v61 = vunpack.c.l.b16 %v1962_v22  ;;  %v1964_v50 = vpack.c.bf16 %v1930_v30, %v1930_v30  ;;  %v1965_v47 = vpack.c.bf16 %v1931_v40, %v1931_v40 }
 0x186   : > { %1629 = vrot.lane.b32.xlu0 %v4534_v3, %s3861_s27  ;;  %v4822_v39 = vpop.permute.xlu1 %1541  ;;  %v4836_v3 = vsel %vm1069_vm3, %v2320_v55, %v2324_v21  ;;  %v2348_v55 = vrot.slane %v2346_v58, 1  ;;  %v2358_v21 = vshll.u32 %v4827_v24, 16  ;;  %v4857_v6 = vsel %vm3937_vm2, 0, %v2130_v57 }
 0x187   : > { %6259 = vst [vmem:[#allocation100_spill] sm:$0xff] %v4822_v39  ;;  %v2351_v16 = vshrl.u32 %v4845_v25, 16  ;;  %v4868_v57 = vsel %vm3937_vm2, %v2127_v23, 0  ;;  %v2137_v38 = vor.u32 %v2135_v31, %v2134_v32  ;;  %v2035_v49 = vunpack.c.l.b16 %v1963_v46 }
 0x188   : > { %6261 = vst [vmem:[#allocation102_spill] sm:$0xff] %v4836_v3  ;;  %v4841_v8 = vpop.permute.xlu0 %1545  ;;  %v2365_v22 = vshll.u32 %v4857_v6, 16  ;;  %v2036_v30 = vunpack.c.l.b16 %v1964_v50  ;;  %v2037_v40 = vunpack.c.l.b16 %v1965_v47  ;;  %v4883_v23 = vsel %vm3937_vm2, %v2134_v32, 0 }
 0x189   : > { %6262 = vst [vmem:[#allocation103_spill] sm:$0xff] %v4841_v8  ;;  %v1932_v8 = vld [vmem:[%s4658_s26 + $0xb0] sm:$0xff]  ;;  %v2060_v31 = vpack.c.b16 %v2035_v49, %v2034_v61  ;;  %v2344_v33 = vor.u32 %v2343_v52, %v2339_v34  ;;  %v2355_v50 = vrot.slane %v2353_v7, 1  ;;  %v2370_v47 = vshll.u32 %v4868_v57, 16 }
 0x18a   : > { %2572 = vrot.lane.b32.xlu2 %v3969_v56, %s3854_s17  ;;  %v4870_v56 = vrot.slane %v2358_v21, 1  ;;  %v1933_v21 = vld [vmem:[%s4658_s26 + $0xb8] sm:$0xff]  ;;  %v1966_v46 = vpack.c.bf16 %v1932_v8, %v1932_v8  ;;  %v2363_v60 = vshrl.u32 %v4857_v6, 16  ;;  %v2061_v15 = vpack.c.b16 %v2037_v40, %v2036_v30 }
 0x18b   : > { %v2142_v20 = vshll.u32 %v2060_v31, 16  ;;  %v2367_v32 = vrot.slane %v2365_v22, 1  ;;  %v2382_v61 = vshll.u32 %v4883_v23, 16  ;;  %v1967_v49 = vpack.c.bf16 %v1933_v21, %v1933_v21 }
 0x18c   : > { %1631 = vrot.lane.b32.xlu1 %v4243_v12, %s3861_s27  ;;  %v4863_v58 = vpop.permute.xlu2 %1567  ;;  %v2038_v8 = vunpack.c.l.b16 %v1966_v46  ;;  %v2146_v52 = vshrl.u32 %v2061_v15, 16  ;;  %v2149_v7 = vshll.u32 %v2061_v15, 16  ;;  %v4902_v30 = vsel %vm1069_vm3, %v2344_v33, %v2348_v55 }
 0x18d   : > { %6263 = vst [vmem:[#allocation104_spill] sm:$0xff] %v4863_v58  ;;  %v4879_v58 = vsel %vm3937_vm2, 0, %v2137_v38  ;;  %v2139_v38 = vshrl.u32 %v2060_v31, 16  ;;  %v2039_v1 = vunpack.c.l.b16 %v1967_v49  ;;  %v1969_v31 = vpack.c.bf16 %v1935_v9, %v1935_v9 }
 0x18e   : > { %2574 = vrot.lane.b32.xlu0 %v4815_v48, %s3854_s17  ;;  %v4875_v39 = vpop.permute.xlu1 %1547  ;;  %6265 = vst [vmem:[#allocation106_spill] sm:$0xff] %v4879_v58  ;;  %v2377_v48 = vshll.u32 %v4879_v58, 16  ;;  %v2356_v40 = vor.u32 %v2355_v50, %v2351_v16  ;;  %v2148_v46 = vrot.slane %v2146_v52, 7  ;;  %v2368_v15 = vor.u32 %v2367_v32, %v2363_v60  ;;  %v1937_v32 = vld [vmem:[%s4658_s26 + $0xd8] sm:$0xff] }
 0x18f   : > { %6264 = vst [vmem:[#allocation105_spill] sm:$0xff] %v4875_v39  ;;  %v2141_v34 = vrot.slane %v2139_v38, 7  ;;  %v1936_v38 = vld [vmem:[%s4658_s26 + $0xd0] sm:$0xff]  ;;  %v2372_v2 = vrot.slane %v2370_v47, 1  ;;  %v2062_v9 = vpack.c.b16 %v2039_v1, %v2038_v8  ;;  %v2040_v55 = vunpack.c.l.b16 %v1968_v27 }
 0x190   : > { %v4889_v39 = vpop.permute.xlu0 %1551  ;;  %v2379_v35 = vrot.slane %v2377_v48, 1  ;;  %6267 = vst [vmem:[#allocation108_spill] sm:$0xff] %v4902_v30  ;;  %v2041_v16 = vunpack.c.l.b16 %v1969_v31  ;;  %v2384_v60 = vrot.slane %v2382_v61, 1  ;;  %v4924_v8 = vsel %vm1069_vm3, %v4849_v11, %v4838_v14 }
 0x191   : > { %6266 = vst [vmem:[#allocation107_spill] sm:$0xff] %v4889_v39  ;;  %v2375_v39 = vshrl.u32 %v4879_v58, 16  ;;  %v2144_v21 = vor.u32 %v2142_v20, %v2141_v34  ;;  %v4907_v48 = vsel %vm3937_vm2, %v2141_v34, 0  ;;  %v2151_v20 = vor.u32 %v2149_v7, %v2148_v46 }
 0x192   : > { %2578 = vrot.lane.b32.xlu2 %v4833_v17, %s3854_s17  ;;  %v1970_v34 = vpack.c.bf16 %v1936_v38, %v1936_v38  ;;  %6269 = vst [vmem:[#allocation110_spill] sm:$0xff] %v4924_v8  ;;  %v2153_v27 = vshrl.u32 %v2062_v9, 16  ;;  %v2394_v31 = vshll.u32 %v4907_v48, 16  ;;  %v4939_v14 = vsel %vm1069_vm3, %v2368_v15, %v2372_v2 }
 0x193   : > { %v4915_v33 = vsel %vm3937_vm2, 0, %v2144_v21  ;;  %v2380_v50 = vor.u32 %v2379_v35, %v2375_v39  ;;  %v4928_v52 = vsel %vm3937_vm2, 0, %v2151_v20  ;;  %v2156_v35 = vshll.u32 %v2062_v9, 16  ;;  %6271 = vst [vmem:[#allocation112_spill] sm:$0xff] %v4939_v14  ;;  %v1938_v20 = vld [vmem:[%s4658_s26 + $0xe0] sm:$0xff] }
 0x194   : > { %2576 = vrot.lane.b32.xlu1 %v4830_v28, %s3854_s17  ;;  %v4899_v22 = vpop.permute.xlu2 %1573  ;;  %v2389_v47 = vshll.u32 %v4915_v33, 16  ;;  %v4932_v39 = vsel %vm1069_vm3, %v2356_v40, %v4870_v56  ;;  %v2387_v61 = vshrl.u32 %v4915_v33, 16  ;;  %v2155_v11 = vrot.slane %v2153_v27, 7 }
 0x195   : > { %6270 = vst [vmem:[#allocation111_spill] sm:$0xff] %v4932_v39  ;;  %v2063_v21 = vpack.c.b16 %v2041_v16, %v2040_v55  ;;  %v1971_v38 = vpack.c.bf16 %v1937_v32, %v1937_v32  ;;  %v4943_v9 = vsel %vm1069_vm3, %v2380_v50, %v2384_v60  ;;  %v4947_v56 = vsel %vm3937_vm2, %v2148_v46, 0 }
 0x196   : > { %2580 = vrot.lane.b32.xlu0 %v4836_v3, %s3854_s17  ;;  %v4911_v49 = vpop.permute.xlu1 %1553  ;;  %v2391_v7 = vrot.slane %v2389_v47, 1  ;;  %6272 = vst [vmem:[#allocation113_spill] sm:$0xff] %v4943_v9  ;;  %v2401_v40 = vshll.u32 %v4928_v52, 16  ;;  %v2042_v47 = vunpack.c.l.b16 %v1970_v34  ;;  %v1939_v3 = vld [vmem:[%s4658_s26 + $0xe8] sm:$0xff]  ;;  %v2158_v2 = vor.u32 %v2156_v35, %v2155_v11 }
 0x197   : > { %v4957_v55 = vsel %vm3937_vm2, %v2155_v11, 0  ;;  %v2160_v16 = vshrl.u32 %v2063_v21, 16  ;;  %v2163_v50 = vshll.u32 %v2063_v21, 16  ;;  %v2396_v32 = vrot.slane %v2394_v31, 1 }
 0x198   : > { %v4919_v1 = vpop.permute.xlu0 %1557  ;;  %6274 = vst [vmem:[#allocation115_spill] sm:$0xff] %v4957_v55  ;;  %v2392_v60 = vor.u32 %v2391_v7, %v2387_v61  ;;  %v2418_v46 = vshll.u32 %v4957_v55, 16  ;;  %v1972_v27 = vpack.c.bf16 %v1938_v20, %v1938_v20  ;;  %v1973_v11 = vpack.c.bf16 %v1939_v3, %v1939_v3 }
 0x199   : > { %6268 = vst [vmem:[#allocation109_spill] sm:$0xff] %v4919_v1  ;;  %v2162_v35 = vrot.slane %v2160_v16, 7  ;;  %v2406_v61 = vshll.u32 %v4947_v56, 16  ;;  %v2403_v20 = vrot.slane %v2401_v40, 1 }
 0x19a   : > { %2584 = vrot.lane.b32.xlu2 %v4902_v30, %s3854_s17  ;;  %v4966_v30 = vsel %vm3937_vm2, 0, %v2158_v2  ;;  %v2420_v16 = vrot.slane %v2418_v46, 1  ;;  %v2045_v17 = vunpack.c.l.b16 %v1973_v11 }
 0x19b   : > { %6276 = vst [vmem:[#allocation117_spill] sm:$0xff] %v4966_v30  ;;  %v2411_v7 = vshrl.u32 %v4966_v30, 16  ;;  %v2413_v31 = vshll.u32 %v4966_v30, 16  ;;  %v4976_v55 = vsel %vm3937_vm2, %v2162_v35, 0 }
 0x19c   : > { %2582 = vrot.lane.b32.xlu1 %v4924_v8, %s3854_s17  ;;  %v4953_v15 = vpop.permute.xlu2 %1579  ;;  %v2043_v8 = vunpack.c.l.b16 %v1971_v38  ;;  %6277 = vst [vmem:[#allocation118_spill] sm:$0xff] %v4976_v55  ;;  %v4979_v38 = vsel %vm1069_vm3, %v2392_v60, %v2396_v32 }
 0x19d   : > { %6273 = vst [vmem:[#allocation114_spill] sm:$0xff] %v4953_v15  ;;  %v2399_v15 = vshrl.u32 %v4928_v52, 16  ;;  %v2415_v3 = vrot.slane %v2413_v31, 1 }
 0x19e   : > { %2586 = vrot.lane.b32.xlu0 %v4932_v39, %s3854_s17  ;;  %v4962_v34 = vpop.permute.xlu1 %1559  ;;  %v2165_v39 = vor.u32 %v2163_v50, %v2162_v35  ;;  %v2064_v2 = vpack.c.b16 %v2043_v8, %v2042_v47  ;;  %v2430_v47 = vshll.u32 %v4976_v55, 16 }
 0x19f   : > { %6275 = vst [vmem:[#allocation116_spill] sm:$0xff] %v4962_v34  ;;  %v2044_v34 = vunpack.c.l.b16 %v1972_v27  ;;  %v2416_v1 = vor.u32 %v2415_v3, %v2411_v7  ;;  %v2404_v27 = vor.u32 %v2403_v20, %v2399_v15 }
 0x1a0   : > { %v4972_v21 = vpop.permute.xlu0 %1563  ;;  %v4985_v30 = vsel %vm3937_vm2, 0, %v2165_v39  ;;  %v2167_v40 = vshrl.u32 %v2064_v2, 16  ;;  %v2170_v50 = vshll.u32 %v2064_v2, 16  ;;  %v2408_v39 = vrot.slane %v2406_v61, 1 }
 0x1a1   : > { %v2423_v35 = vshrl.u32 %v4985_v30, 16  ;;  %v2425_v8 = vshll.u32 %v4985_v30, 16  ;;  %v2065_v46 = vpack.c.b16 %v2045_v17, %v2044_v34  ;;  %v2432_v17 = vrot.slane %v2430_v47, 1 }
 0x1a2   : > { %2590 = vrot.lane.b32.xlu2 %v4943_v9, %s3854_s17  ;;  %v2169_v32 = vrot.slane %v2167_v40, 7  ;;  %v5012_v20 = vsel %vm1069_vm3, %v2404_v27, %v2408_v39 }
 0x1a3   : > { %v2427_v31 = vrot.slane %v2425_v8, 1  ;;  %v2174_v3 = vshrl.u32 %v2065_v46, 16  ;;  %v2177_v55 = vshll.u32 %v2065_v46, 16 }
 0x1a4   : > { %2588 = vrot.lane.b32.xlu1 %v4939_v14, %s3854_s17  ;;  %v4992_v60 = vpop.permute.xlu2 %1585  ;;  %v2172_v7 = vor.u32 %v2170_v50, %v2169_v32  ;;  %v5000_v2 = vsel %vm3937_vm2, %v2169_v32, 0  ;;  %v5003_v14 = vsel %vm1069_vm3, %v2416_v1, %v2420_v16 }
 0x1a5   : > { %6278 = vst [vmem:[#allocation119_spill] sm:$0xff] %v5000_v2  ;;  %v2428_v40 = vor.u32 %v2427_v31, %v2423_v35  ;;  %v2176_v61 = vrot.slane %v2174_v3, 7  ;;  %v2442_v32 = vshll.u32 %v5000_v2, 16 }
 0x1a6   : > { %2592 = vrot.lane.b32.xlu0 %v4979_v38, %s3854_s17  ;;  %v4996_v11 = vpop.permute.xlu1 %1565  ;;  %v5009_v34 = vsel %vm3937_vm2, 0, %v2172_v7 }
 0x1a7   : > { %6279 = vst [vmem:[#allocation120_spill] sm:$0xff] %v5009_v34  ;;  %v2435_v50 = vshrl.u32 %v5009_v34, 16  ;;  %v2437_v8 = vshll.u32 %v5009_v34, 16  ;;  %v2179_v1 = vor.u32 %v2177_v55, %v2176_v61  ;;  %v5021_v16 = vsel %vm3937_vm2, %v2176_v61, 0 }
 0x1a8   : > { %v5005_v15 = vpop.permute.xlu0 %1569  ;;  %6280 = vst [vmem:[#allocation121_spill] sm:$0xff] %v5021_v16  ;;  %v5024_v35 = vsel %vm1069_vm3, %v2428_v40, %v2432_v17  ;;  %v2454_v46 = vshll.u32 %v5021_v16, 16  ;;  %v2444_v31 = vrot.slane %v2442_v32, 1  ;;  %v2494_v16 = vrot.slane %v4713_v37, 1 }
 0x1a9   : > { %v2439_v47 = vrot.slane %v2437_v8, 1  ;;  %v5033_v39 = vsel %vm3937_vm2, 0, %v2179_v1  ;;  %v1901_v1 = vld [vmem:[%s6097_s6 + $0x10] sm:$0x3] }
 0x1aa   : > { %2596 = vrot.lane.b32.xlu2 %v5003_v14, %s3854_s17  ;;  %6281 = vst [vmem:[#allocation122_spill] sm:$0xff] %v5033_v39  ;;  %v2447_v7 = vshrl.u32 %v5033_v39, 16  ;;  %v2449_v3 = vshll.u32 %v5033_v39, 16  ;;  %v2456_v61 = vrot.slane %v2454_v46, 1  ;;  %v3239_v5 = vunpack.c.l.b16 %v1901_v1 }
 0x1ab   : > { %v2440_v55 = vor.u32 %v2439_v47, %v2435_v50  ;;  %v2500_v1 = vrot.slane %v4754_v18, 1 }
 0x1ac   : > { %2594 = vrot.lane.b32.xlu1 %v5012_v20, %s3854_s17  ;;  %v5029_v27 = vpop.permute.xlu2 %1591  ;;  %v2451_v17 = vrot.slane %v2449_v3, 1  ;;  %v2493_v3 = vrot.slane %v4700_v59, 1 }
 0x1ad   : > { %v5047_v50 = vsel %vm1069_vm3, %v2440_v55, %v2444_v31  ;;  %v2496_v55 = vrot.slane %v4725_v45, 1  ;;  %v2497_v31 = vrot.slane %v4744_v13, 1  ;;  %v3785_v13 = vld [vmem:[%s6097_s6 + $0x8] sm:$0xff] }
 0x1ae   : > { %2598 = vrot.lane.b32.xlu0 %v5024_v35, %s3854_s17  ;;  %v5039_v40 = vpop.permute.xlu1 %1571  ;;  %6282 = vst [vmem:[#allocation123_spill] sm:$0xff] %v5047_v50  ;;  %v2452_v32 = vor.u32 %v2451_v17, %v2447_v7  ;;  %v3242_v7 = vpack.c.b16 %v3239_v5, %v3239_v5  ;;  %v5072_v37 = vsel %vm1294_vm4, %v2493_v3, %v2494_v16  ;;  %v2502_v16 = vrot.slane %v4764_v42, 1 }
 0x1af   : > { %v5075_v5 = vsel %vm1294_vm4, %v2496_v55, %v2497_v31  ;;  %v2503_v3 = vrot.slane %v4758_v19, 1  ;;  %v2505_v55 = vrot.slane %v4783_v0, 1  ;;  %v2506_v31 = vrot.slane %v4792_v4, 1 }
 0x1b0   : > { %v5041_v8 = vpop.permute.xlu0 %1575  ;;  %v5050_v47 = vsel %vm1069_vm3, %v2452_v32, %v2456_v61  ;;  %v2499_v61 = vrot.slane %v4748_v54, 1  ;;  %v3278_v32 = vsel %vm3137_vm5, %v3242_v7, 0  ;;  %v3784_v7 = vld [vmem:[%s6097_s6] sm:$0xff] }
 0x1b1   : > { %6283 = vst [vmem:[#allocation124_spill] sm:$0xff] %v5050_v47  ;;  %3285 = vmatpush.bf16.msra.mxu1 %v3278_v32  ;;  %3791 = vmatpush.bf16.msra.mxu3 %v3278_v32  ;;  %v2509_v32 = vrot.slane %v4801_v10, 1  ;;  %v5105_v39 = vsel %vm1294_vm4, %v2502_v16, %v2503_v3  ;;  %v5108_v4 = vsel %vm1294_vm4, %v2505_v55, %v2506_v31  ;;  %v2512_v16 = vrot.slane %v4827_v24, 1 }
 0x1b2   : > { %2602 = vrot.lane.b32.xlu2 %v5050_v47, %s3854_s17  ;;  %v2514_v3 = vrot.slane %v4857_v6, 1  ;;  %v2515_v55 = vrot.slane %v4868_v57, 1 }
 0x1b4   : > { %2600 = vrot.lane.b32.xlu1 %v5047_v50, %s3854_s17  ;;  %v5056_v46 = vpop.permute.xlu2 %1597  ;;  %v2511_v50 = vrot.slane %v4845_v25, 1  ;;  %v5135_v24 = vsel %vm1294_vm4, %v2514_v3, %v2515_v55  ;;  %v1635_v3 = vsel %vm1633_vm6, %v3962_v26, %v4367_v63  ;;  %v6319_v26 = vld [vmem:[#allocation83_spill] sm:$0xff] }
 0x1b5   : > { %3286 = vmatpush.bf16.msra.mxu1 %v3785_v13  ;;  %3792 = vmatpush.bf16.msra.mxu3 %v3785_v13  ;;  %6286 = vst [vmem:[#allocation127_spill] sm:$0xff] %v5135_v24 }
 0x1b6   : > { %2604 = vrot.lane.b32.xlu0 %v4243_v12, %s3855_s18  ;;  %v5064_v17 = vpop.permute.xlu1 %1577  ;;  %v5081_v12 = vsel %vm1294_vm4, %v2499_v61, %v2500_v1  ;;  %v2508_v1 = vrot.slane %v4806_v53, 1  ;;  %v5132_v2 = vsel %vm1294_vm4, %v2511_v50, %v2512_v16  ;;  %v2521_v50 = vrot.slane %v4907_v48, 1 }
 0x1b7   : > { %6285 = vst [vmem:[#allocation126_spill] sm:$0xff] %v5132_v2 }
 0x1b8   : > { %v5069_v47 = vpop.permute.xlu0 %1581  ;;  %v5111_v13 = vsel %vm1294_vm4, %v2508_v1, %v2509_v32  ;;  %v2518_v1 = vrot.slane %v4883_v23, 1  ;;  %v2520_v23 = vrot.slane %v4915_v33, 1 }
 0x1b9   : > { %3287 = vmatpush.bf16.msra.mxu1 %v3784_v7  ;;  %3793 = vmatpush.bf16.msra.mxu3 %v3784_v7  ;;  %6284 = vst [vmem:[#allocation125_spill] sm:$0xff] %v5111_v13  ;;  %v2517_v7 = vrot.slane %v4879_v58, 1 }
 0x1ba   : > { %2608 = vrot.lane.b32.xlu2 %v5075_v5, %s3855_s18 }
 0x1bb   : > { %v5138_v34 = vsel %vm1294_vm4, %v2517_v7, %v2518_v1  ;;  %v1668_v7 = vsel %vm1666_vm8, %v1635_v3, %v4453_v36  ;;  %v5158_v1 = vsel %vm1294_vm4, %v2520_v23, %v2521_v50  ;;  %v6288_v23 = vld [vmem:[#allocation39_spill] sm:$0xff] }
 0x1bc   : > { %2606 = vrot.lane.b32.xlu1 %v5072_v37, %s3855_s18  ;;  %v5087_v18 = vpop.permute.xlu2 %1603  ;;  %6287 = vst [vmem:[#allocation128_spill] sm:$0xff] %v5138_v34  ;;  %v1701_v48 = vsel %vm1699_vm7, %v1668_v7, %v4476_v41 }
 0x1be   : > { %2610 = vrot.lane.b32.xlu0 %v5081_v12, %s3855_s18  ;;  %v5098_v61 = vpop.permute.xlu1 %1583 }
 0x1c0   : > { %v5102_v19 = vpop.permute.xlu0 %1587 }
 0x1c2   : > { %2614 = vrot.lane.b32.xlu2 %v5108_v4, %s3855_s18 }
 0x1c4   : > { %2612 = vrot.lane.b32.xlu1 %v5105_v39, %s3855_s18  ;;  %v5117_v10 = vpop.permute.xlu2 %1609 }
 0x1c6   : > { %2616 = vrot.lane.b32.xlu0 %v5111_v13, %s3855_s18  ;;  %v5125_v31 = vpop.permute.xlu1 %1589 }
 0x1c8   : > { %v5129_v32 = vpop.permute.xlu0 %1593 }
 0x1ca   : > { %2620 = vrot.lane.b32.xlu2 %v5135_v24, %s3855_s18  ;;  %v1734_v24 = vsel %vm1732_vm9, %v1701_v48, %v4582_v62  ;;  %v1661_v62 = vsel %vm1633_vm6, %v4197_v44, %v4437_v51  ;;  %v6290_v44 = vld [vmem:[#allocation80_spill] sm:$0xff] }
 0x1cb   : > { %v1767_v63 = vsel %vm1765_vm11, %v1734_v24, %v4652_v43  ;;  %v1694_v50 = vsel %vm1666_vm8, %v1661_v62, %v6288_v23 }
 0x1cc   : > { %2618 = vrot.lane.b32.xlu1 %v5132_v2, %s3855_s18  ;;  %v5144_v57 = vpop.permute.xlu2 %1615  ;;  %v1800_v41 = vsel %vm1798_vm10, %v1767_v63, %v4686_v29  ;;  %v6289_v29 = vld [vmem:[#allocation64_spill] sm:$0xff] }
 0x1cd   : > { %v1833_v43 = vsel %vm1831_vm12, %v1800_v41, %v5005_v15  ;;  %v1727_v7 = vsel %vm1699_vm7, %v1694_v50, %v6289_v29  ;;  %v6291_v15 = vld [vmem:[#allocation84_spill] sm:$0xff]  ;;  %v6292_v50 = vld [vmem:[#allocation25_spill] sm:$0xff]  ;;  %v6294_v29 = vld [vmem:[#allocation30_spill] sm:$0xff] }
 0x1ce   : > { %2622 = vrot.lane.b32.xlu0 %v5138_v34, %s3855_s18  ;;  %v1596_v16 = vpop.permute.xlu1 %1595  ;;  %v1760_v51 = vsel %vm1732_vm9, %v1727_v7, %v6290_v44  ;;  %v6295_v44 = vld [vmem:[#allocation22_spill] sm:$0xff]  ;;  %v6300_v2 = vld [vmem:[#allocation60_spill] sm:$0xff] }
 0x1cf   : > { %v1793_v63 = vsel %vm1765_vm11, %v1760_v51, %v6291_v15  ;;  %v6296_v51 = vld [vmem:[#allocation11_spill] sm:$0xff] }
 0x1d0   : > { %v5153_v55 = vpop.permute.xlu0 %1599  ;;  %v1826_v41 = vsel %vm1798_vm10, %v1793_v63, %v4972_v21  ;;  %v1651_v15 = vsel %vm1633_vm6, %v6296_v51, %v6295_v44  ;;  %v6297_v63 = vld [vmem:[#allocation52_spill] sm:$0xff]  ;;  %v6303_v44 = vld [vmem:[#allocation97_spill] sm:$0xff] }
 0x1d1   : > { %v1859_v62 = vsel %vm1831_vm12, %v1826_v41, %v1596_v16  ;;  %v6304_v51 = vld [vmem:[#allocation88_spill] sm:$0xff] }
 0x1d2   : > { %2652 = vrot.lane.b32.xlu2 %v4879_v58, %s3856_s19 }
 0x1d4   : > { %2624 = vrot.lane.b32.xlu1 %v5158_v1, %s3855_s18  ;;  %v5170_v36 = vpop.permute.xlu2 %1621 }
 0x1d6   : > { %2684 = vrot.lane.b32.xlu0 %v4943_v9, %s3857_s20  ;;  %v1602_v24 = vpop.permute.xlu1 %1601 }
 0x1d7   : > { %v1866_v3 = vsel %vm1864_vm14, %v1833_v43, %v1602_v24 }
 0x1d8   : > { %v5186_v48 = vpop.permute.xlu0 %1605  ;;  %3757 = vmatmul.msk.bf16.vlgmr.msra.gmra.mxu1 %vm3104_vm13, %v1866_v3  ;;  %v6293_v3 = vld [vmem:[#allocation7_spill] sm:$0xff] }
 0x1d9   : > { %v1637_v21 = vsel %vm1633_vm6, %v6293_v3, %v6292_v50  ;;  %v6301_v3 = vld [vmem:[#allocation73_spill] sm:$0xff] }
 0x1da   : > { %2748 = vrot.lane.b32.xlu2 %v4915_v33, %s3859_s22  ;;  %v1670_v7 = vsel %vm1666_vm8, %v1637_v21, %v6294_v29  ;;  %v6302_v29 = vld [vmem:[#allocation65_spill] sm:$0xff] }
 0x1db   : > { %v1703_v41 = vsel %vm1699_vm7, %v1670_v7, %v6297_v63 }
 0x1dc   : > { %2716 = vrot.lane.b32.xlu1 %v5138_v34, %s3858_s21  ;;  %v1628_v43 = vpop.permute.xlu2 %1627  ;;  %v6299_v34 = vld [vmem:[#allocation68_spill] sm:$0xff] }
 0x1dd   : > { %v5201_v24 = vsel %vm1864_vm14, %v1859_v62, %v1628_v43  ;;  %v6298_v62 = vld [vmem:[#allocation43_spill] sm:$0xff]  ;;  %v1736_v9 = vsel %vm1732_vm9, %v1703_v41, %v6299_v34 }
 0x1de   : > { %2780 = vrot.lane.b32.xlu0 %v4979_v38, %s3860_s23  ;;  %v5205_v23 = vpop.permute.xlu1 %1607  ;;  %v1684_v43 = vsel %vm1666_vm8, %v1651_v15, %v6298_v62  ;;  %v1769_v13 = vsel %vm1765_vm11, %v1736_v9, %v6301_v3  ;;  %v6305_v15 = vld [vmem:[#allocation99_spill] sm:$0xff] }
 0x1df   : > { %v1717_v50 = vsel %vm1699_vm7, %v1684_v43, %v6300_v2  ;;  %v1802_v34 = vsel %vm1798_vm10, %v1769_v13, %v6303_v44 }
 0x1e0   : > { %v5210_v16 = vpop.permute.xlu0 %1611  ;;  %v1750_v7 = vsel %vm1732_vm9, %v1717_v50, %v6302_v29  ;;  %v1835_v9 = vsel %vm1831_vm12, %v1802_v34, %v5039_v40  ;;  %v6309_v34 = vld [vmem:[#allocation27_spill] sm:$0xff] }
 0x1e1   : > { %v1783_v2 = vsel %vm1765_vm11, %v1750_v7, %v6304_v51  ;;  %v1868_v62 = vsel %vm1864_vm14, %v1835_v9, %v5087_v18  ;;  %v6307_v18 = vld [vmem:[#allocation6_spill] sm:$0xff]  ;;  %v6312_v9 = vld [vmem:[#allocation13_spill] sm:$0xff] }
 0x1e2   : > { %2636 = vrot.lane.b32.xlu2 %v4700_v59, %s3856_s19  ;;  %v1816_v41 = vsel %vm1798_vm10, %v1783_v2, %v4911_v49  ;;  %v6308_v7 = vld [vmem:[#allocation38_spill] sm:$0xff]  ;;  %v6311_v2 = vld [vmem:[#allocation31_spill] sm:$0xff] }
 0x1e3   : > { %v1849_v13 = vsel %vm1831_vm12, %v1816_v41, %v4992_v60  ;;  %v6306_v60 = vld [vmem:[#allocation23_spill] sm:$0xff]  ;;  %v6313_v41 = vld [vmem:[#allocation54_spill] sm:$0xff] }
 0x1e4   : > { %2812 = vrot.lane.b32.xlu1 %v5158_v1, %s3861_s27  ;;  %v5231_v21 = vpop.permute.xlu2 %2572  ;;  %v1639_v3 = vsel %vm1633_vm6, %v6307_v18, %v6306_v60  ;;  %v6316_v18 = vld [vmem:[#allocation59_spill] sm:$0xff] }
 0x1e5   : > { %v1672_v44 = vsel %vm1666_vm8, %v1639_v3, %v6308_v7  ;;  %v6317_v7 = vld [vmem:[#allocation50_spill] sm:$0xff] }
 0x1e6   : > { %2668 = vrot.lane.b32.xlu0 %v6305_v15, %s3857_s20  ;;  %v5243_v63 = vpop.permute.xlu1 %1613  ;;  %v1653_v15 = vsel %vm1633_vm6, %v6312_v9, %v6311_v2 }
 0x1e8   : > { %v1618_v43 = vpop.permute.xlu0 %1617  ;;  %3758 = vmatmul.msk.bf16.gmra.mxu1 %vm3104_vm13, %v1868_v62  ;;  %v1705_v62 = vsel %vm1699_vm7, %v1672_v44, %v6313_v41 }
 0x1e9   : > { %v1882_v50 = vsel %vm1864_vm14, %v1849_v13, %v1618_v43  ;;  %v6314_v13 = vld [vmem:[#allocation45_spill] sm:$0xff]  ;;  %v1738_v3 = vsel %vm1732_vm9, %v1705_v62, %v6316_v18  ;;  %v6322_v62 = vld [vmem:[#allocation100_spill] sm:$0xff] }
 0x1ea   : > { %3765 = vmatmul.msk.bf16.vlgmr.msra.gmra.mxu3 %vm3104_vm13, %v1882_v50  ;;  %2732 = vrot.lane.b32.xlu2 %v4725_v45, %s3859_s22  ;;  %v1686_v43 = vsel %vm1666_vm8, %v1653_v15, %v6314_v13  ;;  %v6315_v50 = vld [vmem:[#allocation49_spill] sm:$0xff]  ;;  %v1771_v2 = vsel %vm1765_vm11, %v1738_v3, %v6319_v26  ;;  %v6321_v15 = vld [vmem:[#allocation75_spill] sm:$0xff] }
 0x1eb   : > { %v1719_v58 = vsel %vm1699_vm7, %v1686_v43, %v6317_v7  ;;  %v1804_v13 = vsel %vm1798_vm10, %v1771_v2, %v6322_v62  ;;  %v6323_v43 = vld [vmem:[#allocation90_spill] sm:$0xff]  ;;  %v6325_v7 = vld [vmem:[#allocation95_spill] sm:$0xff]  ;;  %v6326_v2 = vld [vmem:[#allocation36_spill] sm:$0xff] }
 0x1ec   : > { %2700 = vrot.lane.b32.xlu1 %v5072_v37, %s3858_s21  ;;  %v5258_v49 = vpop.permute.xlu2 %2578  ;;  %v6310_v37 = vld [vmem:[#allocation17_spill] sm:$0xff]  ;;  %v1752_v41 = vsel %vm1732_vm9, %v1719_v58, %v6321_v15  ;;  %v1837_v18 = vsel %vm1831_vm12, %v1804_v13, %v4899_v22  ;;  %v6329_v13 = vld [vmem:[#allocation56_spill] sm:$0xff] }
 0x1ed   : > { %v1663_v51 = vsel %vm1633_vm6, %v6310_v37, %v6309_v34  ;;  %v6318_v34 = vld [vmem:[#allocation66_spill] sm:$0xff]  ;;  %v1785_v26 = vsel %vm1765_vm11, %v1752_v41, %v6323_v43  ;;  %v6328_v41 = vld [vmem:[#allocation51_spill] sm:$0xff] }
 0x1ee   : > { %2764 = vrot.lane.b32.xlu0 %v4830_v28, %s3860_s23  ;;  %v1620_v40 = vpop.permute.xlu1 %1619  ;;  %v1696_v60 = vsel %vm1666_vm8, %v1663_v51, %v6315_v50  ;;  %v6320_v51 = vld [vmem:[#allocation70_spill] sm:$0xff]  ;;  %v1818_v58 = vsel %vm1798_vm10, %v1785_v26, %v6325_v7  ;;  %v2523_v7 = vrot.slane %v4928_v52, 1 }
 0x1ef   : > { %v1729_v37 = vsel %vm1699_vm7, %v1696_v60, %v6318_v34  ;;  %v6324_v50 = vld [vmem:[#allocation94_spill] sm:$0xff] }
 0x1f0   : > { %v5265_v29 = vpop.permute.xlu0 %1623  ;;  %v1762_v9 = vsel %vm1732_vm9, %v1729_v37, %v6320_v51  ;;  %v1870_v37 = vsel %vm1864_vm14, %v1837_v18, %v5186_v48  ;;  %v6327_v51 = vld [vmem:[#allocation18_spill] sm:$0xff] }
 0x1f1   : > { %v1795_v60 = vsel %vm1765_vm11, %v1762_v9, %v6324_v50  ;;  %v1665_v9 = vsel %vm1633_vm6, %v6327_v51, %v6326_v2  ;;  %v6333_v2 = vld [vmem:[#allocation26_spill] sm:$0xff]  ;;  %v6334_v51 = vld [vmem:[#allocation9_spill] sm:$0xff] }
 0x1f2   : > { %2654 = vrot.lane.b32.xlu2 %v4915_v33, %s3856_s19  ;;  %v1828_v34 = vsel %vm1798_vm10, %v1795_v60, %v4996_v11  ;;  %v1698_v62 = vsel %vm1666_vm8, %v1665_v9, %v6328_v41  ;;  %v6332_v60 = vld [vmem:[#allocation104_spill] sm:$0xff]  ;;  %v1641_v9 = vsel %vm1633_vm6, %v6334_v51, %v6333_v2  ;;  %v6337_v41 = vld [vmem:[#allocation15_spill] sm:$0xff]  ;;  %v6344_v2 = vld [vmem:[#allocation89_spill] sm:$0xff] }
 0x1f3   : > { %v1861_v22 = vsel %vm1831_vm12, %v1828_v34, %v5056_v46  ;;  %v1731_v43 = vsel %vm1699_vm7, %v1698_v62, %v6329_v13  ;;  %v6330_v46 = vld [vmem:[#allocation81_spill] sm:$0xff] }
 0x1f4   : > { %2796 = vrot.lane.b32.xlu1 %v5075_v5, %s3861_s27  ;;  %v5293_v44 = vpop.permute.xlu2 %2584  ;;  %v1764_v26 = vsel %vm1732_vm9, %v1731_v43, %v6330_v46  ;;  %v6339_v43 = vld [vmem:[#allocation37_spill] sm:$0xff] }
 0x1f6   : > { %2686 = vrot.lane.b32.xlu0 %v4979_v38, %s3857_s20  ;;  %v5309_v3 = vpop.permute.xlu1 %1625  ;;  %v1851_v38 = vsel %vm1831_vm12, %v1818_v58, %v5102_v19  ;;  %v6331_v19 = vld [vmem:[#allocation96_spill] sm:$0xff]  ;;  %v2524_v58 = vrot.slane %v4947_v56, 1 }
 0x1f7   : > { %v1884_v11 = vsel %vm1864_vm14, %v1851_v38, %v1620_v40  ;;  %v1797_v50 = vsel %vm1765_vm11, %v1764_v26, %v6331_v19  ;;  %v6335_v38 = vld [vmem:[#allocation40_spill] sm:$0xff]  ;;  %v6340_v26 = vld [vmem:[#allocation69_spill] sm:$0xff] }
 0x1f8   : > { %v1630_v15 = vpop.permute.xlu0 %1629  ;;  %3759 = vmatmul.msk.bf16.gmra.mxu1 %vm3104_vm13, %v1870_v37  ;;  %v1830_v18 = vsel %vm1798_vm10, %v1797_v50, %v6332_v60  ;;  %v5363_v56 = vsel %vm1294_vm4, %v2523_v7, %v2524_v58  ;;  %v6341_v50 = vld [vmem:[#allocation61_spill] sm:$0xff] }
 0x1f9   : > { %v5329_v48 = vsel %vm1864_vm14, %v1861_v22, %v1630_v15  ;;  %v1863_v34 = vsel %vm1831_vm12, %v1830_v18, %v5153_v55  ;;  %v1674_v15 = vsel %vm1666_vm8, %v1641_v9, %v6335_v38  ;;  %v6336_v55 = vld [vmem:[#allocation32_spill] sm:$0xff]  ;;  %v6342_v18 = vld [vmem:[#allocation85_spill] sm:$0xff]  ;;  %v6345_v9 = vld [vmem:[#allocation82_spill] sm:$0xff] }
 0x1fa   : > { %3766 = vmatmul.msk.bf16.gmra.mxu3 %vm3104_vm13, %v1884_v11  ;;  %2750 = vrot.lane.b32.xlu2 %v4928_v52, %s3859_s22  ;;  %v1655_v62 = vsel %vm1633_vm6, %v6337_v41, %v6336_v55  ;;  %v6338_v11 = vld [vmem:[#allocation44_spill] sm:$0xff]  ;;  %v6346_v41 = vld [vmem:[#allocation109_spill] sm:$0xff] }
 0x1fb   : > { %v1707_v13 = vsel %vm1699_vm7, %v1674_v15, %v6338_v11  ;;  %v1688_v46 = vsel %vm1666_vm8, %v1655_v62, %v6339_v43 }
 0x1fc   : > { %2718 = vrot.lane.b32.xlu1 %v5158_v1, %s3858_s21  ;;  %v5342_v40 = vpop.permute.xlu2 %2590  ;;  %v1740_v19 = vsel %vm1732_vm9, %v1707_v13, %v6340_v26  ;;  %v1721_v60 = vsel %vm1699_vm7, %v1688_v46, %v6341_v50  ;;  %v6348_v46 = vld [vmem:[#allocation20_spill] sm:$0xff]  ;;  %v6349_v26 = vld [vmem:[#allocation5_spill] sm:$0xff] }
 0x1fd   : > { %v1773_v7 = vsel %vm1765_vm11, %v1740_v19, %v6342_v18  ;;  %v1643_v19 = vsel %vm1633_vm6, %v6349_v26, %v6348_v46  ;;  %v6351_v18 = vld [vmem:[#allocation24_spill] sm:$0xff]  ;;  %v6359_v46 = vld [vmem:[#allocation103_spill] sm:$0xff] }
 0x1fe   : > { %2782 = vrot.lane.b32.xlu0 %v5012_v20, %s3860_s23  ;;  %v1632_v37 = vpop.permute.xlu1 %1631  ;;  %v1806_v51 = vsel %vm1798_vm10, %v1773_v7, %v6344_v2  ;;  %v6354_v2 = vld [vmem:[#allocation46_spill] sm:$0xff] }
 0x1ff   : > { %v5353_v1 = vsel %vm1864_vm14, %v1863_v34, %v1632_v37  ;;  %v6343_v34 = vld [vmem:[#allocation77_spill] sm:$0xff]  ;;  %v1839_v15 = vsel %vm1831_vm12, %v1806_v51, %v5041_v8 }
 0x200   : > { %v5358_v22 = vpop.permute.xlu0 %2574  ;;  %v1754_v37 = vsel %vm1732_vm9, %v1721_v60, %v6343_v34  ;;  %v1872_v11 = vsel %vm1864_vm14, %v1839_v15, %v5205_v23  ;;  %v6353_v34 = vld [vmem:[#allocation55_spill] sm:$0xff] }
 0x201   : > { %v1787_v38 = vsel %vm1765_vm11, %v1754_v37, %v6345_v9  ;;  %v6355_v9 = vld [vmem:[#allocation71_spill] sm:$0xff] }
 0x202   : > { %2638 = vrot.lane.b32.xlu2 %v4725_v45, %s3856_s19  ;;  %v1820_v62 = vsel %vm1798_vm10, %v1787_v38, %v6346_v41  ;;  %v6356_v15 = vld [vmem:[#allocation63_spill] sm:$0xff] }
 0x203   : > { %v1853_v13 = vsel %vm1831_vm12, %v1820_v62, %v5125_v31  ;;  %v6357_v62 = vld [vmem:[#allocation76_spill] sm:$0xff] }
 0x204   : > { %2814 = vrot.lane.b32.xlu1 %v5363_v56, %s3861_s27  ;;  %v5382_v58 = vpop.permute.xlu2 %2596  ;;  %v1886_v8 = vsel %vm1864_vm14, %v1853_v13, %v5170_v36  ;;  %v6350_v36 = vld [vmem:[#allocation33_spill] sm:$0xff]  ;;  %v6358_v13 = vld [vmem:[#allocation67_spill] sm:$0xff] }
 0x205   : > { %v1676_v60 = vsel %vm1666_vm8, %v1643_v19, %v6350_v36  ;;  %v6360_v19 = vld [vmem:[#allocation91_spill] sm:$0xff] }
 0x206   : > { %2670 = vrot.lane.b32.xlu0 %v4830_v28, %s3857_s20  ;;  %v2577_v55 = vpop.permute.xlu1 %2576  ;;  %v6347_v28 = vld [vmem:[#allocation101_spill] sm:$0xff]  ;;  %v1709_v37 = vsel %vm1699_vm7, %v1676_v60, %v6353_v34  ;;  %v6361_v34 = vld [vmem:[#allocation116_spill] sm:$0xff] }
 0x207   : > { %v1742_v38 = vsel %vm1732_vm9, %v1709_v37, %v6355_v9 }
 0x208   : > { %v5400_v43 = vpop.permute.xlu0 %2580  ;;  %3760 = vmatmul.msk.bf16.gmra.mxu1 %vm3104_vm13, %v1872_v11  ;;  %v1775_v11 = vsel %vm1765_vm11, %v1742_v38, %v6357_v62  ;;  %v6364_v62 = vld [vmem:[#allocation21_spill] sm:$0xff] }
 0x209   : > { %v1808_v26 = vsel %vm1798_vm10, %v1775_v11, %v6359_v46  ;;  %v6365_v11 = vld [vmem:[#allocation8_spill] sm:$0xff]  ;;  %v6366_v46 = vld [vmem:[#allocation41_spill] sm:$0xff] }
 0x20a   : > { %3767 = vmatmul.msk.bf16.gmra.mxu3 %vm3104_vm13, %v1886_v8  ;;  %2734 = vrot.lane.b32.xlu2 %v4748_v54, %s3859_s22  ;;  %v1841_v60 = vsel %vm1831_vm12, %v1808_v26, %v5064_v17 }
 0x20c   : > { %2702 = vrot.lane.b32.xlu1 %v5075_v5, %s3858_s21  ;;  %v5412_v31 = vpop.permute.xlu2 %2602  ;;  %v6352_v5 = vld [vmem:[#allocation14_spill] sm:$0xff] }
 0x20d   : > { %v1657_v7 = vsel %vm1633_vm6, %v6352_v5, %v6351_v18  ;;  %v2833_v18 = vsel %vm1633_vm6, %v4725_v45, %v2577_v55  ;;  %v6363_v55 = vld [vmem:[#allocation115_spill] sm:$0xff] }
 0x20e   : > { %2766 = vrot.lane.b32.xlu0 %v6347_v28, %s3860_s23  ;;  %v2583_v23 = vpop.permute.xlu1 %2582  ;;  %v1690_v51 = vsel %vm1666_vm8, %v1657_v7, %v6354_v2  ;;  %v2527_v38 = vrot.slane %v6363_v55, 1 }
 0x20f   : > { %v1723_v41 = vsel %vm1699_vm7, %v1690_v51, %v6356_v15  ;;  %v1874_v51 = vsel %vm1864_vm14, %v1841_v60, %v5117_v10 }
 0x210   : > { %v5417_v50 = vpop.permute.xlu0 %2586  ;;  %v1756_v8 = vsel %vm1732_vm9, %v1723_v41, %v6358_v13  ;;  %v1645_v13 = vsel %vm1633_vm6, %v6365_v11, %v6364_v62  ;;  %v6375_v62 = vld [vmem:[#allocation105_spill] sm:$0xff] }
 0x211   : > { %v1789_v36 = vsel %vm1765_vm11, %v1756_v8, %v6360_v19  ;;  %v1678_v26 = vsel %vm1666_vm8, %v1645_v13, %v6366_v46  ;;  %v6367_v19 = vld [vmem:[#allocation34_spill] sm:$0xff]  ;;  %v6376_v13 = vld [vmem:[#allocation93_spill] sm:$0xff] }
 0x212   : > { %2656 = vrot.lane.b32.xlu2 %v4928_v52, %s3856_s19  ;;  %v1822_v37 = vsel %vm1798_vm10, %v1789_v36, %v6361_v34  ;;  %v6368_v36 = vld [vmem:[#allocation16_spill] sm:$0xff] }
 0x213   : > { %v1855_v17 = vsel %vm1831_vm12, %v1822_v37, %v5029_v27  ;;  %v2839_v27 = vsel %vm1633_vm6, %v4783_v0, %v2583_v23  ;;  %v1659_v60 = vsel %vm1633_vm6, %v6368_v36, %v6367_v19  ;;  %v6370_v34 = vld [vmem:[#allocation48_spill] sm:$0xff] }
 0x214   : > { %2798 = vrot.lane.b32.xlu1 %v5081_v12, %s3861_s27  ;;  %v2609_v7 = vpop.permute.xlu2 %2608  ;;  %v1888_v45 = vsel %vm1864_vm14, %v1855_v17, %v5265_v29  ;;  %v1692_v37 = vsel %vm1666_vm8, %v1659_v60, %v6370_v34 }
 0x215   : > { %v5455_v2 = vsel %vm1666_vm8, %v2833_v18, %v2609_v7  ;;  %v6369_v18 = vld [vmem:[#allocation57_spill] sm:$0xff] }
 0x216   : > { %2688 = vrot.lane.b32.xlu0 %v5012_v20, %s3857_s20  ;;  %v5450_v5 = vpop.permute.xlu1 %2588  ;;  %v6362_v20 = vld [vmem:[#allocation117_spill] sm:$0xff]  ;;  %v1711_v7 = vsel %vm1699_vm7, %v1678_v26, %v6369_v18  ;;  %v6377_v26 = vld [vmem:[#allocation114_spill] sm:$0xff] }
 0x217   : > { %v2526_v10 = vrot.slane %v6362_v20, 1  ;;  %v6378_v18 = vld [vmem:[#allocation98_spill] sm:$0xff] }
 0x218   : > { %v5461_v9 = vpop.permute.xlu0 %2592  ;;  %3761 = vmatmul.msk.bf16.gmra.mxu1 %vm3104_vm13, %v1874_v51  ;;  %v6371_v51 = vld [vmem:[#allocation62_spill] sm:$0xff] }
 0x219   : > { %v5490_v23 = vsel %vm1294_vm4, %v2526_v10, %v2527_v38  ;;  %v1744_v17 = vsel %vm1732_vm9, %v1711_v7, %v6371_v51  ;;  %v6374_v38 = vld [vmem:[#allocation78_spill] sm:$0xff] }
 0x21a   : > { %3768 = vmatmul.msk.bf16.gmra.mxu3 %vm3104_vm13, %v1888_v45  ;;  %2752 = vrot.lane.b32.xlu2 %v6362_v20, %s3859_s22  ;;  %v6372_v45 = vld [vmem:[#allocation53_spill] sm:$0xff] }
 0x21b   : > { %v1725_v55 = vsel %vm1699_vm7, %v1692_v37, %v6372_v45 }
 0x21c   : > { %2720 = vrot.lane.b32.xlu1 %v5363_v56, %s3858_s21  ;;  %v2615_v29 = vpop.permute.xlu2 %2614 }
 0x21d   : > { %v5480_v41 = vsel %vm1666_vm8, %v2839_v27, %v2615_v29  ;;  %v6373_v27 = vld [vmem:[#allocation86_spill] sm:$0xff]  ;;  %v1758_v29 = vsel %vm1732_vm9, %v1725_v55, %v6374_v38 }
 0x21e   : > { %2784 = vrot.lane.b32.xlu0 %v5003_v14, %s3860_s23  ;;  %v5477_v15 = vpop.permute.xlu1 %2594  ;;  %v1777_v10 = vsel %vm1765_vm11, %v1744_v17, %v6373_v27  ;;  %v1791_v46 = vsel %vm1765_vm11, %v1758_v29, %v6376_v13  ;;  %v3088_v17 = vld [vmem:[%s6098_s7 + $0x10] sm:$0x3]  ;;  %v6381_v29 = vld [vmem:[#allocation10_spill] sm:$0xff] }
 0x21f   : > { %v1810_v11 = vsel %vm1798_vm10, %v1777_v10, %v6375_v62  ;;  %v1824_v7 = vsel %vm1798_vm10, %v1791_v46, %v6378_v18  ;;  %v3098_v45 = vunpack.c.l.b16 %v3088_v17  ;;  %v3786_v17 = vld [vmem:[%s6098_s7] sm:$0xff] }
 0x220   : > { %v5485_v8 = vpop.permute.xlu0 %2598  ;;  %v1843_v19 = vsel %vm1831_vm12, %v1810_v11, %v6377_v26  ;;  %v1857_v37 = vsel %vm1831_vm12, %v1824_v7, %v5129_v32  ;;  %v6382_v11 = vld [vmem:[#allocation42_spill] sm:$0xff]  ;;  %v3787_v26 = vld [vmem:[%s6098_s7 + $0x8] sm:$0xff]  ;;  %v6384_v7 = vld [vmem:[#allocation72_spill] sm:$0xff] }
 0x221   : > { %v1876_v34 = vsel %vm1864_vm14, %v1843_v19, %v5210_v16  ;;  %v3101_v32 = vpack.c.b16 %v3098_v45, %v3098_v45  ;;  %v2831_v16 = vsel %vm1633_vm6, %v4700_v59, %v5358_v22  ;;  %v2835_v59 = vsel %vm1633_vm6, %v4748_v54, %v5258_v49  ;;  %v6383_v19 = vld [vmem:[#allocation47_spill] sm:$0xff] }
 0x222   : > { %2640 = vrot.lane.b32.xlu2 %v4748_v54, %s3856_s19  ;;  %v6385_v54 = vld [vmem:[#allocation87_spill] sm:$0xff] }
 0x223   : > { %v3139_v10 = vsel %vm3137_vm5, %v3101_v32, 0  ;;  %v2837_v32 = vsel %vm1633_vm6, %v4764_v42, %v5400_v43 }
 0x224   : > { %2816 = vrot.lane.b32.xlu1 %v5490_v23, %s3861_s27  ;;  %v5521_v60 = vpop.permute.xlu2 %2620  ;;  %3788 = vmatpush.bf16.msra.mxu2 %v3139_v10 }
 0x225   : > { %3146 = vmatpush.bf16.msra.mxu0 %v3139_v10 }
 0x226   : > { %2672 = vrot.lane.b32.xlu0 %v6347_v28, %s3857_s20  ;;  %v5519_v36 = vpop.permute.xlu1 %2600  ;;  %v1890_v28 = vsel %vm1864_vm14, %v1857_v37, %v5309_v3  ;;  %v6379_v3 = vld [vmem:[#allocation102_spill] sm:$0xff]  ;;  %v6386_v37 = vld [vmem:[#allocation92_spill] sm:$0xff] }
 0x228   : > { %v5529_v51 = vpop.permute.xlu0 %2604  ;;  %3762 = vmatmul.msk.bf16.gmra.mxu1 %vm3104_vm13, %v1876_v34  ;;  %3789 = vmatpush.bf16.msra.mxu2 %v3787_v26 }
 0x229   : > { %3147 = vmatpush.bf16.msra.mxu0 %v3787_v26 }
 0x22a   : > { %3769 = vmatmul.msk.bf16.gmra.mxu3 %vm3104_vm13, %v1890_v28  ;;  %2736 = vrot.lane.b32.xlu2 %v4764_v42, %s3859_s22 }
 0x22c   : > { %2704 = vrot.lane.b32.xlu1 %v5081_v12, %s3858_s21  ;;  %v5547_v27 = vpop.permute.xlu2 %2652  ;;  %v6380_v12 = vld [vmem:[#allocation28_spill] sm:$0xff]  ;;  %3790 = vmatpush.bf16.msra.mxu2 %v3786_v17 }
 0x22d   : > { %v1647_v62 = vsel %vm1633_vm6, %v6381_v29, %v6380_v12  ;;  %3148 = vmatpush.bf16.msra.mxu0 %v3786_v17  ;;  %v6387_v29 = vld [vmem:[#allocation118_spill] sm:$0xff]  ;;  %v6394_v17 = vld [vmem:[#allocation107_spill] sm:$0xff] }
 0x22e   : > { %2768 = vrot.lane.b32.xlu0 %v6379_v3, %s3860_s23  ;;  %v2607_v55 = vpop.permute.xlu1 %2606  ;;  %v1680_v13 = vsel %vm1666_vm8, %v1647_v62, %v6382_v11  ;;  %v2530_v62 = vrot.slane %v6387_v29, 1  ;;  %v6389_v11 = vld [vmem:[#allocation12_spill] sm:$0xff] }
 0x22f   : > { %v5551_v38 = vsel %vm1666_vm8, %v2831_v16, %v2607_v55  ;;  %v1713_v18 = vsel %vm1699_vm7, %v1680_v13, %v6383_v19  ;;  %v6390_v19 = vld [vmem:[#allocation35_spill] sm:$0xff] }
 0x230   : > { %v2611_v22 = vpop.permute.xlu0 %2610  ;;  %v1746_v34 = vsel %vm1732_vm9, %v1713_v18, %v6384_v7 }
 0x231   : > { %v5562_v46 = vsel %vm1666_vm8, %v2835_v59, %v2611_v22  ;;  %v1779_v49 = vsel %vm1765_vm11, %v1746_v34, %v6385_v54  ;;  %v6392_v54 = vld [vmem:[#allocation74_spill] sm:$0xff] }
 0x232   : > { %2626 = vrot.lane.b32.xlu2 %v5363_v56, %s3855_s18  ;;  %v1812_v28 = vsel %vm1798_vm10, %v1779_v49, %v6386_v37  ;;  %v6393_v37 = vld [vmem:[#allocation79_spill] sm:$0xff] }
 0x233   : > { %v1845_v45 = vsel %vm1831_vm12, %v1812_v28, %v5069_v47  ;;  %v2841_v47 = vsel %vm1633_vm6, %v4806_v53, %v5293_v44  ;;  %v2843_v44 = vsel %vm1633_vm6, %v4845_v25, %v5417_v50  ;;  %v6391_v50 = vld [vmem:[#allocation58_spill] sm:$0xff] }
 0x234   : > { %2800 = vrot.lane.b32.xlu1 %v5105_v39, %s3861_s27  ;;  %v2749_v55 = vpop.permute.xlu2 %2748  ;;  %v1878_v10 = vsel %vm1864_vm14, %v1845_v45, %v5243_v63  ;;  %v2529_v63 = vrot.slane %v4985_v30, 1 }
 0x236   : > { %2658 = vrot.lane.b32.xlu0 %v6362_v20, %s3856_s19  ;;  %v2613_v16 = vpop.permute.xlu1 %2612  ;;  %v5625_v7 = vsel %vm1294_vm4, %v2529_v63, %v2530_v62 }
 0x237   : > { %v5590_v56 = vsel %vm1666_vm8, %v2837_v32, %v2613_v16  ;;  %v2849_v16 = vsel %vm1633_vm6, %v4915_v33, %v5461_v9  ;;  %v2845_v33 = vsel %vm1633_vm6, %v4857_v6, %v5450_v5 }
 0x238   : > { %v2617_v12 = vpop.permute.xlu0 %2616  ;;  %3763 = vmatmul.msk.bf16.gmra.mxu1 %vm3104_vm13, %v1878_v10 }
 0x239   : > { %v5599_v43 = vsel %vm1666_vm8, %v2841_v47, %v2617_v12 }
 0x23a   : > { %3770 = vmatmul.msk.bf16.gmra.mxu3 %vm3104_vm13, %v5201_v24  ;;  %2722 = vrot.lane.b32.xlu2 %v5490_v23, %s3858_s21 }
 0x23c   : > { %2690 = vrot.lane.b32.xlu1 %v5003_v14, %s3857_s20  ;;  %v2637_v22 = vpop.permute.xlu2 %2636  ;;  %v6388_v14 = vld [vmem:[#allocation29_spill] sm:$0xff] }
 0x23d   : > { %v1649_v13 = vsel %vm1633_vm6, %v6389_v11, %v6388_v14 }
 0x23e   : > { %2754 = vrot.lane.b32.xlu0 %v4985_v30, %s3859_s22  ;;  %v2619_v59 = vpop.permute.xlu1 %2618  ;;  %v1682_v18 = vsel %vm1666_vm8, %v1649_v13, %v6390_v19 }
 0x23f   : > { %v5615_v24 = vsel %vm1666_vm8, %v2843_v44, %v2619_v59  ;;  %v1715_v34 = vsel %vm1699_vm7, %v1682_v18, %v6391_v50  ;;  %v6397_v50 = vld [vmem:[#allocation120_spill] sm:$0xff] }
 0x240   : > { %v5620_v26 = vpop.permute.xlu0 %2622  ;;  %v1748_v49 = vsel %vm1732_vm9, %v1715_v34, %v6392_v54  ;;  %v6398_v34 = vld [vmem:[#allocation119_spill] sm:$0xff] }
 0x241   : > { %v1781_v28 = vsel %vm1765_vm11, %v1748_v49, %v6393_v37  ;;  %v2533_v54 = vrot.slane %v6398_v34, 1 }
 0x242   : > { %2818 = vrot.lane.b32.xlu2 %v5625_v7, %s3861_s27  ;;  %v1814_v45 = vsel %vm1798_vm10, %v1781_v28, %v6394_v17 }
 0x243   : > { %v1847_v32 = vsel %vm1831_vm12, %v1814_v45, %v5098_v61 }
 0x244   : > { %2786 = vrot.lane.b32.xlu1 %v5024_v35, %s3860_s23  ;;  %v2733_v47 = vpop.permute.xlu2 %2732  ;;  %v1880_v63 = vsel %vm1864_vm14, %v1847_v32, %v5144_v57 }
 0x246   : > { %2642 = vrot.lane.b32.xlu0 %v4764_v42, %s3856_s19  ;;  %v2625_v10 = vpop.permute.xlu1 %2624  ;;  %v2877_v42 = vsel %vm1666_vm8, %v2845_v33, %v5521_v60 }
 0x247   : > { %v5647_v12 = vsel %vm1666_vm8, %v2849_v16, %v2625_v10  ;;  %v2909_v61 = vsel %vm1699_vm7, %v2877_v42, %v5547_v27  ;;  %v6400_v10 = vld [vmem:[#allocation106_spill] sm:$0xff] }
 0x248   : > { %v2685_v29 = vpop.permute.xlu0 %2684  ;;  %3764 = vmatmul.msk.bf16.gmra.mxu1 %vm3104_vm13, %v1880_v63 }
 0x249   : > { %v2941_v9 = vsel %vm1732_vm9, %v2909_v61, %v2685_v29 }
 0x24a   : > { %3771 = vmatmul.msk.bf16.gmra.mxu3 %vm3104_vm13, %v5329_v48  ;;  %2706 = vrot.lane.b32.xlu2 %v5105_v39, %s3858_s21  ;;  %v6395_v39 = vld [vmem:[#allocation110_spill] sm:$0xff] }
 0x24c   : > { %2674 = vrot.lane.b32.xlu1 %v6379_v3, %s3857_s20  ;;  %v2655_v48 = vpop.permute.xlu2 %2654 }
 0x24e   : > { %2738 = vrot.lane.b32.xlu0 %v4783_v0, %s3859_s22  ;;  %v2717_v57 = vpop.permute.xlu1 %2716 }
 0x24f   : > { %v2973_v5 = vsel %vm1765_vm11, %v2941_v9, %v2717_v57  ;;  %v6401_v9 = vld [vmem:[#allocation108_spill] sm:$0xff] }
 0x250   : > { %v2781_v62 = vpop.permute.xlu0 %2780  ;;  %v3005_v3 = vsel %vm1798_vm10, %v2973_v5, %v2749_v55  ;;  %v6396_v55 = vld [vmem:[#allocation3_spill] sm:$0xff] }
 0x251   : > { %v3037_v60 = vsel %vm1831_vm12, %v3005_v3, %v2781_v62  ;;  %v2829_v11 = vsel %vm1633_vm6, %v6396_v55, %v5231_v21  ;;  %v2532_v21 = vrot.slane %v6397_v50, 1 }
 0x252   : > { %2802 = vrot.lane.b32.xlu2 %v5108_v4, %s3861_s27 }
 0x254   : > { %2770 = vrot.lane.b32.xlu1 %v6395_v39, %s3860_s23  ;;  %v2751_v44 = vpop.permute.xlu2 %2750 }
 0x256   : > { %2628 = vrot.lane.b32.xlu0 %v5490_v23, %s3855_s18  ;;  %v2813_v27 = vpop.permute.xlu1 %2812  ;;  %v2861_v23 = vsel %vm1666_vm8, %v2829_v11, %v5529_v51  ;;  %v5699_v51 = vsel %vm1294_vm4, %v2532_v21, %v2533_v54  ;;  %v6405_v54 = vld [vmem:[#allocation124_spill] sm:$0xff] }
 0x257   : > { %v3069_v59 = vsel %vm1864_vm14, %v3037_v60, %v2813_v27  ;;  %v2893_v13 = vsel %vm1699_vm7, %v2861_v23, %v2637_v22  ;;  %v6399_v22 = vld [vmem:[#allocation123_spill] sm:$0xff] }
 0x258   : > { %v2669_v14 = vpop.permute.xlu0 %2668  ;;  %3741 = vmatmul.msk.bf16.vlgmr.msra.gmra.mxu2 %vm3104_vm13, %v3069_v59  ;;  %v1940_v59 = vld [vmem:[%s4658_s26 + $0xf0] sm:$0xff] }
 0x259   : > { %v2925_v18 = vsel %vm1732_vm9, %v2893_v13, %v2669_v14  ;;  %v1941_v14 = vld [vmem:[%s4658_s26 + $0xf8] sm:$0xff]  ;;  %v1974_v13 = vpack.c.bf16 %v1940_v59, %v1940_v59 }
 0x25a   : > { %3772 = vmatmul.msk.bf16.gmra.mxu3 %vm3104_vm13, %v5353_v1  ;;  %2692 = vrot.lane.b32.xlu2 %v5024_v35, %s3857_s20 }
 0x25c   : > { %2660 = vrot.lane.b32.xlu1 %v4985_v30, %s3856_s19  ;;  %v2639_v1 = vpop.permute.xlu2 %2638 }
 0x25e   : > { %2724 = vrot.lane.b32.xlu0 %v5625_v7, %s3858_s21  ;;  %v2701_v19 = vpop.permute.xlu1 %2700 }
 0x25f   : > { %v2957_v49 = vsel %vm1765_vm11, %v2925_v18, %v2701_v19  ;;  %v6404_v18 = vld [vmem:[#allocation121_spill] sm:$0xff] }
 0x260   : > { %v2765_v37 = vpop.permute.xlu0 %2764  ;;  %v2989_v35 = vsel %vm1798_vm10, %v2957_v49, %v2733_v47  ;;  %v2847_v47 = vsel %vm1633_vm6, %v6400_v10, %v5342_v40  ;;  %v2536_v21 = vrot.slane %v6404_v18, 1 }
 0x261   : > { %v3021_v28 = vsel %vm1831_vm12, %v2989_v35, %v2765_v37  ;;  %v2879_v63 = vsel %vm1666_vm8, %v2847_v47, %v5620_v26  ;;  %v2046_v35 = vunpack.c.l.b16 %v1974_v13 }
 0x262   : > { %2788 = vrot.lane.b32.xlu2 %v6399_v22, %s3860_s23  ;;  %v2911_v29 = vsel %vm1699_vm7, %v2879_v63, %v2655_v48 }
 0x264   : > { %2756 = vrot.lane.b32.xlu1 %v6397_v50, %s3859_s22  ;;  %v2735_v45 = vpop.permute.xlu2 %2734 }
 0x266   : > { %2820 = vrot.lane.b32.xlu0 %v5699_v51, %s3861_s27  ;;  %v2797_v17 = vpop.permute.xlu1 %2796 }
 0x267   : > { %v3053_v32 = vsel %vm1864_vm14, %v3021_v28, %v2797_v17 }
 0x268   : > { %v2687_v16 = vpop.permute.xlu0 %2686  ;;  %3733 = vmatmul.msk.bf16.vlgmr.msra.gmra.mxu0 %vm3104_vm13, %v3053_v32 }
 0x269   : > { %v2943_v61 = vsel %vm1732_vm9, %v2911_v29, %v2687_v16 }
 0x26a   : > { %2676 = vrot.lane.b32.xlu2 %v6395_v39, %s3857_s20  ;;  %v2895_v39 = vsel %vm1699_vm7, %v5551_v38, %v2639_v1  ;;  %v6403_v38 = vld [vmem:[#allocation122_spill] sm:$0xff] }
 0x26b   : > { %v2535_v1 = vrot.slane %v6403_v38, 1 }
 0x26c   : > { %2644 = vrot.lane.b32.xlu1 %v4783_v0, %s3856_s19  ;;  %v2657_v42 = vpop.permute.xlu2 %2656 }
 0x26d   : > { %v2913_v16 = vsel %vm1699_vm7, %v5647_v12, %v2657_v42  ;;  %v6406_v12 = vld [vmem:[#allocation111_spill] sm:$0xff] }
 0x26e   : > { %2708 = vrot.lane.b32.xlu0 %v5108_v4, %s3858_s21  ;;  %v2719_v33 = vpop.permute.xlu1 %2718  ;;  %v6402_v4 = vld [vmem:[#allocation125_spill] sm:$0xff] }
 0x26f   : > { %v2975_v40 = vsel %vm1765_vm11, %v2943_v61, %v2719_v33 }
 0x270   : > { %v2783_v57 = vpop.permute.xlu0 %2782  ;;  %v3007_v0 = vsel %vm1798_vm10, %v2975_v40, %v2751_v44 }
 0x271   : > { %v3039_v26 = vsel %vm1831_vm12, %v3007_v0, %v2783_v57 }
 0x272   : > { %2772 = vrot.lane.b32.xlu2 %v6401_v9, %s3860_s23 }
 0x274   : > { %2740 = vrot.lane.b32.xlu1 %v4806_v53, %s3859_s22  ;;  %v2753_v5 = vpop.permute.xlu2 %2752 }
 0x276   : > { %2804 = vrot.lane.b32.xlu0 %v6402_v4, %s3861_s27  ;;  %v2815_v48 = vpop.permute.xlu1 %2814 }
 0x277   : > { %v3071_v62 = vsel %vm1864_vm14, %v3039_v26, %v2815_v48 }
 0x278   : > { %v2671_v3 = vpop.permute.xlu0 %2670  ;;  %3742 = vmatmul.msk.bf16.gmra.mxu2 %vm3104_vm13, %v3071_v62 }
 0x279   : > { %v2927_v44 = vsel %vm1732_vm9, %v2895_v39, %v2671_v3 }
 0x27a   : > { %2662 = vrot.lane.b32.xlu2 %v6397_v50, %s3856_s19 }
 0x27c   : > { %2630 = vrot.lane.b32.xlu1 %v5625_v7, %s3855_s18  ;;  %v2641_v27 = vpop.permute.xlu2 %2640  ;;  %v1975_v7 = vpack.c.bf16 %v1941_v14, %v1941_v14 }
 0x27e   : > { %2694 = vrot.lane.b32.xlu0 %v6399_v22, %s3857_s20  ;;  %v2703_v60 = vpop.permute.xlu1 %2702  ;;  %v2047_v22 = vunpack.c.l.b16 %v1975_v7 }
 0x27f   : > { %v2959_v11 = vsel %vm1765_vm11, %v2927_v44, %v2703_v60  ;;  %v2897_v44 = vsel %vm1699_vm7, %v5455_v2, %v2641_v27 }
 0x280   : > { %v2767_v23 = vpop.permute.xlu0 %2766  ;;  %v2991_v19 = vsel %vm1798_vm10, %v2959_v11, %v2735_v45  ;;  %v5759_v45 = vsel %vm1294_vm4, %v2535_v1, %v2536_v21  ;;  %v2066_v32 = vpack.c.b16 %v2047_v22, %v2046_v35 }
 0x281   : > { %v3023_v34 = vsel %vm1831_vm12, %v2991_v19, %v2767_v23 }
 0x282   : > { %2758 = vrot.lane.b32.xlu2 %v6403_v38, %s3859_s22  ;;  %v2181_v29 = vshrl.u32 %v2066_v32, 16  ;;  %v2184_v0 = vshll.u32 %v2066_v32, 16  ;;  %v2851_v32 = vsel %vm1633_vm6, %v4928_v52, %v5477_v15 }
 0x284   : > { %2726 = vrot.lane.b32.xlu1 %v5699_v51, %s3858_s21  ;;  %v2737_v37 = vpop.permute.xlu2 %2736  ;;  %v2183_v57 = vrot.slane %v2181_v29, 7 }
 0x286   : > { %2790 = vrot.lane.b32.xlu0 %v6405_v54, %s3860_s23  ;;  %v2799_v49 = vpop.permute.xlu1 %2798  ;;  %v2186_v48 = vor.u32 %v2184_v0, %v2183_v57  ;;  %v2264_v11 = vsel %vm3937_vm2, %v2183_v57, 0 }
 0x287   : > { %v3055_v28 = vsel %vm1864_vm14, %v3023_v34, %v2799_v49  ;;  %v2553_v34 = vrot.slane %v2264_v11, 1 }
 0x288   : > { %v2689_v17 = vpop.permute.xlu0 %2688  ;;  %3734 = vmatmul.msk.bf16.gmra.mxu0 %vm3104_vm13, %v3055_v28  ;;  %v2246_v39 = vsel %vm3937_vm2, 0, %v2186_v48 }
 0x289   : > { %v2945_v33 = vsel %vm1732_vm9, %v2913_v16, %v2689_v17  ;;  %v2541_v60 = vshll.u32 %v2246_v39, 16  ;;  %v2539_v19 = vshrl.u32 %v2246_v39, 16  ;;  %v2552_v21 = vrot.slane %v2246_v39, 1 }
 0x28a   : > { %2646 = vrot.lane.b32.xlu2 %v4806_v53, %s3856_s19 }
 0x28b   : > { %v2543_v1 = vrot.slane %v2541_v60, 1 }
 0x28c   : > { %2822 = vrot.lane.b32.xlu1 %v5759_v45, %s3861_s27  ;;  %v2627_v63 = vpop.permute.xlu2 %2626 }
 0x28d   : > { %v2544_v2 = vor.u32 %v2543_v1, %v2539_v19  ;;  %v2883_v16 = vsel %vm1666_vm8, %v2851_v32, %v2627_v63 }
 0x28e   : > { %2678 = vrot.lane.b32.xlu0 %v6401_v9, %s3857_s20  ;;  %v2721_v47 = vpop.permute.xlu1 %2720 }
 0x28f   : > { %v2977_v61 = vsel %vm1765_vm11, %v2945_v33, %v2721_v47 }
 0x290   : > { %v2785_v40 = vpop.permute.xlu0 %2784  ;;  %v3009_v26 = vsel %vm1798_vm10, %v2977_v61, %v2753_v5 }
 0x291   : > { %v3041_v53 = vsel %vm1831_vm12, %v3009_v26, %v2785_v40 }
 0x292   : > { %2742 = vrot.lane.b32.xlu2 %v4845_v25, %s3859_s22 }
 0x294   : > { %2710 = vrot.lane.b32.xlu1 %v6402_v4, %s3858_s21  ;;  %v2723_v9 = vpop.permute.xlu2 %2722  ;;  %v6408_v4 = vld [vmem:[#allocation126_spill] sm:$0xff] }
 0x296   : > { %2774 = vrot.lane.b32.xlu0 %v6406_v12, %s3860_s23  ;;  %v2817_v42 = vpop.permute.xlu1 %2816 }
 0x297   : > { %v3073_v62 = vsel %vm1864_vm14, %v3041_v53, %v2817_v42  ;;  %v6409_v53 = vld [vmem:[#allocation112_spill] sm:$0xff] }
 0x298   : > { %v2673_v3 = vpop.permute.xlu0 %2672  ;;  %3743 = vmatmul.msk.bf16.gmra.mxu2 %vm3104_vm13, %v3073_v62 }
 0x299   : > { %v2929_v23 = vsel %vm1732_vm9, %v2897_v44, %v2673_v3 }
 0x29a   : > { %2632 = vrot.lane.b32.xlu2 %v5699_v51, %s3855_s18  ;;  %v2546_v51 = vshll.u32 %v2264_v11, 16 }
 0x29c   : > { %2806 = vrot.lane.b32.xlu1 %v6408_v4, %s3861_s27  ;;  %v2819_v14 = vpop.permute.xlu2 %2818  ;;  %v2548_v27 = vrot.slane %v2546_v51, 1 }
 0x29e   : > { %2664 = vrot.lane.b32.xlu0 %v6403_v38, %s3856_s19  ;;  %v2705_v59 = vpop.permute.xlu1 %2704 }
 0x29f   : > { %v2961_v13 = vsel %vm1765_vm11, %v2929_v23, %v2705_v59 }
 0x2a0   : > { %v2769_v7 = vpop.permute.xlu0 %2768  ;;  %v2993_v18 = vsel %vm1798_vm10, %v2961_v13, %v2737_v37  ;;  %v2554_v37 = vsel %vm1294_vm4, %v2552_v21, %v2553_v34  ;;  %v6412_v13 = vld [vmem:[#allocation19_spill] sm:$0xff]  ;;  %v3329_v21 = vpop.f32.mrf.mxu3 }
 0x2a1   : > { %v3025_v49 = vsel %vm1831_vm12, %v2993_v18, %v2769_v7 }
 0x2a2   : > { %2728 = vrot.lane.b32.xlu2 %v5759_v45, %s3858_s21 }
 0x2a4   : > { %2696 = vrot.lane.b32.xlu1 %v6405_v54, %s3857_s20  ;;  %v2707_v22 = vpop.permute.xlu2 %2706  ;;  %v2549_v54 = vsel %vm1069_vm3, %v2544_v2, %v2548_v27 }
 0x2a6   : > { %2760 = vrot.lane.b32.xlu0 %v2246_v39, %s3859_s22  ;;  %v2801_v35 = vpop.permute.xlu1 %2800 }
 0x2a7   : > { %v3057_v28 = vsel %vm1864_vm14, %v3025_v49, %v2801_v35 }
 0x2a8   : > { %v2659_v17 = vpop.permute.xlu0 %2658  ;;  %3735 = vmatmul.msk.bf16.gmra.mxu0 %vm3104_vm13, %v3057_v28  ;;  %v6413_v28 = vld [vmem:[#allocation113_spill] sm:$0xff] }
 0x2a9   : > { %v2915_v33 = vsel %vm1699_vm7, %v2883_v16, %v2659_v17 }
 0x2aa   : > { %2824 = vrot.lane.b32.xlu2 %v2554_v37, %s3861_s27 }
 0x2ac   : > { %2792 = vrot.lane.b32.xlu1 %v2549_v54, %s3860_s23  ;;  %v2803_v29 = vpop.permute.xlu2 %2802 }
 0x2ae   : > { %2648 = vrot.lane.b32.xlu0 %v4845_v25, %s3856_s19  ;;  %v2691_v47 = vpop.permute.xlu1 %2690 }
 0x2af   : > { %v2947_v61 = vsel %vm1732_vm9, %v2915_v33, %v2691_v47 }
 0x2b0   : > { %v2755_v40 = vpop.permute.xlu0 %2754  ;;  %v2979_v57 = vsel %vm1765_vm11, %v2947_v61, %v2723_v9  ;;  %v3331_v61 = vpop.f32.mrf.mxu3 }
 0x2b1   : > { %v3011_v52 = vsel %vm1798_vm10, %v2979_v57, %v2755_v40 }
 0x2b2   : > { %2712 = vrot.lane.b32.xlu2 %v6408_v4, %s3858_s21 }
 0x2b4   : > { %2680 = vrot.lane.b32.xlu1 %v6406_v12, %s3857_s20  ;;  %v2693_v15 = vpop.permute.xlu2 %2692  ;;  %v6410_v12 = vld [vmem:[#allocation127_spill] sm:$0xff] }
 0x2b6   : > { %2744 = vrot.lane.b32.xlu0 %v4857_v6, %s3859_s22  ;;  %v2787_v25 = vpop.permute.xlu1 %2786 }
 0x2b7   : > { %v3043_v63 = vsel %vm1831_vm12, %v3011_v52, %v2787_v25 }
 0x2b8   : > { %v2643_v0 = vpop.permute.xlu0 %2642  ;;  %v3075_v26 = vsel %vm1864_vm14, %v3043_v63, %v2819_v14  ;;  %v2853_v14 = vsel %vm1633_vm6, %v6362_v20, %v5382_v58 }
 0x2b9   : > { %3744 = vmatmul.msk.bf16.gmra.mxu2 %vm3104_vm13, %v3075_v26  ;;  %v2899_v48 = vsel %vm1699_vm7, %v5562_v46, %v2643_v0 }
 0x2ba   : > { %2808 = vrot.lane.b32.xlu2 %v6410_v12, %s3861_s27 }
 0x2bc   : > { %2776 = vrot.lane.b32.xlu1 %v6409_v53, %s3860_s23  ;;  %v2789_v9 = vpop.permute.xlu2 %2788 }
 0x2be   : > { %2634 = vrot.lane.b32.xlu0 %v5759_v45, %s3855_s18  ;;  %v2675_v42 = vpop.permute.xlu1 %2674 }
 0x2bf   : > { %v2931_v62 = vsel %vm1732_vm9, %v2899_v48, %v2675_v42 }
 0x2c0   : > { %v2739_v3 = vpop.permute.xlu0 %2738  ;;  %v2963_v5 = vsel %vm1765_vm11, %v2931_v62, %v2707_v22  ;;  %v5875_v22 = vld [vmem:[%s6100_s9] ss:$0 sm:$0xff] }
 0x2c1   : > { %v2995_v4 = vsel %vm1798_vm10, %v2963_v5, %v2739_v3 }
 0x2c2   : > { %2698 = vrot.lane.b32.xlu2 %v2549_v54, %s3857_s20 }
 0x2c4   : > { %2666 = vrot.lane.b32.xlu1 %v2246_v39, %s3856_s19  ;;  %v2677_v44 = vpop.permute.xlu2 %2676  ;;  %v6411_v39 = vld [vmem:[#allocation4_spill] sm:$0xff] }
 0x2c6   : > { %v2771_v60 = vpop.permute.xlu1 %2770  ;;  %2730 = vrot.lane.b32.xlu0 %v2554_v37, %s3858_s21  ;;  %v6414_v37 = vld [vmem:[#allocation128_spill] sm:$0xff] }
 0x2c7   : > { %v3027_v45 = vsel %vm1831_vm12, %v2995_v4, %v2771_v60 }
 0x2c8   : > { %v2629_v59 = vpop.permute.xlu0 %2628  ;;  %v3059_v46 = vsel %vm1864_vm14, %v3027_v45, %v2803_v29  ;;  %v3289_v29 = vpop.f32.mrf.mxu1 }
 0x2c9   : > { %3736 = vmatmul.msk.bf16.gmra.mxu0 %vm3104_vm13, %v3059_v46  ;;  %v2885_v7 = vsel %vm1666_vm8, %v2853_v14, %v2629_v59  ;;  %v2855_v46 = vsel %vm1633_vm6, %v4985_v30, %v5485_v8  ;;  %v3334_v30 = vpop.f32.mrf.mxu3 }
 0x2ca   : > { %2794 = vrot.lane.b32.xlu2 %v6411_v39, %s3860_s23 }
 0x2cc   : > { %2762 = vrot.lane.b32.xlu1 %v6396_v55, %s3859_s22  ;;  %v2773_v23 = vpop.permute.xlu2 %2772 }
 0x2ce   : > { %v2661_v11 = vpop.permute.xlu1 %2660  ;;  %2826 = vrot.lane.b32.xlu0 %v6412_v13, %s3861_s27 }
 0x2cf   : > { %v2917_v19 = vsel %vm1699_vm7, %v2885_v7, %v2661_v11 }
 0x2d0   : > { %v2725_v1 = vpop.permute.xlu0 %2724  ;;  %v2949_v51 = vsel %vm1732_vm9, %v2917_v19, %v2693_v15  ;;  %v3291_v60 = vpop.f32.mrf.mxu1 }
 0x2d1   : > { %v2981_v58 = vsel %vm1765_vm11, %v2949_v51, %v2725_v1 }
 0x2d2   : > { %2682 = vrot.lane.b32.xlu2 %v6409_v53, %s3857_s20 }
 0x2d4   : > { %2650 = vrot.lane.b32.xlu1 %v4857_v6, %s3856_s19  ;;  %v2663_v18 = vpop.permute.xlu2 %2662  ;;  %v5870_v6 = vld [vmem:[%s6099_s8] ss:$0 sm:$0xff] }
 0x2d6   : > { %v2757_v20 = vpop.permute.xlu1 %2756  ;;  %2714 = vrot.lane.b32.xlu0 %v6410_v12, %s3858_s21 }
 0x2d7   : > { %v3013_v55 = vsel %vm1798_vm10, %v2981_v58, %v2757_v20 }
 0x2d8   : > { %v2821_v2 = vpop.permute.xlu0 %2820  ;;  %v3045_v27 = vsel %vm1831_vm12, %v3013_v55, %v2789_v9 }
 0x2d9   : > { %v3077_v34 = vsel %vm1864_vm14, %v3045_v27, %v2821_v2 }
 0x2da   : > { %3745 = vmatmul.msk.bf16.gmra.mxu2 %vm3104_vm13, %v3077_v34  ;;  %2778 = vrot.lane.b32.xlu2 %v6413_v28, %s3860_s23 }
 0x2db   : > { %v3190_v49 = vpop.f32.mrf.mxu2 }
 0x2dc   : > { %v3330_v35 = vadd.f32 %v3329_v21, %v3190_v49  ;;  %2746 = vrot.lane.b32.xlu1 %v6400_v10, %s3859_s22  ;;  %v2759_v10 = vpop.permute.xlu2 %2758 }
 0x2de   : > { %v3389_v17 = vmul.f32 %v5870_v6, %v3330_v35  ;;  %v2645_v54 = vpop.permute.xlu1 %2644  ;;  %2810 = vrot.lane.b32.xlu0 %v6414_v37, %s3861_s27  ;;  %v3336_v37 = vpop.f32.mrf.mxu3 }
 0x2df   : > { %v2901_v16 = vsel %vm1699_vm7, %v5590_v56, %v2645_v54 }
 0x2e0   : > { %v3425_v32 = vadd.f32 %v5875_v22, %v3389_v17  ;;  %v2709_v47 = vpop.permute.xlu0 %2708  ;;  %v2933_v40 = vsel %vm1732_vm9, %v2901_v16, %v2677_v44  ;;  %v3294_v17 = vpop.f32.mrf.mxu1 }
 0x2e1   : > { %v2965_v56 = vsel %vm1765_vm11, %v2933_v40, %v2709_v47 }
 0x2e2   : > { %v3457_v33 = vmax.f32 %v3425_v32, 0.0 }
 0x2e3   : > { %v3192_v57 = vpop.f32.mrf.mxu2 }
 0x2e4   : > { %3489 = vst.msk [vmem:[%s5891_s28 + $0x80] sm:$0xff] %vm1666_vm8, %v3457_v33  ;;  %v3332_v52 = vadd.f32 %v3331_v61, %v3192_v57  ;;  %v2647_v5 = vpop.permute.xlu2 %2646 }
 0x2e5   : > { %v3150_v25 = vpop.f32.mrf.mxu0 }
 0x2e6   : > { %v3390_v15 = vmul.f32 %v5870_v6, %v3332_v52  ;;  %v3290_v63 = vadd.f32 %v3289_v29, %v3150_v25  ;;  %v2741_v0 = vpop.permute.xlu1 %2740 }
 0x2e7   : > { %v2997_v26 = vsel %vm1798_vm10, %v2965_v56, %v2741_v0 }
 0x2e8   : > { %v3426_v53 = vadd.f32 %v5875_v22, %v3390_v15  ;;  %v3373_v12 = vmul.f32 %v5870_v6, %v3290_v63  ;;  %v2805_v42 = vpop.permute.xlu0 %2804  ;;  %v3029_v9 = vsel %vm1831_vm12, %v2997_v26, %v2773_v23 }
 0x2e9   : > { %v3061_v48 = vsel %vm1864_vm14, %v3029_v9, %v2805_v42 }
 0x2ea   : > { %v3458_v62 = vmax.f32 %v3426_v53, 0.0  ;;  %v3409_v3 = vadd.f32 %v5875_v22, %v3373_v12  ;;  %3737 = vmatmul.msk.bf16.gmra.mxu0 %vm3104_vm13, %v3061_v48  ;;  %v3296_v53 = vpop.f32.mrf.mxu1 }
 0x2ec   : > { %3490 = vst.msk [vmem:[%s5891_s28 + $0x88] sm:$0xff] %vm1666_vm8, %v3458_v62  ;;  %v3441_v4 = vmax.f32 %v3409_v3, 0.0  ;;  %v2743_v19 = vpop.permute.xlu2 %2742 }
 0x2ed   : > { %v3152_v44 = vpop.f32.mrf.mxu0 }
 0x2ee   : > { %3473 = vst.msk [vmem:[%s5891_s28] sm:$0xff] %vm1666_vm8, %v3441_v4  ;;  %v3292_v45 = vadd.f32 %v3291_v60, %v3152_v44  ;;  %v2631_v59 = vpop.permute.xlu1 %2630 }
 0x2ef   : > { %v2887_v11 = vsel %vm1666_vm8, %v2855_v46, %v2631_v59 }
 0x2f0   : > { %v3374_v39 = vmul.f32 %v5870_v6, %v3292_v45  ;;  %v2695_v14 = vpop.permute.xlu0 %2694  ;;  %v2919_v7 = vsel %vm1699_vm7, %v2887_v11, %v2663_v18  ;;  %v2857_v45 = vsel %vm1633_vm6, %v6397_v50, %v5519_v36 }
 0x2f1   : > { %v2951_v51 = vsel %vm1732_vm9, %v2919_v7, %v2695_v14 }
 0x2f2   : > { %v3410_v23 = vadd.f32 %v5875_v22, %v3374_v39 }
 0x2f4   : > { %v3442_v13 = vmax.f32 %v3410_v23, 0.0  ;;  %v2633_v34 = vpop.permute.xlu2 %2632  ;;  %v3339_v23 = vpop.f32.mrf.mxu3 }
 0x2f5   : > { %v2889_v59 = vsel %vm1666_vm8, %v2857_v45, %v2633_v34 }
 0x2f6   : > { %3474 = vst.msk [vmem:[%s5891_s28 + $0x8] sm:$0xff] %vm1666_vm8, %v3442_v13  ;;  %v2727_v1 = vpop.permute.xlu1 %2726 }
 0x2f7   : > { %v2983_v58 = vsel %vm1765_vm11, %v2951_v51, %v2727_v1 }
 0x2f8   : > { %v2791_v20 = vpop.permute.xlu0 %2790  ;;  %v3015_v8 = vsel %vm1798_vm10, %v2983_v58, %v2759_v10  ;;  %v2903_v10 = vsel %vm1699_vm7, %v5480_v41, %v2647_v5 }
 0x2f9   : > { %v3047_v27 = vsel %vm1831_vm12, %v3015_v8, %v2791_v20 }
 0x2fb   : > { %v3195_v55 = vpop.f32.mrf.mxu2 }
 0x2fc   : > { %v3335_v2 = vadd.f32 %v3334_v30, %v3195_v55  ;;  %v2729_v57 = vpop.permute.xlu2 %2728  ;;  %v3299_v55 = vpop.f32.mrf.mxu1 }
 0x2fe   : > { %v3391_v21 = vmul.f32 %v5870_v6, %v3335_v2  ;;  %v2823_v18 = vpop.permute.xlu1 %2822 }
 0x2ff   : > { %v3079_v49 = vsel %vm1864_vm14, %v3047_v27, %v2823_v18  ;;  %v3341_v27 = vpop.f32.mrf.mxu3 }
 0x300   : > { %v3427_v35 = vadd.f32 %v5875_v22, %v3391_v21  ;;  %v2679_v28 = vpop.permute.xlu0 %2678  ;;  %3746 = vmatmul.msk.bf16.gmra.mxu2 %vm3104_vm13, %v3079_v49 }
 0x301   : > { %v2935_v40 = vsel %vm1732_vm9, %v2903_v10, %v2679_v28 }
 0x302   : > { %v3459_v54 = vmax.f32 %v3427_v35, 0.0 }
 0x303   : > { %v3197_v32 = vpop.f32.mrf.mxu2 }
 0x304   : > { %3491 = vst.msk [vmem:[%s5891_s28 + $0x90] sm:$0xff] %vm1666_vm8, %v3459_v54  ;;  %v3337_v16 = vadd.f32 %v3336_v37, %v3197_v32  ;;  %v2825_v4 = vpop.permute.xlu2 %2824 }
 0x305   : > { %v3155_v47 = vpop.f32.mrf.mxu0 }
 0x306   : > { %v3392_v29 = vmul.f32 %v5870_v6, %v3337_v16  ;;  %v3295_v33 = vadd.f32 %v3294_v17, %v3155_v47  ;;  %v2711_v61 = vpop.permute.xlu1 %2710 }
 0x307   : > { %v2967_v56 = vsel %vm1765_vm11, %v2935_v40, %v2711_v61  ;;  %v3301_v40 = vpop.f32.mrf.mxu1 }
 0x308   : > { %v3428_v52 = vadd.f32 %v5875_v22, %v3392_v29  ;;  %v3375_v25 = vmul.f32 %v5870_v6, %v3295_v33  ;;  %v2775_v15 = vpop.permute.xlu0 %2774  ;;  %v2999_v41 = vsel %vm1798_vm10, %v2967_v56, %v2743_v19 }
 0x309   : > { %v3031_v42 = vsel %vm1831_vm12, %v2999_v41, %v2775_v15 }
 0x30a   : > { %v3460_v63 = vmax.f32 %v3428_v52, 0.0  ;;  %v3411_v0 = vadd.f32 %v5875_v22, %v3375_v25 }
 0x30c   : > { %3492 = vst.msk [vmem:[%s5891_s28 + $0x98] sm:$0xff] %vm1666_vm8, %v3460_v63  ;;  %v3443_v26 = vmax.f32 %v3411_v0, 0.0  ;;  %v2713_v19 = vpop.permute.xlu2 %2712 }
 0x30d   : > { %v3157_v12 = vpop.f32.mrf.mxu0 }
 0x30e   : > { %3475 = vst.msk [vmem:[%s5891_s28 + $0x10] sm:$0xff] %vm1666_vm8, %v3443_v26  ;;  %v3297_v9 = vadd.f32 %v3296_v53, %v3157_v12  ;;  %v2807_v48 = vpop.permute.xlu1 %2806  ;;  %v2859_v12 = vsel %vm1633_vm6, %v6403_v38, %v5412_v31 }
 0x30f   : > { %v3063_v62 = vsel %vm1864_vm14, %v3031_v42, %v2807_v48 }
 0x310   : > { %v3376_v3 = vmul.f32 %v5870_v6, %v3297_v9  ;;  %v2665_v5 = vpop.permute.xlu0 %2664  ;;  %3738 = vmatmul.msk.bf16.gmra.mxu0 %vm3104_vm13, %v3063_v62 }
 0x311   : > { %v2921_v39 = vsel %vm1699_vm7, %v2889_v59, %v2665_v5  ;;  %v3344_v5 = vpop.f32.mrf.mxu3 }
 0x312   : > { %v3412_v60 = vadd.f32 %v5875_v22, %v3376_v3 }
 0x314   : > { %v3444_v44 = vmax.f32 %v3412_v60, 0.0  ;;  %v2809_v49 = vpop.permute.xlu2 %2808 }
 0x316   : > { %3476 = vst.msk [vmem:[%s5891_s28 + $0x18] sm:$0xff] %vm1666_vm8, %v3444_v44  ;;  %v2697_v46 = vpop.permute.xlu1 %2696 }
 0x317   : > { %v2953_v14 = vsel %vm1732_vm9, %v2921_v39, %v2697_v46 }
 0x318   : > { %v2761_v11 = vpop.permute.xlu0 %2760  ;;  %v2985_v13 = vsel %vm1765_vm11, %v2953_v14, %v2729_v57 }
 0x319   : > { %v3017_v50 = vsel %vm1798_vm10, %v2985_v13, %v2761_v11 }
 0x31b   : > { %v3200_v7 = vpop.f32.mrf.mxu2 }
 0x31c   : > { %v3340_v1 = vadd.f32 %v3339_v23, %v3200_v7  ;;  %v2699_v15 = vpop.permute.xlu2 %2698  ;;  %v3304_v23 = vpop.f32.mrf.mxu1 }
 0x31e   : > { %v3393_v51 = vmul.f32 %v5870_v6, %v3340_v1  ;;  %v2793_v36 = vpop.permute.xlu1 %2792 }
 0x31f   : > { %v3049_v58 = vsel %vm1831_vm12, %v3017_v50, %v2793_v36 }
 0x320   : > { %v3429_v20 = vadd.f32 %v5875_v22, %v3393_v51  ;;  %v2649_v30 = vpop.permute.xlu0 %2648  ;;  %v3081_v8 = vsel %vm1864_vm14, %v3049_v58, %v2825_v4 }
 0x321   : > { %3747 = vmatmul.msk.bf16.gmra.mxu2 %vm3104_vm13, %v3081_v8  ;;  %v2905_v54 = vsel %vm1699_vm7, %v5599_v43, %v2649_v30 }
 0x322   : > { %v3461_v2 = vmax.f32 %v3429_v20, 0.0 }
 0x323   : > { %v3202_v21 = vpop.f32.mrf.mxu2 }
 0x324   : > { %3493 = vst.msk [vmem:[%s5891_s28 + $0xa0] sm:$0xff] %vm1666_vm8, %v3461_v2  ;;  %v3342_v18 = vadd.f32 %v3341_v27, %v3202_v21  ;;  %v2795_v3 = vpop.permute.xlu2 %2794 }
 0x325   : > { %v3160_v34 = vpop.f32.mrf.mxu0 }
 0x326   : > { %v3394_v35 = vmul.f32 %v5870_v6, %v3342_v18  ;;  %v3300_v28 = vadd.f32 %v3299_v55, %v3160_v34  ;;  %v2681_v17 = vpop.permute.xlu1 %2680  ;;  %v3306_v34 = vpop.f32.mrf.mxu1 }
 0x327   : > { %v2937_v16 = vsel %vm1732_vm9, %v2905_v54, %v2681_v17 }
 0x328   : > { %v3430_v37 = vadd.f32 %v5875_v22, %v3394_v35  ;;  %v3377_v32 = vmul.f32 %v5870_v6, %v3300_v28  ;;  %v2745_v47 = vpop.permute.xlu0 %2744  ;;  %v2969_v33 = vsel %vm1765_vm11, %v2937_v16, %v2713_v19  ;;  %v3346_v19 = vpop.f32.mrf.mxu3 }
 0x329   : > { %v3001_v25 = vsel %vm1798_vm10, %v2969_v33, %v2745_v47 }
 0x32a   : > { %v3462_v10 = vmax.f32 %v3430_v37, 0.0  ;;  %v3413_v29 = vadd.f32 %v5875_v22, %v3377_v32 }
 0x32c   : > { %3494 = vst.msk [vmem:[%s5891_s28 + $0xa8] sm:$0xff] %vm1666_vm8, %v3462_v10  ;;  %v3445_v61 = vmax.f32 %v3413_v29, 0.0  ;;  %v2683_v7 = vpop.permute.xlu2 %2682 }
 0x32d   : > { %v3162_v57 = vpop.f32.mrf.mxu0 }
 0x32e   : > { %3477 = vst.msk [vmem:[%s5891_s28 + $0x20] sm:$0xff] %vm1666_vm8, %v3445_v61  ;;  %v3302_v43 = vadd.f32 %v3301_v40, %v3162_v57  ;;  %v2777_v52 = vpop.permute.xlu1 %2776 }
 0x32f   : > { %v3033_v56 = vsel %vm1831_vm12, %v3001_v25, %v2777_v52  ;;  %v3309_v25 = vpop.f32.mrf.mxu1 }
 0x330   : > { %v3378_v63 = vmul.f32 %v5870_v6, %v3302_v43  ;;  %v2635_v0 = vpop.permute.xlu0 %2634  ;;  %v3065_v41 = vsel %vm1864_vm14, %v3033_v56, %v2809_v49  ;;  %v3349_v61 = vpop.f32.mrf.mxu3 }
 0x331   : > { %3739 = vmatmul.msk.bf16.gmra.mxu0 %vm3104_vm13, %v3065_v41  ;;  %v2891_v9 = vsel %vm1666_vm8, %v2859_v12, %v2635_v0 }
 0x332   : > { %v3414_v26 = vadd.f32 %v5875_v22, %v3378_v63 }
 0x334   : > { %v3446_v53 = vmax.f32 %v3414_v26, 0.0  ;;  %v2779_v35 = vpop.permute.xlu2 %2778 }
 0x336   : > { %3478 = vst.msk [vmem:[%s5891_s28 + $0x28] sm:$0xff] %vm1666_vm8, %v3446_v53  ;;  %v2667_v42 = vpop.permute.xlu1 %2666 }
 0x337   : > { %v2923_v48 = vsel %vm1699_vm7, %v2891_v9, %v2667_v42 }
 0x338   : > { %v2731_v62 = vpop.permute.xlu0 %2730  ;;  %v2955_v4 = vsel %vm1732_vm9, %v2923_v48, %v2699_v15  ;;  %v3351_v15 = vpop.f32.mrf.mxu3 }
 0x339   : > { %v2987_v45 = vsel %vm1765_vm11, %v2955_v4, %v2731_v62 }
 0x33c   : > { %v3205_v60 = vpop.f32.mrf.mxu2 }
 0x33d   : > { %v3345_v44 = vadd.f32 %v3344_v5, %v3205_v60 }
 0x33e   : > { %v2763_v59 = vpop.permute.xlu1 %2762 }
 0x33f   : > { %v3395_v31 = vmul.f32 %v5870_v6, %v3345_v44  ;;  %v3019_v38 = vsel %vm1798_vm10, %v2987_v45, %v2763_v59 }
 0x340   : > { %v3051_v46 = vsel %vm1831_vm12, %v3019_v38, %v2795_v3  ;;  %v2827_v39 = vpop.permute.xlu0 %2826  ;;  %v3311_v3 = vpop.f32.mrf.mxu1 }
 0x341   : > { %v3431_v14 = vadd.f32 %v5875_v22, %v3395_v31  ;;  %v3083_v11 = vsel %vm1864_vm14, %v3051_v46, %v2827_v39  ;;  %v3354_v59 = vpop.f32.mrf.mxu3 }
 0x342   : > { %3748 = vmatmul.msk.bf16.gmra.mxu2 %vm3104_vm13, %v3083_v11 }
 0x343   : > { %v3463_v13 = vmax.f32 %v3431_v14, 0.0 }
 0x344   : > { %v3207_v1 = vpop.f32.mrf.mxu2 }
 0x345   : > { %3495 = vst.msk [vmem:[%s5891_s28 + $0xb0] sm:$0xff] %vm1666_vm8, %v3463_v13  ;;  %v3347_v51 = vadd.f32 %v3346_v19, %v3207_v1 }
 0x346   : > { %v2651_v36 = vpop.permute.xlu1 %2650  ;;  %v3165_v50 = vpop.f32.mrf.mxu0 }
 0x347   : > { %v3396_v58 = vmul.f32 %v5870_v6, %v3347_v51  ;;  %v3305_v20 = vadd.f32 %v3304_v23, %v3165_v50  ;;  %v2907_v30 = vsel %vm1699_vm7, %v5615_v24, %v2651_v36 }
 0x348   : > { %v2715_v8 = vpop.permute.xlu0 %2714  ;;  %v2939_v18 = vsel %vm1732_vm9, %v2907_v30, %v2683_v7  ;;  %v3314_v14 = vpop.f32.mrf.mxu1 }
 0x349   : > { %v3432_v55 = vadd.f32 %v5875_v22, %v3396_v58  ;;  %v3379_v2 = vmul.f32 %v5870_v6, %v3305_v20  ;;  %v2971_v28 = vsel %vm1765_vm11, %v2939_v18, %v2715_v8  ;;  %v3356_v23 = vpop.f32.mrf.mxu3 }
 0x34b   : > { %v3464_v27 = vmax.f32 %v3432_v55, 0.0  ;;  %v3415_v21 = vadd.f32 %v5875_v22, %v3379_v2 }
 0x34d   : > { %3496 = vst.msk [vmem:[%s5891_s28 + $0xb8] sm:$0xff] %vm1666_vm8, %v3464_v27  ;;  %v3447_v49 = vmax.f32 %v3415_v21, 0.0 }
 0x34e   : > { %v2747_v17 = vpop.permute.xlu1 %2746  ;;  %v3167_v24 = vpop.f32.mrf.mxu0 }
 0x34f   : > { %3479 = vst.msk [vmem:[%s5891_s28 + $0x30] sm:$0xff] %vm1666_vm8, %v3447_v49  ;;  %v3003_v54 = vsel %vm1798_vm10, %v2971_v28, %v2747_v17  ;;  %v3307_v37 = vadd.f32 %v3306_v34, %v3167_v24 }
 0x350   : > { %v3035_v32 = vsel %vm1831_vm12, %v3003_v54, %v2779_v35  ;;  %v2811_v16 = vpop.permute.xlu0 %2810  ;;  %v3316_v8 = vpop.f32.mrf.mxu1 }
 0x351   : > { %v3380_v47 = vmul.f32 %v5870_v6, %v3307_v37  ;;  %v3067_v10 = vsel %vm1864_vm14, %v3035_v32, %v2811_v16  ;;  %v3359_v34 = vpop.f32.mrf.mxu3 }
 0x352   : > { %3740 = vmatmul.msk.bf16.gmra.mxu0 %vm3104_vm13, %v3067_v10 }
 0x353   : > { %v3416_v29 = vadd.f32 %v5875_v22, %v3380_v47 }
 0x355   : > { %v3448_v33 = vmax.f32 %v3416_v29, 0.0 }
 0x357   : > { %3480 = vst.msk [vmem:[%s5891_s28 + $0x38] sm:$0xff] %vm1666_vm8, %v3448_v33 }
 0x358   : > { %v3319_v24 = vpop.f32.mrf.mxu1 }
 0x359   : > { %v3361_v37 = vpop.f32.mrf.mxu3 }
 0x35d   : > { %v3210_v40 = vpop.f32.mrf.mxu2 }
 0x35e   : > { %v3350_v57 = vadd.f32 %v3349_v61, %v3210_v40 }
 0x360   : > { %v3397_v43 = vmul.f32 %v5870_v6, %v3350_v57 }
 0x362   : > { %v3433_v52 = vadd.f32 %v5875_v22, %v3397_v43 }
 0x364   : > { %v3465_v56 = vmax.f32 %v3433_v52, 0.0  ;;  %v3321_v52 = vpop.f32.mrf.mxu1 }
 0x365   : > { %v3212_v63 = vpop.f32.mrf.mxu2 }
 0x366   : > { %3497 = vst.msk [vmem:[%s5891_s28 + $0xc0] sm:$0xff] %vm1666_vm8, %v3465_v56  ;;  %v3352_v0 = vadd.f32 %v3351_v15, %v3212_v63 }
 0x367   : > { %v3170_v41 = vpop.f32.mrf.mxu0 }
 0x368   : > { %v3398_v26 = vmul.f32 %v5870_v6, %v3352_v0  ;;  %v3310_v53 = vadd.f32 %v3309_v25, %v3170_v41  ;;  %v3364_v41 = vpop.f32.mrf.mxu3 }
 0x36a   : > { %v3434_v12 = vadd.f32 %v5875_v22, %v3398_v26  ;;  %v3381_v42 = vmul.f32 %v5870_v6, %v3310_v53 }
 0x36c   : > { %v3466_v9 = vmax.f32 %v3434_v12, 0.0  ;;  %v3417_v48 = vadd.f32 %v5875_v22, %v3381_v42 }
 0x36e   : > { %3498 = vst.msk [vmem:[%s5891_s28 + $0xc8] sm:$0xff] %vm1666_vm8, %v3466_v9  ;;  %v3449_v62 = vmax.f32 %v3417_v48, 0.0  ;;  %v3324_v9 = vpop.f32.mrf.mxu1 }
 0x36f   : > { %v3172_v5 = vpop.f32.mrf.mxu0 }
 0x370   : > { %3481 = vst.msk [vmem:[%s5891_s28 + $0x40] sm:$0xff] %vm1666_vm8, %v3449_v62  ;;  %v3312_v4 = vadd.f32 %v3311_v3, %v3172_v5  ;;  %v3366_v62 = vpop.f32.mrf.mxu3 }
 0x372   : > { %v3382_v60 = vmul.f32 %v5870_v6, %v3312_v4 }
 0x374   : > { %v3418_v44 = vadd.f32 %v5875_v22, %v3382_v60 }
 0x376   : > { %v3450_v45 = vmax.f32 %v3418_v44, 0.0 }
 0x378   : > { %3482 = vst.msk [vmem:[%s5891_s28 + $0x48] sm:$0xff] %vm1666_vm8, %v3450_v45 }
 0x383   : > { %v3215_v31 = vpop.f32.mrf.mxu2 }
 0x384   : > { %v3355_v38 = vadd.f32 %v3354_v59, %v3215_v31 }
 0x386   : > { %v3399_v46 = vmul.f32 %v5870_v6, %v3355_v38 }
 0x388   : > { %v3435_v39 = vadd.f32 %v5875_v22, %v3399_v46 }
 0x38a   : > { %v3467_v11 = vmax.f32 %v3435_v39, 0.0  ;;  %v3326_v39 = vpop.f32.mrf.mxu1 }
 0x38b   : > { %v3217_v13 = vpop.f32.mrf.mxu2 }
 0x38c   : > { %3499 = vst.msk [vmem:[%s5891_s28 + $0xd0] sm:$0xff] %vm1666_vm8, %v3467_v11  ;;  %v3357_v7 = vadd.f32 %v3356_v23, %v3217_v13 }
 0x38d   : > { %v3175_v19 = vpop.f32.mrf.mxu0 }
 0x38e   : > { %v3400_v1 = vmul.f32 %v5870_v6, %v3357_v7  ;;  %v3315_v51 = vadd.f32 %v3314_v14, %v3175_v19 }
 0x390   : > { %v3436_v36 = vadd.f32 %v5875_v22, %v3400_v1  ;;  %v3383_v50 = vmul.f32 %v5870_v6, %v3315_v51 }
 0x392   : > { %v3468_v58 = vmax.f32 %v3436_v36, 0.0  ;;  %v3419_v20 = vadd.f32 %v5875_v22, %v3383_v50 }
 0x394   : > { %3500 = vst.msk [vmem:[%s5891_s28 + $0xd8] sm:$0xff] %vm1666_vm8, %v3468_v58  ;;  %v3451_v30 = vmax.f32 %v3419_v20, 0.0 }
 0x395   : > { %v3177_v55 = vpop.f32.mrf.mxu0 }
 0x396   : > { %3483 = vst.msk [vmem:[%s5891_s28 + $0x50] sm:$0xff] %vm1666_vm8, %v3451_v30  ;;  %v3317_v2 = vadd.f32 %v3316_v8, %v3177_v55 }
 0x398   : > { %v3384_v27 = vmul.f32 %v5870_v6, %v3317_v2 }
 0x39a   : > { %v3420_v21 = vadd.f32 %v5875_v22, %v3384_v27 }
 0x39c   : > { %v3452_v18 = vmax.f32 %v3420_v21, 0.0 }
 0x39e   : > { %3484 = vst.msk [vmem:[%s5891_s28 + $0x58] sm:$0xff] %vm1666_vm8, %v3452_v18 }
 0x3a4   : > { %v3220_v49 = vpop.f32.mrf.mxu2 }
 0x3a5   : > { %v3360_v35 = vadd.f32 %v3359_v34, %v3220_v49 }
 0x3a7   : > { %v3401_v28 = vmul.f32 %v5870_v6, %v3360_v35 }
 0x3a9   : > { %v3437_v17 = vadd.f32 %v5875_v22, %v3401_v28 }
 0x3ab   : > { %v3469_v54 = vmax.f32 %v3437_v17, 0.0 }
 0x3ac   : > { %v3222_v32 = vpop.f32.mrf.mxu2 }
 0x3ad   : > { %3501 = vst.msk [vmem:[%s5891_s28 + $0xe0] sm:$0xff] %vm1666_vm8, %v3469_v54  ;;  %v3362_v16 = vadd.f32 %v3361_v37, %v3222_v32 }
 0x3ae   : > { %v3180_v47 = vpop.f32.mrf.mxu0 }
 0x3af   : > { %v3402_v10 = vmul.f32 %v5870_v6, %v3362_v16  ;;  %v3320_v29 = vadd.f32 %v3319_v24, %v3180_v47 }
 0x3b1   : > { %v3438_v33 = vadd.f32 %v5875_v22, %v3402_v10  ;;  %v3385_v61 = vmul.f32 %v5870_v6, %v3320_v29 }
 0x3b3   : > { %v3470_v40 = vmax.f32 %v3438_v33, 0.0  ;;  %v3421_v57 = vadd.f32 %v5875_v22, %v3385_v61 }
 0x3b5   : > { %3502 = vst.msk [vmem:[%s5891_s28 + $0xe8] sm:$0xff] %vm1666_vm8, %v3470_v40  ;;  %v3453_v43 = vmax.f32 %v3421_v57, 0.0 }
 0x3b6   : > { %v3182_v25 = vpop.f32.mrf.mxu0 }
 0x3b7   : > { %3485 = vst.msk [vmem:[%s5891_s28 + $0x60] sm:$0xff] %vm1666_vm8, %v3453_v43  ;;  %v3322_v56 = vadd.f32 %v3321_v52, %v3182_v25 }
 0x3b9   : > { %v3386_v15 = vmul.f32 %v5870_v6, %v3322_v56 }
 0x3bb   : > { %v3422_v63 = vadd.f32 %v5875_v22, %v3386_v15 }
 0x3bd   : > { %v3454_v0 = vmax.f32 %v3422_v63, 0.0 }
 0x3bf   : > { %3486 = vst.msk [vmem:[%s5891_s28 + $0x68] sm:$0xff] %vm1666_vm8, %v3454_v0 }
 0x3c5   : > { %v3225_v26 = vpop.f32.mrf.mxu2 }
 0x3c6   : > { %v3365_v53 = vadd.f32 %v3364_v41, %v3225_v26 }
 0x3c8   : > { %v3403_v12 = vmul.f32 %v5870_v6, %v3365_v53 }
 0x3ca   : > { %v3439_v42 = vadd.f32 %v5875_v22, %v3403_v12 }
 0x3cc   : > { %v3471_v48 = vmax.f32 %v3439_v42, 0.0 }
 0x3cd   : > { %v3227_v3 = vpop.f32.mrf.mxu2 }
 0x3ce   : > { %3503 = vst.msk [vmem:[%s5891_s28 + $0xf0] sm:$0xff] %vm1666_vm8, %v3471_v48  ;;  %v3367_v5 = vadd.f32 %v3366_v62, %v3227_v3 }
 0x3cf   : > { %v3185_v4 = vpop.f32.mrf.mxu0 }
 0x3d0   : > { %v3404_v60 = vmul.f32 %v5870_v6, %v3367_v5  ;;  %v3325_v44 = vadd.f32 %v3324_v9, %v3185_v4 }
 0x3d2   : > { %v3440_v45 = vadd.f32 %v5875_v22, %v3404_v60  ;;  %v3387_v59 = vmul.f32 %v5870_v6, %v3325_v44 }
 0x3d4   : > { %v3472_v31 = vmax.f32 %v3440_v45, 0.0  ;;  %v3423_v38 = vadd.f32 %v5875_v22, %v3387_v59 }
 0x3d6   : > { %3504 = vst.msk [vmem:[%s5891_s28 + $0xf8] sm:$0xff] %vm1666_vm8, %v3472_v31  ;;  %v3455_v46 = vmax.f32 %v3423_v38, 0.0 }
 0x3d7   : > { %v3187_v14 = vpop.f32.mrf.mxu0 }
 0x3d8   : > { %3487 = vst.msk [vmem:[%s5891_s28 + $0x70] sm:$0xff] %vm1666_vm8, %v3455_v46  ;;  %v3327_v11 = vadd.f32 %v3326_v39, %v3187_v14 }
 0x3da   : > { %v3388_v23 = vmul.f32 %v5870_v6, %v3327_v11 }
 0x3dc   : > { %v3424_v13 = vadd.f32 %v5875_v22, %v3388_v23 }
 0x3de   : > { %v3456_v7 = vmax.f32 %v3424_v13, 0.0 }
 0x3e0   : > { %3488 = vst.msk [vmem:[%s5891_s28 + $0x78] sm:$0xff] %vm1666_vm8, %v3456_v7 }
 0x3e1 PF: > { %s20_s5 = sadd.s32 1, %s3851_s5   ;;  %s6415_s11 = smov %s3847_s4 }
 0x3e2   : > { %p17_p5 = scmp.ge.s32.totalorder %s20_s5, 4   ;;  %s6416_s4 = smov %s6418_s12 }
 0x3e4   :  { %19 = sbr.rel (!%p17_p5) target bundleno = 2 (0x2), region = 105 }

</bundles_post_ra>
